<compile_context>
chip_gen: v7x
topology: tpu7x:2x2x1
jax: 0.10.0
libtpu: 0.0.40
codegen_flags: <defaults>
</compile_context>

<pallas_src>
import functools

import jax
import jax.numpy as jnp
import numpy as np
from jax.experimental import pallas as pl
from jax.experimental.pallas import tpu as pltpu


def _linear_attention_kernel(x_ref, wqkv_ref, wout_ref, bout_ref, g_ref,
                             bd_ones_ref, bd_scaled_ref, o_ref, *,
                             eps, batch_tile):
    # x_ref:       (bt, C, N)     input pixels, channels on sublanes, N on lanes
    # wqkv_ref:    (C, 3*HID)     lane-dense 1x1 qkv conv weight, bf16
    # wout_ref:    (C, HID)       1x1 output conv weight, bf16
    # bout_ref:    (C, 1)         output conv bias, f32
    # g_ref:       (C, 1)         LayerNorm gain, f32
    # bd_ones_ref: (HID, HID)     block-diagonal ones (same-head mask), bf16
    # bd_scaled_ref:(HID, HID)    block-diagonal * scale / (H*W), f32
    # o_ref:       (bt, C, N)     output pixels (lane-dense N)
    hidden = bd_ones_ref.shape[0]

    # Constant-index inputs: loaded once per step, tiny.
    wqkv = wqkv_ref[...]            # (C, 3*HID) bf16
    wout = wout_ref[...]            # (C, HID)   bf16
    bias = bout_ref[...]            # (C, 1)     f32
    gain = g_ref[...]               # (C, 1)     f32
    bd_ones = bd_ones_ref[...]      # (HID, HID) bf16
    bd_scaled = bd_scaled_ref[...]  # (HID, HID) f32

    for bi in range(batch_tile):    # static unroll; batch_tile is small & static
        x = x_ref[bi].astype(jnp.bfloat16)                           # (C, N)

        # --- 1x1 qkv conv as one matmul: contract the C axis of both operands.
        qkv = jax.lax.dot_general(
            wqkv, x, dimension_numbers=(((0,), (0,)), ((), ())),
            preferred_element_type=jnp.float32)                      # (3*HID, N)

        q = qkv[0 * hidden:1 * hidden, :]                            # (HID, N) f32
        k = qkv[1 * hidden:2 * hidden, :]                            # (HID, N) f32
        v_bf = qkv[2 * hidden:3 * hidden, :].astype(jnp.bfloat16)    # (HID, N) bf16

        # --- k: spatial softmax kept UN-normalized on the wide tensor; the per-row
        # normalizer is folded into the (HID, HID) context rows below.
        ek = jnp.exp(k - jnp.max(k, axis=1, keepdims=True))          # (HID, N) f32
        ek_bf = ek.astype(jnp.bfloat16)                              # single cast
        recip_ksum = pl.reciprocal(
            jnp.sum(ek, axis=1, keepdims=True), approx=True)         # (HID, 1)

        # --- context: ctx[d, e] = sum_n softmax_k[d, n] * v[e, n] / (H*W), same head only.
        ctx = jax.lax.dot_general(
            ek_bf, v_bf, dimension_numbers=(((1,), (1,)), ((), ())),
            preferred_element_type=jnp.float32)                      # (HID, HID)
        # rows scaled by 1/ksum; block-diag mask carries scale/(H*W) (folded scalars).
        ctx_bf = (ctx * recip_ksum * bd_scaled).astype(jnp.bfloat16)

        # --- q: per-head softmax over dim_head rows, per position.
        # Global per-column max is softmax-invariant per head (see TODO above).
        eq = jnp.exp(q - jnp.max(q, axis=0, keepdims=True))          # (HID, N) f32
        eq_bf = eq.astype(jnp.bfloat16)                              # single cast, reused twice
        # per-head column sums broadcast to every row of the head (MXU slot).
        denom = jnp.dot(bd_ones, eq_bf,
                        preferred_element_type=jnp.float32)          # (HID, N)

        # out_un[e, n] = sum_d ctx[d, e] * eq[d, n]; the softmax denominator is
        # constant within a head so it can be applied after the matmul (exact).
        out_un = jax.lax.dot_general(
            ctx_bf, eq_bf, dimension_numbers=(((0,), (0,)), ((), ())),
            preferred_element_type=jnp.float32)                      # (HID, N)
        out = out_un * pl.reciprocal(denom, approx=True)             # (HID, N) f32

        # --- to_out: 1x1 conv (+bias), then channel LayerNorm (over C, per lane).
        y = jnp.dot(wout, out.astype(jnp.bfloat16),
                    preferred_element_type=jnp.float32) + bias       # (C, N)
        mean = jnp.mean(y, axis=0, keepdims=True)
        var = jnp.mean((y - mean) ** 2, axis=0, keepdims=True)       # unbiased=False
        o_ref[bi] = (y - mean) * jax.lax.rsqrt(var + eps) * gain


def _pick_batch_tile(b):
    """Collapse the batch grid on 1-TC chips; keep >=2 parallel steps on v7x."""
    kind = ""
    try:
        devs = jax.devices()
        if devs:
            kind = devs[0].device_kind.lower()
    except Exception:
        pass
    if "7" in kind:                       # v7x family: 2 TensorCores per chip
        bt = b // 2 if (b >= 2 and b % 2 == 0) else 1
    else:                                 # v5e / v6e: single TC, one grid step
        bt = b
    bt = max(1, min(bt, b))
    while b % bt != 0:
        bt -= 1
    return bt


def linear_attention_pallas(x_nchw, wqkv, wout, bout, g, *, heads, dim_head,
                            batch_tile=None):
    """x_nchw: (B, C, H, W) f32. wqkv: (3*HID, C), wout: (C, HID), bout/g: (C,).
    Returns (B, C, H, W) f32."""
    b, c, h, w = x_nchw.shape
    n = h * w
    hidden = heads * dim_head
    eps = 1e-5 if x_nchw.dtype == jnp.float32 else 1e-3
    scale = dim_head ** (-0.5)

    if batch_tile is None:
        batch_tile = _pick_batch_tile(b)
    grid = (b // batch_tile,)

    # NCHW -> (B, C, N): a free reshape, no transpose.
    x_bcn = x_nchw.reshape(b, c, n)

    # Lane-dense, pre-cast weights: contiguous DMA, half the bytes, no per-step casts.
    wqkv_t_bf = jnp.asarray(wqkv).T.astype(jnp.bfloat16)             # (C, 3*HID)
    wout_bf = jnp.asarray(wout).astype(jnp.bfloat16)                 # (C, HID)
    bout2d = bout.reshape(c, 1).astype(jnp.float32)
    g2d = g.reshape(c, 1).astype(jnp.float32)

    # Block-diagonal head masks, built ONCE here (hoisted out of the kernel body).
    head_idx = np.arange(hidden) // dim_head
    bd = (head_idx[:, None] == head_idx[None, :]).astype(np.float32)
    bd_ones_bf = jnp.asarray(bd, dtype=jnp.bfloat16)                 # (HID, HID)
    bd_scaled_f32 = jnp.asarray(bd * (scale / n), dtype=jnp.float32) # (HID, HID)

    kernel = functools.partial(_linear_attention_kernel,
                               eps=eps, batch_tile=batch_tile)

    # Advisory cost for XLA scheduling around this tiny, latency-bound call.
    flops = 2 * b * (c * 3 * hidden * n + 3 * hidden * hidden * n + c * hidden * n)
    transcendentals = b * (3 * hidden * n + hidden)
    bytes_accessed = int(x_bcn.size * 4 + wqkv_t_bf.size * 2 + wout_bf.size * 2
                         + bd_ones_bf.size * 2 + bd_scaled_f32.size * 4
                         + 2 * c * 4 + b * c * n * 4)

    out_bcn = pl.pallas_call(
        kernel,
        out_shape=jax.ShapeDtypeStruct((b, c, n), jnp.float32),
        grid=grid,
        in_specs=[
            pl.BlockSpec((batch_tile, c, n), lambda i: (i, 0, 0)),   # x
            pl.BlockSpec((c, 3 * hidden), lambda i: (0, 0)),         # W_qkv^T (bf16)
            pl.BlockSpec((c, hidden), lambda i: (0, 0)),             # W_out (bf16)
            pl.BlockSpec((c, 1), lambda i: (0, 0)),                  # b_out
            pl.BlockSpec((c, 1), lambda i: (0, 0)),                  # LayerNorm g
            pl.BlockSpec((hidden, hidden), lambda i: (0, 0)),        # block-diag ones (bf16)
            pl.BlockSpec((hidden, hidden), lambda i: (0, 0)),        # block-diag * scale/N (f32)
        ],
        out_specs=pl.BlockSpec((batch_tile, c, n), lambda i: (i, 0, 0)),
        compiler_params=pltpu.CompilerParams(
            dimension_semantics=("parallel",)),
        cost_estimate=pl.CostEstimate(flops=flops,
                                      transcendentals=transcendentals,
                                      bytes_accessed=bytes_accessed),
    )(x_bcn, wqkv_t_bf, wout_bf, bout2d, g2d, bd_ones_bf, bd_scaled_f32)

    # (B, C, N) -> NCHW: free reshape.
    return out_bcn.reshape(b, c, h, w)


def linear_attention_reference(x, wqkv, wout, bout, g, *, heads, dim_head):
    """Pure-JAX reference mirroring the PyTorch module semantics (NCHW)."""
    b, c, h, w = x.shape
    n = h * w
    hidden = heads * dim_head
    scale = dim_head ** (-0.5)
    eps = 1e-5 if x.dtype == jnp.float32 else 1e-3

    x_flat = x.reshape(b, c, n)
    qkv = jnp.einsum('oc,bcn->bon', wqkv, x_flat)                    # (B, 3*HID, N)
    q = qkv[:, 0 * hidden:1 * hidden].reshape(b, heads, dim_head, n)
    k = qkv[:, 1 * hidden:2 * hidden].reshape(b, heads, dim_head, n)
    v = qkv[:, 2 * hidden:3 * hidden].reshape(b, heads, dim_head, n)

    q = jax.nn.softmax(q, axis=2) * scale
    k = jax.nn.softmax(k, axis=3)
    v = v / n

    ctx = jnp.einsum('bhdn,bhen->bhde', k, v)
    out = jnp.einsum('bhde,bhdn->bhen', ctx, q)
    out = out.reshape(b, hidden, n)

    y = jnp.einsum('oc,bcn->bon', wout, out) + bout[None, :, None]
    mean = jnp.mean(y, axis=1, keepdims=True)
    var = jnp.mean((y - mean) ** 2, axis=1, keepdims=True)
    y = (y - mean) * jax.lax.rsqrt(var + eps) * g[None, :, None]
    return y.reshape(b, c, h, w)


if __name__ == "__main__":
    # Module config: dim=4, heads=4, dim_head=32 -> hidden_dim=128
    DIM, HEADS, DIM_HEAD = 4, 4, 32
    HIDDEN = HEADS * DIM_HEAD
    B, H, W = 2, 16, 16

    key = jax.random.PRNGKey(0)
    k_x, k_qkv, k_out, k_b = jax.random.split(key, 4)

    x = jax.random.normal(k_x, (B, DIM, H, W), dtype=jnp.float32)

    # Deterministic synthetic parameters (1x1 conv weights stored as (out, in) matrices).
    wqkv = jax.random.normal(k_qkv, (3 * HIDDEN, DIM), dtype=jnp.float32) * 0.2
    wout = jax.random.normal(k_out, (DIM, HIDDEN), dtype=jnp.float32) * 0.2
    bout = jax.random.normal(k_b, (DIM,), dtype=jnp.float32) * 0.1
    g = jnp.ones((DIM,), dtype=jnp.float32)   # LayerNorm.g initialized to ones

    out = linear_attention_pallas(x, wqkv, wout, bout, g,
                                  heads=HEADS, dim_head=DIM_HEAD)
    out = jax.block_until_ready(out)

    ref = linear_attention_reference(x, wqkv, wout, bout, g,
                                     heads=HEADS, dim_head=DIM_HEAD)
    # Tolerance reflects bf16 MXU operands + approx (EUP) reciprocals.
    np.testing.assert_allclose(np.asarray(out), np.asarray(ref), atol=2e-2, rtol=2e-2)

    print("KERNEL_OK")
</pallas_src>

<mosaic_0001>
module attributes {stable_mosaic.version = 11 : i64} {
  func.func @_linear_attention_kernel(%arg0: i32, %arg1: memref<2x4x256xf32, #tpu.memory_space<vmem>>, %arg2: memref<4x384xbf16, #tpu.memory_space<vmem>>, %arg3: memref<4x128xbf16, #tpu.memory_space<vmem>>, %arg4: memref<4x1xf32, #tpu.memory_space<vmem>>, %arg5: memref<4x1xf32, #tpu.memory_space<vmem>>, %arg6: memref<128x128xbf16, #tpu.memory_space<vmem>>, %arg7: memref<128x128xf32, #tpu.memory_space<vmem>>, %arg8: memref<2x4x256xf32, #tpu.memory_space<vmem>>) attributes {dimension_semantics = [#tpu.dimension_semantics<parallel>], iteration_bounds = array<i64: 1>, scalar_prefetch = 0 : i64, scratch_operands = 0 : i64, tpu.core_type = #tpu.core_type<tc>, window_params = [{transform_indices = @transform_0, window_bounds = array<i64: 2, 4, 256>}, {pipeline_mode = #tpu.pipeline_mode<synchronous>, transform_indices = @transform_1, window_bounds = array<i64: 4, 384>}, {pipeline_mode = #tpu.pipeline_mode<synchronous>, transform_indices = @transform_2, window_bounds = array<i64: 4, 128>}, {pipeline_mode = #tpu.pipeline_mode<synchronous>, transform_indices = @transform_3, window_bounds = array<i64: 4, 1>}, {pipeline_mode = #tpu.pipeline_mode<synchronous>, transform_indices = @transform_4, window_bounds = array<i64: 4, 1>}, {pipeline_mode = #tpu.pipeline_mode<synchronous>, transform_indices = @transform_5, window_bounds = array<i64: 128, 128>}, {pipeline_mode = #tpu.pipeline_mode<synchronous>, transform_indices = @transform_6, window_bounds = array<i64: 128, 128>}, {transform_indices = @transform_7, window_bounds = array<i64: 2, 4, 256>}]} {
    %c0 = arith.constant 0 : index
    %c0_0 = arith.constant 0 : index
    %0 = vector.load %arg2[%c0, %c0_0] : memref<4x384xbf16, #tpu.memory_space<vmem>>, vector<4x384xbf16>
    %c0_1 = arith.constant 0 : index
    %c0_2 = arith.constant 0 : index
    %1 = vector.load %arg3[%c0_1, %c0_2] : memref<4x128xbf16, #tpu.memory_space<vmem>>, vector<4x128xbf16>
    %c0_3 = arith.constant 0 : index
    %c0_4 = arith.constant 0 : index
    %2 = vector.load %arg4[%c0_3, %c0_4] : memref<4x1xf32, #tpu.memory_space<vmem>>, vector<4x1xf32>
    %c0_5 = arith.constant 0 : index
    %c0_6 = arith.constant 0 : index
    %3 = vector.load %arg5[%c0_5, %c0_6] : memref<4x1xf32, #tpu.memory_space<vmem>>, vector<4x1xf32>
    %c0_7 = arith.constant 0 : index
    %c0_8 = arith.constant 0 : index
    %4 = vector.load %arg6[%c0_7, %c0_8] : memref<128x128xbf16, #tpu.memory_space<vmem>>, vector<128x128xbf16>
    %c0_9 = arith.constant 0 : index
    %c0_10 = arith.constant 0 : index
    %5 = vector.load %arg7[%c0_9, %c0_10] : memref<128x128xf32, #tpu.memory_space<vmem>>, vector<128x128xf32>
    %c0_11 = arith.constant 0 : index
    %c0_12 = arith.constant 0 : index
    %c0_13 = arith.constant 0 : index
    %6 = vector.load %arg1[%c0_11, %c0_12, %c0_13] : memref<2x4x256xf32, #tpu.memory_space<vmem>>, vector<1x4x256xf32>
    %7 = vector.shape_cast %6 : vector<1x4x256xf32> to vector<4x256xf32>
    %8 = arith.truncf %7 : vector<4x256xf32> to vector<4x256xbf16>
    %cst = arith.constant dense<0.000000e+00> : vector<384x256xf32>
    %9 = tpu.matmul %0, %8, %cst {dimension_numbers = #tpu.dot_dimension_numbers<[0], [0], [1], [1], [0, 1, 1, 1], [], []>} : vector<4x384xbf16>, vector<4x256xbf16>, vector<384x256xf32> -> vector<384x256xf32>
    %10 = vector.extract_strided_slice %9 {offsets = [0, 0], sizes = [128, 256], strides = [1, 1]} : vector<384x256xf32> to vector<128x256xf32>
    %11 = vector.extract_strided_slice %9 {offsets = [128, 0], sizes = [128, 256], strides = [1, 1]} : vector<384x256xf32> to vector<128x256xf32>
    %12 = vector.extract_strided_slice %9 {offsets = [256, 0], sizes = [128, 256], strides = [1, 1]} : vector<384x256xf32> to vector<128x256xf32>
    %13 = arith.truncf %12 : vector<128x256xf32> to vector<128x256xbf16>
    %cst_14 = arith.constant dense<0xFF800000> : vector<128xf32>
    %14 = vector.multi_reduction <maximumf>, %11, %cst_14 [1] : vector<128x256xf32> to vector<128xf32>
    %15 = vector.shape_cast %14 : vector<128xf32> to vector<128x1xf32>
    %16 = vector.broadcast %15 : vector<128x1xf32> to vector<128x256xf32>
    %17 = arith.subf %11, %16 : vector<128x256xf32>
    %18 = math.exp %17 : vector<128x256xf32>
    %19 = arith.truncf %18 : vector<128x256xf32> to vector<128x256xbf16>
    %cst_15 = arith.constant dense<0.000000e+00> : vector<128xf32>
    %20 = vector.multi_reduction <add>, %18, %cst_15 [1] : vector<128x256xf32> to vector<128xf32>
    %21 = vector.shape_cast %20 : vector<128xf32> to vector<128x1xf32>
    %22 = tpu.reciprocal %21 {approx = true} : vector<128x1xf32> -> vector<128x1xf32>
    %cst_16 = arith.constant dense<0.000000e+00> : vector<128x128xf32>
    %23 = tpu.matmul %19, %13, %cst_16 {dimension_numbers = #tpu.dot_dimension_numbers<[1], [1], [0], [0], [0, 0, 1, 0], [], []>} : vector<128x256xbf16>, vector<128x256xbf16>, vector<128x128xf32> -> vector<128x128xf32>
    %24 = vector.broadcast %22 : vector<128x1xf32> to vector<128x128xf32>
    %25 = arith.mulf %23, %24 : vector<128x128xf32>
    %26 = arith.mulf %25, %5 : vector<128x128xf32>
    %27 = arith.truncf %26 : vector<128x128xf32> to vector<128x128xbf16>
    %cst_17 = arith.constant dense<0xFF800000> : vector<256xf32>
    %28 = vector.multi_reduction <maximumf>, %10, %cst_17 [0] : vector<128x256xf32> to vector<256xf32>
    %29 = vector.shape_cast %28 : vector<256xf32> to vector<1x256xf32>
    %30 = vector.broadcast %29 : vector<1x256xf32> to vector<128x256xf32>
    %31 = arith.subf %10, %30 : vector<128x256xf32>
    %32 = math.exp %31 : vector<128x256xf32>
    %33 = arith.truncf %32 : vector<128x256xf32> to vector<128x256xbf16>
    %cst_18 = arith.constant dense<0.000000e+00> : vector<128x256xf32>
    %34 = tpu.matmul %4, %33, %cst_18 {dimension_numbers = #tpu.dot_dimension_numbers<[1], [0], [0], [1], [0, 0, 1, 1], [], []>} : vector<128x128xbf16>, vector<128x256xbf16>, vector<128x256xf32> -> vector<128x256xf32>
    %cst_19 = arith.constant dense<0.000000e+00> : vector<128x256xf32>
    %35 = tpu.matmul %27, %33, %cst_19 {dimension_numbers = #tpu.dot_dimension_numbers<[0], [0], [1], [1], [0, 1, 1, 1], [], []>} : vector<128x128xbf16>, vector<128x256xbf16>, vector<128x256xf32> -> vector<128x256xf32>
    %36 = tpu.reciprocal %34 {approx = true} : vector<128x256xf32> -> vector<128x256xf32>
    %37 = arith.mulf %35, %36 : vector<128x256xf32>
    %38 = arith.truncf %37 : vector<128x256xf32> to vector<128x256xbf16>
    %cst_20 = arith.constant dense<0.000000e+00> : vector<4x256xf32>
    %39 = tpu.matmul %1, %38, %cst_20 {dimension_numbers = #tpu.dot_dimension_numbers<[1], [0], [0], [1], [0, 0, 1, 1], [], []>} : vector<4x128xbf16>, vector<128x256xbf16>, vector<4x256xf32> -> vector<4x256xf32>
    %40 = vector.broadcast %2 : vector<4x1xf32> to vector<4x256xf32>
    %41 = arith.addf %39, %40 : vector<4x256xf32>
    %cst_21 = arith.constant dense<0.000000e+00> : vector<256xf32>
    %42 = vector.multi_reduction <add>, %41, %cst_21 [0] : vector<4x256xf32> to vector<256xf32>
    %43 = vector.shape_cast %42 : vector<256xf32> to vector<1x256xf32>
    %cst_22 = arith.constant 4.000000e+00 : f32
    %44 = vector.broadcast %cst_22 : f32 to vector<1x256xf32>
    %45 = arith.divf %43, %44 : vector<1x256xf32>
    %46 = vector.broadcast %45 : vector<1x256xf32> to vector<4x256xf32>
    %47 = arith.subf %41, %46 : vector<4x256xf32>
    %48 = arith.mulf %47, %47 : vector<4x256xf32>
    %cst_23 = arith.constant dense<0.000000e+00> : vector<256xf32>
    %49 = vector.multi_reduction <add>, %48, %cst_23 [0] : vector<4x256xf32> to vector<256xf32>
    %50 = vector.shape_cast %49 : vector<256xf32> to vector<1x256xf32>
    %cst_24 = arith.constant 4.000000e+00 : f32
    %51 = vector.broadcast %cst_24 : f32 to vector<1x256xf32>
    %52 = arith.divf %50, %51 : vector<1x256xf32>
    %53 = vector.broadcast %45 : vector<1x256xf32> to vector<4x256xf32>
    %54 = arith.subf %41, %53 : vector<4x256xf32>
    %cst_25 = arith.constant 9.99999974E-6 : f32
    %55 = vector.broadcast %cst_25 : f32 to vector<1x256xf32>
    %56 = arith.addf %52, %55 : vector<1x256xf32>
    %57 = math.rsqrt %56 : vector<1x256xf32>
    %58 = vector.broadcast %57 : vector<1x256xf32> to vector<4x256xf32>
    %59 = arith.mulf %54, %58 : vector<4x256xf32>
    %60 = vector.broadcast %3 : vector<4x1xf32> to vector<4x256xf32>
    %61 = arith.mulf %59, %60 : vector<4x256xf32>
    %c0_26 = arith.constant 0 : index
    %c0_27 = arith.constant 0 : index
    %c0_28 = arith.constant 0 : index
    %62 = vector.load %arg8[%c0_26, %c0_27, %c0_28] : memref<2x4x256xf32, #tpu.memory_space<vmem>>, vector<1x4x256xf32>
    %63 = vector.shape_cast %62 : vector<1x4x256xf32> to vector<4x256xf32>
    %64 = vector.shape_cast %61 : vector<4x256xf32> to vector<1x4x256xf32>
    tpu.vector_store %arg8[%c0_26, %c0_27, %c0_28], %64 {strides = array<i32>} : memref<2x4x256xf32, #tpu.memory_space<vmem>>, vector<1x4x256xf32>,
    %c1 = arith.constant 1 : index
    %c0_29 = arith.constant 0 : index
    %c0_30 = arith.constant 0 : index
    %65 = vector.load %arg1[%c1, %c0_29, %c0_30] : memref<2x4x256xf32, #tpu.memory_space<vmem>>, vector<1x4x256xf32>
    %66 = vector.shape_cast %65 : vector<1x4x256xf32> to vector<4x256xf32>
    %67 = arith.truncf %66 : vector<4x256xf32> to vector<4x256xbf16>
    %cst_31 = arith.constant dense<0.000000e+00> : vector<384x256xf32>
    %68 = tpu.matmul %0, %67, %cst_31 {dimension_numbers = #tpu.dot_dimension_numbers<[0], [0], [1], [1], [0, 1, 1, 1], [], []>} : vector<4x384xbf16>, vector<4x256xbf16>, vector<384x256xf32> -> vector<384x256xf32>
    %69 = vector.extract_strided_slice %68 {offsets = [0, 0], sizes = [128, 256], strides = [1, 1]} : vector<384x256xf32> to vector<128x256xf32>
    %70 = vector.extract_strided_slice %68 {offsets = [128, 0], sizes = [128, 256], strides = [1, 1]} : vector<384x256xf32> to vector<128x256xf32>
    %71 = vector.extract_strided_slice %68 {offsets = [256, 0], sizes = [128, 256], strides = [1, 1]} : vector<384x256xf32> to vector<128x256xf32>
    %72 = arith.truncf %71 : vector<128x256xf32> to vector<128x256xbf16>
    %cst_32 = arith.constant dense<0xFF800000> : vector<128xf32>
    %73 = vector.multi_reduction <maximumf>, %70, %cst_32 [1] : vector<128x256xf32> to vector<128xf32>
    %74 = vector.shape_cast %73 : vector<128xf32> to vector<128x1xf32>
    %75 = vector.broadcast %74 : vector<128x1xf32> to vector<128x256xf32>
    %76 = arith.subf %70, %75 : vector<128x256xf32>
    %77 = math.exp %76 : vector<128x256xf32>
    %78 = arith.truncf %77 : vector<128x256xf32> to vector<128x256xbf16>
    %cst_33 = arith.constant dense<0.000000e+00> : vector<128xf32>
    %79 = vector.multi_reduction <add>, %77, %cst_33 [1] : vector<128x256xf32> to vector<128xf32>
    %80 = vector.shape_cast %79 : vector<128xf32> to vector<128x1xf32>
    %81 = tpu.reciprocal %80 {approx = true} : vector<128x1xf32> -> vector<128x1xf32>
    %cst_34 = arith.constant dense<0.000000e+00> : vector<128x128xf32>
    %82 = tpu.matmul %78, %72, %cst_34 {dimension_numbers = #tpu.dot_dimension_numbers<[1], [1], [0], [0], [0, 0, 1, 0], [], []>} : vector<128x256xbf16>, vector<128x256xbf16>, vector<128x128xf32> -> vector<128x128xf32>
    %83 = vector.broadcast %81 : vector<128x1xf32> to vector<128x128xf32>
    %84 = arith.mulf %82, %83 : vector<128x128xf32>
    %85 = arith.mulf %84, %5 : vector<128x128xf32>
    %86 = arith.truncf %85 : vector<128x128xf32> to vector<128x128xbf16>
    %cst_35 = arith.constant dense<0xFF800000> : vector<256xf32>
    %87 = vector.multi_reduction <maximumf>, %69, %cst_35 [0] : vector<128x256xf32> to vector<256xf32>
    %88 = vector.shape_cast %87 : vector<256xf32> to vector<1x256xf32>
    %89 = vector.broadcast %88 : vector<1x256xf32> to vector<128x256xf32>
    %90 = arith.subf %69, %89 : vector<128x256xf32>
    %91 = math.exp %90 : vector<128x256xf32>
    %92 = arith.truncf %91 : vector<128x256xf32> to vector<128x256xbf16>
    %cst_36 = arith.constant dense<0.000000e+00> : vector<128x256xf32>
    %93 = tpu.matmul %4, %92, %cst_36 {dimension_numbers = #tpu.dot_dimension_numbers<[1], [0], [0], [1], [0, 0, 1, 1], [], []>} : vector<128x128xbf16>, vector<128x256xbf16>, vector<128x256xf32> -> vector<128x256xf32>
    %cst_37 = arith.constant dense<0.000000e+00> : vector<128x256xf32>
    %94 = tpu.matmul %86, %92, %cst_37 {dimension_numbers = #tpu.dot_dimension_numbers<[0], [0], [1], [1], [0, 1, 1, 1], [], []>} : vector<128x128xbf16>, vector<128x256xbf16>, vector<128x256xf32> -> vector<128x256xf32>
    %95 = tpu.reciprocal %93 {approx = true} : vector<128x256xf32> -> vector<128x256xf32>
    %96 = arith.mulf %94, %95 : vector<128x256xf32>
    %97 = arith.truncf %96 : vector<128x256xf32> to vector<128x256xbf16>
    %cst_38 = arith.constant dense<0.000000e+00> : vector<4x256xf32>
    %98 = tpu.matmul %1, %97, %cst_38 {dimension_numbers = #tpu.dot_dimension_numbers<[1], [0], [0], [1], [0, 0, 1, 1], [], []>} : vector<4x128xbf16>, vector<128x256xbf16>, vector<4x256xf32> -> vector<4x256xf32>
    %99 = vector.broadcast %2 : vector<4x1xf32> to vector<4x256xf32>
    %100 = arith.addf %98, %99 : vector<4x256xf32>
    %cst_39 = arith.constant dense<0.000000e+00> : vector<256xf32>
    %101 = vector.multi_reduction <add>, %100, %cst_39 [0] : vector<4x256xf32> to vector<256xf32>
    %102 = vector.shape_cast %101 : vector<256xf32> to vector<1x256xf32>
    %cst_40 = arith.constant 4.000000e+00 : f32
    %103 = vector.broadcast %cst_40 : f32 to vector<1x256xf32>
    %104 = arith.divf %102, %103 : vector<1x256xf32>
    %105 = vector.broadcast %104 : vector<1x256xf32> to vector<4x256xf32>
    %106 = arith.subf %100, %105 : vector<4x256xf32>
    %107 = arith.mulf %106, %106 : vector<4x256xf32>
    %cst_41 = arith.constant dense<0.000000e+00> : vector<256xf32>
    %108 = vector.multi_reduction <add>, %107, %cst_41 [0] : vector<4x256xf32> to vector<256xf32>
    %109 = vector.shape_cast %108 : vector<256xf32> to vector<1x256xf32>
    %cst_42 = arith.constant 4.000000e+00 : f32
    %110 = vector.broadcast %cst_42 : f32 to vector<1x256xf32>
    %111 = arith.divf %109, %110 : vector<1x256xf32>
    %112 = vector.broadcast %104 : vector<1x256xf32> to vector<4x256xf32>
    %113 = arith.subf %100, %112 : vector<4x256xf32>
    %cst_43 = arith.constant 9.99999974E-6 : f32
    %114 = vector.broadcast %cst_43 : f32 to vector<1x256xf32>
    %115 = arith.addf %111, %114 : vector<1x256xf32>
    %116 = math.rsqrt %115 : vector<1x256xf32>
    %117 = vector.broadcast %116 : vector<1x256xf32> to vector<4x256xf32>
    %118 = arith.mulf %113, %117 : vector<4x256xf32>
    %119 = vector.broadcast %3 : vector<4x1xf32> to vector<4x256xf32>
    %120 = arith.mulf %118, %119 : vector<4x256xf32>
    %c1_44 = arith.constant 1 : index
    %c0_45 = arith.constant 0 : index
    %c0_46 = arith.constant 0 : index
    %121 = vector.load %arg8[%c1_44, %c0_45, %c0_46] : memref<2x4x256xf32, #tpu.memory_space<vmem>>, vector<1x4x256xf32>
    %122 = vector.shape_cast %121 : vector<1x4x256xf32> to vector<4x256xf32>
    %123 = vector.shape_cast %120 : vector<4x256xf32> to vector<1x4x256xf32>
    tpu.vector_store %arg8[%c1_44, %c0_45, %c0_46], %123 {strides = array<i32>} : memref<2x4x256xf32, #tpu.memory_space<vmem>>, vector<1x4x256xf32>,
    return
  }
  func.func @transform_0(%arg0: i32) -> (i32, i32, i32) {
    %c0_i32 = arith.constant 0 : i32
    %c0_i32_0 = arith.constant 0 : i32
    %c0_i32_1 = arith.constant 0 : i32
    return %arg0, %c0_i32, %c0_i32_0 : i32, i32, i32
  }
  func.func @transform_1(%arg0: i32) -> (i32, i32) {
    %c0_i32 = arith.constant 0 : i32
    %c0_i32_0 = arith.constant 0 : i32
    %c0_i32_1 = arith.constant 0 : i32
    return %c0_i32, %c0_i32_0 : i32, i32
  }
  func.func @transform_2(%arg0: i32) -> (i32, i32) {
    %c0_i32 = arith.constant 0 : i32
    %c0_i32_0 = arith.constant 0 : i32
    %c0_i32_1 = arith.constant 0 : i32
    return %c0_i32, %c0_i32_0 : i32, i32
  }
  func.func @transform_3(%arg0: i32) -> (i32, i32) {
    %c0_i32 = arith.constant 0 : i32
    %c0_i32_0 = arith.constant 0 : i32
    %c0_i32_1 = arith.constant 0 : i32
    return %c0_i32, %c0_i32_0 : i32, i32
  }
  func.func @transform_4(%arg0: i32) -> (i32, i32) {
    %c0_i32 = arith.constant 0 : i32
    %c0_i32_0 = arith.constant 0 : i32
    %c0_i32_1 = arith.constant 0 : i32
    return %c0_i32, %c0_i32_0 : i32, i32
  }
  func.func @transform_5(%arg0: i32) -> (i32, i32) {
    %c0_i32 = arith.constant 0 : i32
    %c0_i32_0 = arith.constant 0 : i32
    %c0_i32_1 = arith.constant 0 : i32
    return %c0_i32, %c0_i32_0 : i32, i32
  }
  func.func @transform_6(%arg0: i32) -> (i32, i32) {
    %c0_i32 = arith.constant 0 : i32
    %c0_i32_0 = arith.constant 0 : i32
    %c0_i32_1 = arith.constant 0 : i32
    return %c0_i32, %c0_i32_0 : i32, i32
  }
  func.func @transform_7(%arg0: i32) -> (i32, i32, i32) {
    %c0_i32 = arith.constant 0 : i32
    %c0_i32_0 = arith.constant 0 : i32
    %c0_i32_1 = arith.constant 0 : i32
    return %arg0, %c0_i32, %c0_i32_0 : i32, i32, i32
  }
}

</mosaic_0001>

<bundles_post_ra>
// kernel: tpu_custom_call.1
= control target key start
LH: loop header
LB: loop body
LE: loop exit
PB: predicated region body
PF: predicated region fallthrough
CT: control target
= control target key end

     0   :  { %12 = vsyncpa [#allocation3], 0  ;;  %s4714_s0 = inlined_call_operand.hbm [shape: f32[2,4,256], index: 0, kind: input, shape index: {}]   ;;  %s4715_s1 = inlined_call_operand.vmem [shape: bf16[4,384], index: 1, kind: input, shape index: {}]   ;;  %s4716_s2 = inlined_call_operand.vmem [shape: bf16[4,128], index: 2, kind: input, shape index: {}]   ;;  %s4717_s3 = inlined_call_operand.vmem [shape: f32[4,1], index: 3, kind: input, shape index: {}]   ;;  %s4718_s4 = inlined_call_operand.vmem [shape: f32[4,1], index: 4, kind: input, shape index: {}]   ;;  %s4719_s5 = inlined_call_operand.hbm [shape: bf16[128,128], index: 5, kind: input, shape index: {}]   ;;  %s4720_s6 = inlined_call_operand.hbm [shape: f32[128,128], index: 6, kind: input, shape index: {}]   ;;  %s4721_s7 = inlined_call_operand.hbm [shape: f32[2,4,256], index: 7, kind: output, shape index: {}]  }
   0x1   :  { %13 = vsyncpa [#allocation6], 0 }
   0x2   :  { %14 = vsyncpa [#allocation4], 0  ;;  %s3455_s24 = smov [#allocation5]   ;;  %s3361_s28 = scalar_lea.hbm %s4719_s5, 1024 }
   0x3   :  { %s40_s25 = sshll.u32 %s3455_s24, 4  ;;  %p3362_p0 = scmp.ne.s32.totalorder %s4719_s5, %s3361_s28  ;;  %s41_s25 = int_to_ptr.vmem [resolvable:$true] %s40_s25 }
   0x4   :  { %p3365_p1 = scmp.lt.u32.totalorder %s3361_s28, %s4719_s5 }
   0x6   :  { %p3367_p2 = pnand %p3365_p1, %p3362_p0 }
   0x8   :  { %3370 = shalt.err (!%p3367_p2)
}
   0x9   :  { %s3371_s10 = scalar_lea.vmem %s41_s25, 1024  ;;  %p3376_p4 = scmp.lt.s32.totalorder %s41_s25, %s41_s25 }
   0xa   :  { %p3372_p3 = scmp.ne.s32.totalorder %s41_s25, %s3371_s10  ;;  %p3377_p5 = scmp.lt.s32.totalorder %s3371_s10, %s3371_s10 }
   0xc   :  { %p3378_p6 = por %p3377_p5, %p3376_p4 }
   0xe   :  { %p3379_p7 = pnand %p3378_p6, %p3372_p3 }
  0x10   :  { %3382 = shalt.err (!%p3379_p7)
}
  0x11   :  { %s3456_s11 = smov 64   ;;  %s3457_s12 = smov 4  }
  0x12   :  { %46 = dma.hbm_to_vmem [thread:$0]  %s4719_s5, 1024, %s41_s25, [#allocation6], %s3456_s11, %s3456_s11, %s3457_s12  }
  0x13   :  { %s3458_s15 = smov [#allocation2]   ;;  %s3383_s19 = scalar_lea.hbm %s4714_s0, 256 }
  0x14   :  { %s20_s16 = sshll.u32 %s3458_s15, 4  ;;  %p3384_p8 = scmp.ne.s32.totalorder %s4714_s0, %s3383_s19  ;;  %s21_s16 = int_to_ptr.vmem [resolvable:$true] %s20_s16 }
  0x15   :  { %p3387_p9 = scmp.lt.u32.totalorder %s3383_s19, %s4714_s0 }
  0x17   :  { %p3389_p10 = pnand %p3387_p9, %p3384_p8 }
  0x19   :  { %3392 = shalt.err (!%p3389_p10)
}
  0x1a   :  { %s3393_s24 = scalar_lea.vmem %s21_s16, 256  ;;  %p3398_p12 = scmp.lt.s32.totalorder %s21_s16, %s21_s16 }
  0x1b   :  { %p3394_p11 = scmp.ne.s32.totalorder %s21_s16, %s3393_s24  ;;  %p3399_p13 = scmp.lt.s32.totalorder %s3393_s24, %s3393_s24 }
  0x1d   :  { %p3400_p0 = por %p3399_p13, %p3398_p12 }
  0x1f   :  { %p3401_p1 = pnand %p3400_p0, %p3394_p11 }
  0x21   :  { %3404 = shalt.err (!%p3401_p1)
}
  0x22   :  { %s3459_s5 = smov 128   ;;  %s3460_s25 = smov 8  }
  0x23   :  { %26 = dma.hbm_to_vmem [thread:$0]  %s4714_s0, 256, %s21_s16, [#allocation3], %s3459_s5, %s3459_s5, %s3460_s25  }
  0x24   :  { %s3461_s28 = smov [#allocation7]   ;;  %s3405_s9 = scalar_lea.hbm %s4720_s6, 2048 }
  0x25   :  { %s52_s29 = sshll.u32 %s3461_s28, 4  ;;  %p3406_p2 = scmp.ne.s32.totalorder %s4720_s6, %s3405_s9  ;;  %s53_s29 = int_to_ptr.vmem [resolvable:$true] %s52_s29 }
  0x26   :  { %p3409_p3 = scmp.lt.u32.totalorder %s3405_s9, %s4720_s6 }
  0x28   :  { %p3411_p4 = pnand %p3409_p3, %p3406_p2 }
  0x2a   :  { %3414 = shalt.err (!%p3411_p4)
}
  0x2b   :  { %s3415_s14 = scalar_lea.vmem %s53_s29, 2048  ;;  %p3420_p6 = scmp.lt.s32.totalorder %s53_s29, %s53_s29 }
  0x2c   :  { %p3416_p5 = scmp.ne.s32.totalorder %s53_s29, %s3415_s14  ;;  %p3421_p7 = scmp.lt.s32.totalorder %s3415_s14, %s3415_s14 }
  0x2e   :  { %p3422_p8 = por %p3421_p7, %p3420_p6 }
  0x30   :  { %p3423_p9 = pnand %p3422_p8, %p3416_p5 }
  0x32   :  { %3426 = shalt.err (!%p3423_p9)
}
  0x33   :  { %58 = dma.hbm_to_vmem [thread:$0]  %s4720_s6, 2048, %s53_s29, [#allocation6], %s3459_s5, %s3459_s5, %s3460_s25  }
  0x34   :  { %3449 = dma.done.wait [#allocation3], 256  }
  0x35   :  { %3450 = vsyncadd [#allocation3], 4294967040 }
  0x36   :  { %3451 = dma.done.wait [#allocation6], 3072  }
  0x37   :  { %3452 = vsyncadd [#allocation6], 4294964224  ;;  %v116_v0 = vlaneseq  ;;  %v3462_v1 = vmov 1983009808   ;;  %v4722_v3 = vmov 0   ;;  %v105_v8 = vld [vmem:[#allocation2] sm:$0xff] }
  0x38   :  { %v114_v2 = vunpack.c.l.s4 %v3462_v1  ;;  %291 = vmatprep.mubr.bf16.mxu0 %v4722_v3  ;;  %v69_v7 = vld [vmem:[%s4715_s1] sm:$0x3f]  ;;  %vm252_vm0 = vcmask 1041408   ;;  %v107_v10 = vcombine.high %v105_v8, %v105_v8  ;;  %v109_v11 = vpack.c.bf16 %v105_v8, %v105_v8 }
  0x39   :  { %v117_v4 = vshrl.u32 %v116_v0, 7  ;;  %v112_v12 = vcombine.high %v69_v7, %v69_v7  ;;  %vm179_vm1 = vcmask 31744   ;;  %vm1479_vm2 = vcmask 1043456  }
  0x3a   :  { %v115_v5 = vunpack.c.0.s8 %v114_v2  ;;  %v110_v13 = vpack.c.bf16 %v107_v10, %v107_v10  ;;  %v254_v14 = vsel %vm252_vm0, %v109_v11, 0 }
  0x3c   :  { %v118_v6 = vsub.s32 %v115_v5, %v117_v4  ;;  %2783 = vmatprep.subr.msk.bf16.mxu0 %vm252_vm0, %v110_v13 }
  0x3d   :  { %260 = vmatpush1.bf16.msra.mxu0 %v254_v14 }
  0x3e   :  { %v119_v9 = vrot.slane %v69_v7, %v118_v6  ;;  %v126_v15 = vrot.slane %v112_v12, %v118_v6 }
  0x40   :  { %131 = vxpose.xlu0.c.b16.start.end [1/1] (short) %v119_v9, 128  ;;  %163 = vxpose.xlu1.c.b16.start.end [1/1] (short) %v126_v15, 128  ;;  %v127_v16 = vcombine.high %v119_v9, %v119_v9 }
  0x44   :  { %2867 = vset.pattern.permute.xlu1 %v4722_v3 }
  0x5d   :  { %147 = vxpose.xlu0.c.b16.start.end [1/1] (short) %v127_v16, 128 }
  0xa6   :  { %v3554_v17 = vpop.trf.xlu0  ;;  %v3634_v33 = vpop.trf.xlu1 }
  0xa7   :  { %2784 = vmatmul.mubr.msk.bf16.vlgmr.msra.gmra.mrb[0].mxu0 %vm179_vm1, %v3554_v17  ;;  %4765 = vst [vmem:[#allocation27_spill] sm:$0xff] %v3634_v33 }
  0xa8   :  { %301 = vmatprep.mubr.bf16.mxu0 %v4722_v3 }
  0xaa   :  { %v3559_v18 = vpop.trf.xlu0  ;;  %v3639_v34 = vpop.trf.xlu1 }
  0xab   :  { %4750 = vst [vmem:[#allocation12_spill] sm:$0xff] %v3559_v18  ;;  %4766 = vst [vmem:[#allocation28_spill] sm:$0xff] %v3639_v34 }
  0xae   :  { %v3564_v19 = vpop.trf.xlu0  ;;  %v3644_v35 = vpop.trf.xlu1 }
  0xaf   :  { %2785 = vmatmul.mubr.msk.bf16.gmra.mrb[4].mxu0 %vm179_vm1, %v3559_v18  ;;  %4751 = vst [vmem:[#allocation13_spill] sm:$0xff] %v3564_v19  ;;  %4767 = vst [vmem:[#allocation29_spill] sm:$0xff] %v3644_v35 }
  0xb0   :  { %311 = vmatprep.mubr.bf16.mxu0 %v4722_v3 }
  0xb2   :  { %v3569_v20 = vpop.trf.xlu0  ;;  %v3649_v36 = vpop.trf.xlu1 }
  0xb3   :  { %4752 = vst [vmem:[#allocation14_spill] sm:$0xff] %v3569_v20  ;;  %4768 = vst [vmem:[#allocation30_spill] sm:$0xff] %v3649_v36 }
  0xb6   :  { %v3574_v21 = vpop.trf.xlu0  ;;  %v3654_v37 = vpop.trf.xlu1 }
  0xb7   :  { %2786 = vmatmul.mubr.msk.bf16.gmra.mrb[8].mxu0 %vm179_vm1, %v3564_v19  ;;  %4753 = vst [vmem:[#allocation15_spill] sm:$0xff] %v3574_v21  ;;  %4769 = vst [vmem:[#allocation31_spill] sm:$0xff] %v3654_v37 }
  0xb8   :  { %321 = vmatprep.mubr.bf16.mxu0 %v4722_v3 }
  0xba   :  { %v3579_v22 = vpop.trf.xlu0  ;;  %v3659_v38 = vpop.trf.xlu1 }
  0xbb   :  { %4754 = vst [vmem:[#allocation16_spill] sm:$0xff] %v3579_v22  ;;  %4770 = vst [vmem:[#allocation32_spill] sm:$0xff] %v3659_v38 }
  0xbe   :  { %v3584_v23 = vpop.trf.xlu0  ;;  %v3664_v39 = vpop.trf.xlu1 }
  0xbf   :  { %2787 = vmatmul.mubr.msk.bf16.gmra.mrb[12].mxu0 %vm179_vm1, %v3569_v20  ;;  %4755 = vst [vmem:[#allocation17_spill] sm:$0xff] %v3584_v23  ;;  %4771 = vst [vmem:[#allocation33_spill] sm:$0xff] %v3664_v39 }
  0xc0   :  { %331 = vmatprep.mubr.bf16.mxu0 %v4722_v3 }
  0xc2   :  { %v3589_v24 = vpop.trf.xlu0  ;;  %v3669_v40 = vpop.trf.xlu1 }
  0xc3   :  { %4756 = vst [vmem:[#allocation18_spill] sm:$0xff] %v3589_v24  ;;  %4772 = vst [vmem:[#allocation34_spill] sm:$0xff] %v3669_v40 }
  0xc6   :  { %v3594_v25 = vpop.trf.xlu0 }
  0xc7   :  { %2788 = vmatmul.mubr.msk.bf16.gmra.mrb[16].mxu0 %vm179_vm1, %v3574_v21  ;;  %4757 = vst [vmem:[#allocation19_spill] sm:$0xff] %v3594_v25 }
  0xc8   :  { %341 = vmatprep.mubr.bf16.mxu0 %v4722_v3 }
  0xca   :  { %v3599_v26 = vpop.trf.xlu0 }
  0xcb   :  { %4758 = vst [vmem:[#allocation20_spill] sm:$0xff] %v3599_v26 }
  0xce   :  { %v3604_v27 = vpop.trf.xlu0 }
  0xcf   :  { %2789 = vmatmul.mubr.msk.bf16.gmra.mrb[20].mxu0 %vm179_vm1, %v3579_v22  ;;  %4759 = vst [vmem:[#allocation21_spill] sm:$0xff] %v3604_v27 }
  0xd0   :  { %351 = vmatprep.mubr.bf16.mxu0 %v4722_v3 }
  0xd2   :  { %v3609_v28 = vpop.trf.xlu0 }
  0xd3   :  { %4760 = vst [vmem:[#allocation22_spill] sm:$0xff] %v3609_v28 }
  0xd6   :  { %v3614_v29 = vpop.trf.xlu0 }
  0xd7   :  { %2790 = vmatmul.mubr.msk.bf16.gmra.mrb[24].mxu0 %vm179_vm1, %v3584_v23  ;;  %4761 = vst [vmem:[#allocation23_spill] sm:$0xff] %v3614_v29 }
  0xd8   :  { %361 = vmatprep.mubr.bf16.mxu0 %v4722_v3 }
  0xda   :  { %v3619_v30 = vpop.trf.xlu0 }
  0xdb   :  { %4762 = vst [vmem:[#allocation24_spill] sm:$0xff] %v3619_v30 }
  0xde   :  { %v3624_v31 = vpop.trf.xlu0 }
  0xdf   :  { %2791 = vmatmul.mubr.msk.bf16.gmra.mrb[28].mxu0 %vm179_vm1, %v3589_v24  ;;  %4763 = vst [vmem:[#allocation25_spill] sm:$0xff] %v3624_v31 }
  0xe0   :  { %371 = vmatprep.mubr.bf16.mxu0 %v4722_v3 }
  0xe2   :  { %v3629_v32 = vpop.trf.xlu0 }
  0xe3   :  { %4764 = vst [vmem:[#allocation26_spill] sm:$0xff] %v3629_v32 }
  0xe7   :  { %2792 = vmatmul.mubr.msk.bf16.gmra.mrb[32].mxu0 %vm179_vm1, %v3594_v25 }
  0xe8   :  { %381 = vmatprep.mubr.bf16.mxu0 %v4722_v3 }
  0xef   :  { %2793 = vmatmul.mubr.msk.bf16.gmra.mrb[36].mxu0 %vm179_vm1, %v3599_v26 }
  0xf0   :  { %391 = vmatprep.mubr.bf16.mxu0 %v4722_v3 }
  0xf7   :  { %2794 = vmatmul.mubr.msk.bf16.gmra.mrb[40].mxu0 %vm179_vm1, %v3604_v27 }
  0xf8   :  { %401 = vmatprep.mubr.bf16.mxu0 %v4722_v3 }
  0xff   :  { %2795 = vmatmul.mubr.msk.bf16.gmra.mrb[44].mxu0 %vm179_vm1, %v3609_v28 }
 0x100   :  { %411 = vmatprep.mubr.bf16.mxu0 %v4722_v3 }
 0x107   :  { %2796 = vmatmul.mubr.msk.bf16.gmra.mrb[48].mxu0 %vm179_vm1, %v3614_v29 }
 0x108   :  { %421 = vmatprep.mubr.bf16.mxu0 %v4722_v3 }
 0x10f   :  { %2797 = vmatmul.mubr.msk.bf16.gmra.mrb[52].mxu0 %vm179_vm1, %v3619_v30 }
 0x110   :  { %431 = vmatprep.mubr.bf16.mxu0 %v4722_v3 }
 0x117   :  { %2798 = vmatmul.mubr.msk.bf16.gmra.mrb[56].mxu0 %vm179_vm1, %v3624_v31 }
 0x118   :  { %441 = vmatprep.mubr.bf16.mxu0 %v4722_v3 }
 0x11f   :  { %2799 = vmatmul.mubr.msk.bf16.gmra.mrb[60].mxu0 %vm179_vm1, %v3629_v32 }
 0x120   :  { %451 = vmatprep.mubr.bf16.mxu0 %v4722_v3 }
 0x127   :  { %2800 = vmatmul.mubr.msk.bf16.gmra.mrb[64].mxu0 %vm179_vm1, %v3634_v33 }
 0x128   :  { %461 = vmatprep.mubr.bf16.mxu0 %v4722_v3 }
 0x12f   :  { %2801 = vmatmul.mubr.msk.bf16.gmra.mrb[68].mxu0 %vm179_vm1, %v3639_v34 }
 0x130   :  { %471 = vmatprep.mubr.bf16.mxu0 %v4722_v3 }
 0x137   :  { %2802 = vmatmul.mubr.msk.bf16.gmra.mrb[72].mxu0 %vm179_vm1, %v3644_v35 }
 0x138   :  { %481 = vmatprep.mubr.bf16.mxu0 %v4722_v3 }
 0x13f   :  { %2803 = vmatmul.mubr.msk.bf16.gmra.mrb[76].mxu0 %vm179_vm1, %v3649_v36 }
 0x140   :  { %491 = vmatprep.mubr.bf16.mxu0 %v4722_v3 }
 0x147   :  { %2804 = vmatmul.mubr.msk.bf16.gmra.mrb[80].mxu0 %vm179_vm1, %v3654_v37 }
 0x148   :  { %501 = vmatprep.mubr.bf16.mxu0 %v4722_v3 }
 0x14f   :  { %2805 = vmatmul.mubr.msk.bf16.gmra.mrb[84].mxu0 %vm179_vm1, %v3659_v38 }
 0x150   :  { %511 = vmatprep.mubr.bf16.mxu0 %v4722_v3 }
 0x157   :  { %2806 = vmatmul.mubr.msk.bf16.gmra.mrb[88].mxu0 %vm179_vm1, %v3664_v39 }
 0x158   :  { %521 = vmatprep.mubr.bf16.mxu0 %v4722_v3 }
 0x15f   :  { %2807 = vmatmul.mubr.msk.bf16.gmra.mrb[92].mxu0 %vm179_vm1, %v3669_v40 }
 0x17a   :  { %v3673_v41 = vpop.f32.mrb[0].mxu0 }
 0x17b   :  { %v3675_v42 = vpop.f32.mrb[1].mxu0 }
 0x17c   :  { %v3677_v43 = vpop.f32.mrb[2].mxu0 }
 0x17d   :  { %v3679_v44 = vpop.f32.mrb[3].mxu0 }
 0x182   :  { %v3681_v45 = vpop.f32.mrb[4].mxu0 }
 0x183   :  { %v909_v46 = vmax.f32 %v3673_v41, %v3681_v45  ;;  %v3685_v47 = vpop.f32.mrb[5].mxu0 }
 0x184   :  { %v930_v48 = vmax.f32 %v3675_v42, %v3685_v47  ;;  %v3689_v49 = vpop.f32.mrb[6].mxu0 }
 0x185   :  { %v910_v50 = vmax.f32 %v3677_v43, %v3689_v49  ;;  %v3693_v51 = vpop.f32.mrb[7].mxu0 }
 0x186   :  { %v931_v52 = vmax.f32 %v3679_v44, %v3693_v51 }
 0x18a   :  { %v3697_v53 = vpop.f32.mrb[8].mxu0 }
 0x18b   :  { %v911_v54 = vmax.f32 %v909_v46, %v3697_v53  ;;  %v3700_v55 = vpop.f32.mrb[9].mxu0 }
 0x18c   :  { %v932_v56 = vmax.f32 %v930_v48, %v3700_v55  ;;  %v3703_v57 = vpop.f32.mrb[10].mxu0 }
 0x18d   :  { %v912_v58 = vmax.f32 %v910_v50, %v3703_v57  ;;  %v3706_v59 = vpop.f32.mrb[11].mxu0 }
 0x18e   :  { %v933_v60 = vmax.f32 %v931_v52, %v3706_v59 }
 0x192   :  { %v3709_v61 = vpop.f32.mrb[12].mxu0 }
 0x193   :  { %v913_v62 = vmax.f32 %v911_v54, %v3709_v61  ;;  %v3712_v63 = vpop.f32.mrb[13].mxu0 }
 0x194   :  { %v934_v0 = vmax.f32 %v932_v56, %v3712_v63  ;;  %v3715_v1 = vpop.f32.mrb[14].mxu0 }
 0x195   :  { %v914_v2 = vmax.f32 %v912_v58, %v3715_v1  ;;  %v3718_v4 = vpop.f32.mrb[15].mxu0 }
 0x196   :  { %v935_v5 = vmax.f32 %v933_v60, %v3718_v4 }
 0x19a   :  { %v3721_v6 = vpop.f32.mrb[16].mxu0 }
 0x19b   :  { %v915_v7 = vmax.f32 %v913_v62, %v3721_v6  ;;  %v3724_v8 = vpop.f32.mrb[17].mxu0 }
 0x19c   :  { %v936_v9 = vmax.f32 %v934_v0, %v3724_v8  ;;  %v3727_v10 = vpop.f32.mrb[18].mxu0 }
 0x19d   :  { %v916_v11 = vmax.f32 %v914_v2, %v3727_v10  ;;  %v3730_v12 = vpop.f32.mrb[19].mxu0 }
 0x19e   :  { %v937_v13 = vmax.f32 %v935_v5, %v3730_v12 }
 0x1a2   :  { %v3733_v14 = vpop.f32.mrb[20].mxu0 }
 0x1a3   :  { %v917_v15 = vmax.f32 %v915_v7, %v3733_v14  ;;  %v3736_v16 = vpop.f32.mrb[21].mxu0 }
 0x1a4   :  { %v938_v46 = vmax.f32 %v936_v9, %v3736_v16  ;;  %v3739_v48 = vpop.f32.mrb[22].mxu0 }
 0x1a5   :  { %v918_v50 = vmax.f32 %v916_v11, %v3739_v48  ;;  %v3742_v52 = vpop.f32.mrb[23].mxu0 }
 0x1a6   :  { %v939_v54 = vmax.f32 %v937_v13, %v3742_v52 }
 0x1aa   :  { %v3745_v56 = vpop.f32.mrb[24].mxu0 }
 0x1ab   :  { %v919_v58 = vmax.f32 %v917_v15, %v3745_v56  ;;  %v3748_v60 = vpop.f32.mrb[25].mxu0 }
 0x1ac   :  { %v940_v62 = vmax.f32 %v938_v46, %v3748_v60  ;;  %v3751_v0 = vpop.f32.mrb[26].mxu0 }
 0x1ad   :  { %v920_v2 = vmax.f32 %v918_v50, %v3751_v0  ;;  %v3754_v5 = vpop.f32.mrb[27].mxu0 }
 0x1ae   :  { %v941_v7 = vmax.f32 %v939_v54, %v3754_v5 }
 0x1b2   :  { %v3757_v9 = vpop.f32.mrb[28].mxu0 }
 0x1b3   :  { %v921_v11 = vmax.f32 %v919_v58, %v3757_v9  ;;  %v3760_v13 = vpop.f32.mrb[29].mxu0 }
 0x1b4   :  { %v942_v15 = vmax.f32 %v940_v62, %v3760_v13  ;;  %v367_v3 = vpop.f32.mrb[30].mxu0 }
 0x1b5   :  { %v922_v40 = vmax.f32 %v920_v2, %v367_v3  ;;  %v369_v39 = vpop.f32.mrb[31].mxu0 }
 0x1b6   :  { %v943_v46 = vmax.f32 %v941_v7, %v369_v39 }
 0x1b7   :  { %v923_v38 = vmax.f32 %v921_v11, %v922_v40 }
 0x1b8   :  { %v944_v37 = vmax.f32 %v942_v15, %v943_v46 }
 0x1b9   :  { %v924_v36 = vrot.slane %v923_v38, 4 }
 0x1ba   :  { %v945_v50 = vrot.slane %v944_v37, 4  ;;  %v3763_v35 = vpop.f32.mrb[32].mxu0 }
 0x1bb   :  { %v925_v34 = vmax.f32 %v923_v38, %v924_v36  ;;  %v3765_v54 = vpop.f32.mrb[33].mxu0 }
 0x1bc   :  { %v946_v33 = vmax.f32 %v944_v37, %v945_v50  ;;  %v3767_v32 = vpop.f32.mrb[34].mxu0  ;;  %v548_v58 = vmax.f32 %v3763_v35, %v3765_v54 }
 0x1bd   :  { %v926_v62 = vrot.slane %v925_v34, 2  ;;  %v3771_v31 = vpop.f32.mrb[35].mxu0 }
 0x1be   :  { %v947_v2 = vrot.slane %v946_v33, 2  ;;  %549 = vmax.xlane.f32.xlu1 %v548_v58  ;;  %v551_v40 = vmax.f32 %v3767_v32, %v3771_v31 }
 0x1bf   :  { %v927_v7 = vmax.f32 %v925_v34, %v926_v62 }
 0x1c0   :  { %v948_v11 = vmax.f32 %v946_v33, %v947_v2  ;;  %552 = vmax.xlane.f32.xlu0 %v551_v40 }
 0x1c1   :  { %v928_v36 = vrot.slane %v927_v7, 1 }
 0x1c2   :  { %v949_v38 = vrot.slane %v948_v11, 1  ;;  %v3775_v15 = vpop.f32.mrb[36].mxu0 }
 0x1c3   :  { %v3777_v37 = vmax.f32 %v927_v7, %v928_v36  ;;  %v3779_v46 = vpop.f32.mrb[37].mxu0 }
 0x1c4   :  { %v3781_v50 = vmax.f32 %v948_v11, %v949_v38  ;;  %v3783_v30 = vpop.f32.mrb[38].mxu0  ;;  %v554_v58 = vmax.f32 %v3775_v15, %v3779_v46 }
 0x1c5   :  { %v981_v29 = vsub.f32 %v367_v3, %v3777_v37  ;;  %v3788_v34 = vpop.f32.mrb[39].mxu0  ;;  %v951_v33 = vsub.f32 %v3673_v41, %v3777_v37  ;;  %v953_v62 = vsub.f32 %v3677_v43, %v3777_v37  ;;  %v955_v2 = vsub.f32 %v3681_v45, %v3777_v37 }
 0x1c6   :  { %v982_v40 = vsub.f32 %v369_v39, %v3781_v50  ;;  %555 = vmax.xlane.f32.xlu1 %v554_v58  ;;  %v557_v7 = vmax.f32 %v3783_v30, %v3788_v34  ;;  %v952_v3 = vsub.f32 %v3675_v42, %v3781_v50  ;;  %v954_v11 = vsub.f32 %v3679_v44, %v3781_v50 }
 0x1c7   :  { %v1043_v36 = vmul.f32 1.442695, %v981_v29  ;;  %v956_v41 = vsub.f32 %v3685_v47, %v3781_v50  ;;  %v958_v39 = vsub.f32 %v3693_v51, %v3781_v50  ;;  %v983_v45 = vmul.f32 1.442695, %v951_v33 }
 0x1c8   :  { %v1045_v43 = vmul.f32 1.442695, %v982_v40  ;;  %v985_v38 = vmul.f32 1.442695, %v952_v3  ;;  %v989_v28 = vmul.f32 1.442695, %v954_v11  ;;  %v957_v58 = vsub.f32 %v3689_v49, %v3777_v37 }
 0x1c9   :  { %2880 = vpow2.f32 %v1043_v36  ;;  %v987_v44 = vmul.f32 1.442695, %v953_v62  ;;  %v960_v29 = vsub.f32 %v3700_v55, %v3781_v50  ;;  %v962_v47 = vsub.f32 %v3706_v59, %v3781_v50 }
 0x1ca   :  { %2882 = vpow2.f32 %v1045_v43  ;;  %v3809_v42 = vpop.f32.mrb[40].mxu0  ;;  %558 = vmax.xlane.f32.xlu1 %v557_v7  ;;  %v993_v51 = vmul.f32 1.442695, %v956_v41  ;;  %v959_v33 = vsub.f32 %v3697_v53, %v3777_v37  ;;  %v961_v49 = vsub.f32 %v3703_v57, %v3777_v37 }
 0x1cb   :  { %v3815_v40 = vpop.f32.mrb[41].mxu0  ;;  %2884 = vpow2.f32 %v985_v38  ;;  %v997_v55 = vmul.f32 1.442695, %v958_v39  ;;  %v991_v59 = vmul.f32 1.442695, %v955_v2  ;;  %v964_v36 = vsub.f32 %v3712_v63, %v3781_v50 }
 0x1cc   :  { %v3821_v3 = vpop.f32.mrb[42].mxu0  ;;  %v560_v62 = vmax.f32 %v3809_v42, %v3815_v40  ;;  %2886 = vpow2.f32 %v989_v28  ;;  %v995_v11 = vmul.f32 1.442695, %v957_v58  ;;  %v966_v57 = vsub.f32 %v3718_v4, %v3781_v50 }
 0x1cd   :  { %v3825_v7 = vpop.f32.mrb[43].mxu0  ;;  %2888 = vpow2.f32 %v983_v45  ;;  %v963_v28 = vsub.f32 %v3709_v61, %v3777_v37  ;;  %v1001_v41 = vmul.f32 1.442695, %v960_v29  ;;  %v965_v2 = vsub.f32 %v3715_v1, %v3777_v37 }
 0x1ce   :  { %561 = vmax.xlane.f32.xlu1 %v560_v62  ;;  %v563_v53 = vmax.f32 %v3821_v3, %v3825_v7  ;;  %2890 = vpow2.f32 %v987_v44  ;;  %v968_v43 = vsub.f32 %v3724_v8, %v3781_v50  ;;  %v1005_v63 = vmul.f32 1.442695, %v962_v47 }
 0x1cf   :  { %2892 = vpow2.f32 %v993_v51  ;;  %v970_v38 = vsub.f32 %v3730_v12, %v3781_v50  ;;  %v999_v39 = vmul.f32 1.442695, %v959_v33  ;;  %v967_v4 = vsub.f32 %v3721_v6, %v3777_v37 }
 0x1d0   :  { %2894 = vpow2.f32 %v997_v55  ;;  %v1003_v61 = vmul.f32 1.442695, %v961_v49  ;;  %v969_v1 = vsub.f32 %v3727_v10, %v3777_v37  ;;  %v972_v8 = vsub.f32 %v3736_v16, %v3781_v50 }
 0x1d1   :  { %2896 = vpow2.f32 %v991_v59  ;;  %v1009_v12 = vmul.f32 1.442695, %v964_v36  ;;  %v974_v6 = vsub.f32 %v3742_v52, %v3781_v50  ;;  %v971_v29 = vsub.f32 %v3733_v14, %v3777_v37 }
 0x1d2   :  { %v3843_v45 = vpop.f32.mrb[44].mxu0  ;;  %564 = vmax.xlane.f32.xlu1 %v563_v53  ;;  %2898 = vpow2.f32 %v995_v11  ;;  %v1013_v16 = vmul.f32 1.442695, %v966_v57  ;;  %v1007_v62 = vmul.f32 1.442695, %v963_v28  ;;  %v973_v52 = vsub.f32 %v3739_v48, %v3777_v37 }
 0x1d3   :  { %v3849_v58 = vpop.eup %2880  ;;  %v3851_v44 = vpop.f32.mrb[45].mxu0  ;;  %2900 = vpow2.f32 %v1001_v41  ;;  %v1011_v55 = vmul.f32 1.442695, %v965_v2  ;;  %v976_v11 = vsub.f32 %v3748_v60, %v3781_v50  ;;  %v978_v36 = vsub.f32 %v3754_v5, %v3781_v50 }
 0x1d4   :  { %v3857_v47 = vpop.eup %2882  ;;  %v3859_v51 = vpop.f32.mrb[46].mxu0  ;;  %v566_v10 = vmax.f32 %v3843_v45, %v3851_v44  ;;  %2902 = vpow2.f32 %v1005_v63  ;;  %v1017_v28 = vmul.f32 1.442695, %v968_v43  ;;  %v975_v48 = vsub.f32 %v3745_v56, %v3777_v37 }
 0x1d5   :  { %v2885_v33 = vpop.eup %2884  ;;  %v3863_v49 = vpop.f32.mrb[47].mxu0  ;;  %2904 = vpow2.f32 %v999_v39  ;;  %v1021_v2 = vmul.f32 1.442695, %v970_v38  ;;  %v977_v63 = vsub.f32 %v3751_v0, %v3777_v37  ;;  %v1015_v60 = vmul.f32 1.442695, %v967_v4 }
 0x1d6   :  { %v2887_v59 = vpop.eup %2886  ;;  %567 = vmax.xlane.f32.xlu0 %v566_v10  ;;  %v569_v14 = vmax.f32 %v3859_v51, %v3863_v49  ;;  %2906 = vpow2.f32 %v1003_v61  ;;  %v980_v5 = vsub.f32 %v3760_v13, %v3781_v50  ;;  %v1019_v43 = vmul.f32 1.442695, %v969_v1 }
 0x1d7   :  { %v2889_v53 = vpop.eup %2888  ;;  %v3873_v57 = vpack.c.bf16 %v2887_v59, %v2885_v33  ;;  %2908 = vpow2.f32 %v1009_v12  ;;  %v979_v56 = vsub.f32 %v3757_v9, %v3777_v37  ;;  %v1025_v33 = vmul.f32 1.442695, %v972_v8 }
 0x1d8   :  { %v2891_v41 = vpop.eup %2890  ;;  %2910 = vpow2.f32 %v1013_v16  ;;  %v1029_v50 = vmul.f32 1.442695, %v974_v6  ;;  %v1023_v9 = vmul.f32 1.442695, %v971_v29  ;;  %v1031_v29 = vmul.f32 1.442695, %v975_v48 }
 0x1d9   :  { %v2893_v39 = vpop.eup %2892  ;;  %v3879_v61 = vpack.c.bf16 %v2891_v41, %v2889_v53  ;;  %2912 = vpow2.f32 %v1007_v62  ;;  %v1027_v53 = vmul.f32 1.442695, %v973_v52  ;;  %v1039_v48 = vmul.f32 1.442695, %v979_v56 }
 0x1da   :  { %v2895_v10 = vpop.eup %2894  ;;  %v3883_v12 = vpop.f32.mrb[48].mxu0  ;;  %2914 = vpow2.f32 %v1011_v55 }
 0x1db   :  { %v2897_v38 = vpop.eup %2896  ;;  %v3887_v16 = vpop.f32.mrb[49].mxu0  ;;  %v3889_v0 = vpack.c.bf16 %v2895_v10, %v2893_v39  ;;  %2916 = vpow2.f32 %v1017_v28  ;;  %v1037_v39 = vmul.f32 1.442695, %v978_v36 }
 0x1dc   :  { %v2899_v62 = vpop.eup %2898  ;;  %v3891_v4 = vpop.f32.mrb[50].mxu0  ;;  %v572_v13 = vmax.f32 %v3883_v12, %v3887_v16  ;;  %2918 = vpow2.f32 %v1021_v2  ;;  %v1033_v2 = vmul.f32 1.442695, %v976_v11  ;;  %v1041_v11 = vmul.f32 1.442695, %v980_v5 }
 0x1dd   :  { %v2901_v55 = vpop.eup %2900  ;;  %v3895_v1 = vpop.f32.mrb[51].mxu0  ;;  %v3897_v59 = vpack.c.bf16 %v2899_v62, %v2897_v38  ;;  %2920 = vpow2.f32 %v1015_v60 }
 0x1de   :  { %v2903_v37 = vpop.eup %2902  ;;  %573 = vmax.xlane.f32.xlu1 %v572_v13  ;;  %v575_v8 = vmax.f32 %v3891_v4, %v3895_v1  ;;  %2922 = vpow2.f32 %v1019_v43  ;;  %v1035_v43 = vmul.f32 1.442695, %v977_v63 }
 0x1df   :  { %v2905_v28 = vpop.eup %2904  ;;  %v3901_v41 = vpack.c.bf16 %v2903_v37, %v2901_v55  ;;  %2924 = vpow2.f32 %v1025_v33 }
 0x1e0   :  { %v2907_v6 = vpop.eup %2906  ;;  %2926 = vpow2.f32 %v1029_v50 }
 0x1e1   :  { %v2909_v10 = vpop.eup %2908  ;;  %v3903_v38 = vpack.c.bf16 %v2907_v6, %v2905_v28  ;;  %2928 = vpow2.f32 %v1023_v9 }
 0x1e2   :  { %v2911_v60 = vpop.eup %2910  ;;  %v3905_v62 = vpop.f32.mrb[52].mxu0  ;;  %576 = vmax.xlane.f32.xlu1 %v575_v8  ;;  %2930 = vpow2.f32 %v1027_v53 }
 0x1e3   :  { %v2913_v52 = vpop.eup %2912  ;;  %v3907_v13 = vpop.f32.mrb[53].mxu0  ;;  %v3909_v55 = vpack.c.bf16 %v2911_v60, %v2909_v10  ;;  %2932 = vpow2.f32 %v1033_v2 }
 0x1e4   :  { %v2915_v33 = vpop.eup %2914  ;;  %v3911_v36 = vpop.f32.mrb[54].mxu0  ;;  %v578_v50 = vmax.f32 %v3905_v62, %v3907_v13  ;;  %2934 = vpow2.f32 %v1037_v39 }
 0x1e5   :  { %v2917_v9 = vpop.eup %2916  ;;  %v3915_v37 = vpop.f32.mrb[55].mxu0  ;;  %v3917_v8 = vpack.c.bf16 %v2915_v33, %v2913_v52  ;;  %2936 = vpow2.f32 %v1031_v29 }
 0x1e6   :  { %v2919_v63 = vpop.eup %2918  ;;  %579 = vmax.xlane.f32.xlu1 %v578_v50  ;;  %v581_v53 = vmax.f32 %v3911_v36, %v3915_v37  ;;  %2938 = vpow2.f32 %v1035_v43 }
 0x1e7   :  { %v2921_v5 = vpop.eup %2920  ;;  %v3921_v28 = vpack.c.bf16 %v2919_v63, %v2917_v9  ;;  %2940 = vpow2.f32 %v1041_v11 }
 0x1e8   :  { %v2923_v2 = vpop.eup %2922  ;;  %2942 = vpow2.f32 %v1039_v48 }
 0x1e9   :  { %v2925_v6 = vpop.eup %2924  ;;  %v3923_v56 = vpack.c.bf16 %v2923_v2, %v2921_v5 }
 0x1ea   :  { %v2927_v39 = vpop.eup %2926  ;;  %v3925_v10 = vpop.f32.mrb[56].mxu0  ;;  %582 = vmax.xlane.f32.xlu1 %v581_v53 }
 0x1eb   :  { %v2929_v29 = vpop.eup %2928  ;;  %v3927_v60 = vpop.f32.mrb[57].mxu0  ;;  %v3929_v52 = vpack.c.bf16 %v2927_v39, %v2925_v6 }
 0x1ec   :  { %v2931_v33 = vpop.eup %2930  ;;  %v3931_v43 = vpop.f32.mrb[58].mxu0  ;;  %v584_v11 = vmax.f32 %v3925_v10, %v3927_v60 }
 0x1ed   :  { %v2933_v50 = vpop.eup %2932  ;;  %v3935_v48 = vpop.f32.mrb[59].mxu0  ;;  %v3937_v9 = vpack.c.bf16 %v2931_v33, %v2929_v29 }
 0x1ee   :  { %v2935_v63 = vpop.eup %2934  ;;  %585 = vmax.xlane.f32.xlu0 %v584_v11  ;;  %570 = vmax.xlane.f32.xlu1 %v569_v14  ;;  %v587_v53 = vmax.f32 %v3931_v43, %v3935_v48 }
 0x1ef   :  { %v2937_v5 = vpop.eup %2936  ;;  %v3944_v2 = vpack.c.bf16 %v2935_v63, %v2933_v50 }
 0x1f0   :  { %v2939_v6 = vpop.eup %2938 }
 0x1f1   :  { %v2941_v39 = vpop.eup %2940  ;;  %v3946_v27 = vpack.c.bf16 %v2939_v6, %v2937_v5 }
 0x1f2   :  { %v2943_v26 = vpop.eup %2942  ;;  %v3948_v25 = vpop.f32.mrb[60].mxu0  ;;  %588 = vmax.xlane.f32.xlu1 %v587_v53  ;;  %v3951_v29 = vpack.c.bf16 %v3857_v47, %v2941_v39 }
 0x1f3   :  { %v3953_v33 = vpop.f32.mrb[61].mxu0  ;;  %v3956_v14 = vpack.c.bf16 %v3849_v58, %v2943_v26 }
 0x1f4   :  { %v3958_v11 = vpop.f32.mrb[62].mxu0  ;;  %v590_v50 = vmax.f32 %v3948_v25, %v3953_v33 }
 0x1f5   :  { %v3962_v63 = vpop.f32.mrb[63].mxu0 }
 0x1f6   :  { %591 = vmax.xlane.f32.xlu0 %v590_v50  ;;  %v593_v5 = vmax.f32 %v3958_v11, %v3962_v63 }
 0x1f8   :  { %594 = vmax.xlane.f32.xlu1 %v593_v5 }
 0x1fa   :  { %v453_v53 = vpop.f32.mrb[64].mxu0 }
 0x1fb   :  { %v455_v47 = vpop.f32.mrb[65].mxu0 }
 0x1fc   :  { %v457_v6 = vpop.f32.mrb[66].mxu0 }
 0x1fd   :  { %v532_v39 = vpack.c.bf16 %v457_v6, %v453_v53  ;;  %v459_v24 = vpop.f32.mrb[67].mxu0 }
 0x1fe   :  { %v533_v23 = vpack.c.bf16 %v459_v24, %v455_v47 }
 0x200   :  { %772 = vmatprep.subr.bf16.mxu0 %v533_v23  ;;  %2841 = vmatprep.subr.bf16.mxu1 %v533_v23 }
 0x201   :  { %773 = vmatpush1.bf16.xpose.msra.mxu0 %v532_v39  ;;  %2849 = vmatpush1.bf16.xpose.msra.mxu1 %v532_v39 }
 0x202   :  { %v463_v26 = vpop.f32.mrb[68].mxu0 }
 0x203   :  { %v465_v58 = vpop.f32.mrb[69].mxu0 }
 0x204   :  { %v467_v22 = vpop.f32.mrb[70].mxu0 }
 0x205   :  { %v534_v21 = vpack.c.bf16 %v467_v22, %v463_v26  ;;  %v469_v20 = vpop.f32.mrb[71].mxu0 }
 0x206   :  { %v535_v50 = vpack.c.bf16 %v469_v20, %v465_v58 }
 0x208   :  { %2842 = vmatprep.subr.bf16.mxu1 %v535_v50  ;;  %774 = vmatprep.subr.bf16.mxu0 %v535_v50 }
 0x209   :  { %2850 = vmatpush1.bf16.xpose.msra.mxu1 %v534_v21  ;;  %775 = vmatpush1.bf16.xpose.msra.mxu0 %v534_v21 }
 0x20a   :  { %v473_v5 = vpop.f32.mrb[72].mxu0 }
 0x20b   :  { %v475_v19 = vpop.f32.mrb[73].mxu0 }
 0x20c   :  { %v477_v18 = vpop.f32.mrb[74].mxu0 }
 0x20d   :  { %v536_v53 = vpack.c.bf16 %v477_v18, %v473_v5  ;;  %v479_v6 = vpop.f32.mrb[75].mxu0 }
 0x20e   :  { %v537_v24 = vpack.c.bf16 %v479_v6, %v475_v19 }
 0x210   :  { %2843 = vmatprep.subr.bf16.mxu1 %v537_v24  ;;  %776 = vmatprep.subr.bf16.mxu0 %v537_v24 }
 0x211   :  { %2851 = vmatpush1.bf16.xpose.msra.mxu1 %v536_v53  ;;  %777 = vmatpush1.bf16.xpose.msra.mxu0 %v536_v53 }
 0x212   :  { %v483_v23 = vpop.f32.mrb[76].mxu0 }
 0x213   :  { %v485_v47 = vpop.f32.mrb[77].mxu0 }
 0x214   :  { %v487_v39 = vpop.f32.mrb[78].mxu0 }
 0x215   :  { %v538_v22 = vpack.c.bf16 %v487_v39, %v483_v23  ;;  %v489_v26 = vpop.f32.mrb[79].mxu0 }
 0x216   :  { %v539_v20 = vpack.c.bf16 %v489_v26, %v485_v47 }
 0x218   :  { %2844 = vmatprep.subr.bf16.mxu1 %v539_v20  ;;  %778 = vmatprep.subr.bf16.mxu0 %v539_v20 }
 0x219   :  { %2852 = vmatpush1.bf16.xpose.msra.mxu1 %v538_v22  ;;  %779 = vmatpush1.bf16.xpose.msra.mxu0 %v538_v22 }
 0x21a   :  { %v493_v21 = vpop.f32.mrb[80].mxu0 }
 0x21b   :  { %v495_v58 = vpop.f32.mrb[81].mxu0 }
 0x21c   :  { %v497_v50 = vpop.f32.mrb[82].mxu0 }
 0x21d   :  { %v540_v18 = vpack.c.bf16 %v497_v50, %v493_v21  ;;  %v499_v5 = vpop.f32.mrb[83].mxu0 }
 0x21e   :  { %v541_v19 = vpack.c.bf16 %v499_v5, %v495_v58 }
 0x220   :  { %2845 = vmatprep.subr.bf16.mxu1 %v541_v19  ;;  %780 = vmatprep.subr.bf16.mxu0 %v541_v19 }
 0x221   :  { %2853 = vmatpush1.bf16.xpose.msra.mxu1 %v540_v18  ;;  %781 = vmatpush1.bf16.xpose.msra.mxu0 %v540_v18 }
 0x222   :  { %v503_v53 = vpop.f32.mrb[84].mxu0 }
 0x223   :  { %v505_v6 = vpop.f32.mrb[85].mxu0 }
 0x224   :  { %v507_v24 = vpop.f32.mrb[86].mxu0 }
 0x225   :  { %v542_v23 = vpack.c.bf16 %v507_v24, %v503_v53  ;;  %v509_v39 = vpop.f32.mrb[87].mxu0 }
 0x226   :  { %v543_v47 = vpack.c.bf16 %v509_v39, %v505_v6 }
 0x228   :  { %2846 = vmatprep.subr.bf16.mxu1 %v543_v47  ;;  %782 = vmatprep.subr.bf16.mxu0 %v543_v47 }
 0x229   :  { %2854 = vmatpush1.bf16.xpose.msra.mxu1 %v542_v23  ;;  %783 = vmatpush1.bf16.xpose.msra.mxu0 %v542_v23 }
 0x22a   :  { %v513_v22 = vpop.f32.mrb[88].mxu0 }
 0x22b   :  { %v515_v26 = vpop.f32.mrb[89].mxu0 }
 0x22c   :  { %v517_v20 = vpop.f32.mrb[90].mxu0 }
 0x22d   :  { %v544_v21 = vpack.c.bf16 %v517_v20, %v513_v22  ;;  %v519_v50 = vpop.f32.mrb[91].mxu0 }
 0x22e   :  { %v545_v58 = vpack.c.bf16 %v519_v50, %v515_v26 }
 0x230   :  { %2847 = vmatprep.subr.bf16.mxu1 %v545_v58  ;;  %784 = vmatprep.subr.bf16.mxu0 %v545_v58 }
 0x231   :  { %2855 = vmatpush1.bf16.xpose.msra.mxu1 %v544_v21  ;;  %785 = vmatpush1.bf16.xpose.msra.mxu0 %v544_v21 }
 0x232   :  { %v523_v18 = vpop.f32.mrb[92].mxu0 }
 0x233   :  { %v525_v5 = vpop.f32.mrb[93].mxu0 }
 0x234   :  { %v527_v19 = vpop.f32.mrb[94].mxu0 }
 0x235   :  { %v546_v53 = vpack.c.bf16 %v527_v19, %v523_v18  ;;  %v529_v24 = vpop.f32.mrb[95].mxu0 }
 0x236   :  { %v547_v6 = vpack.c.bf16 %v529_v24, %v525_v5 }
 0x238   :  { %2848 = vmatprep.subr.bf16.mxu1 %v547_v6  ;;  %786 = vmatprep.subr.bf16.mxu0 %v547_v6 }
 0x239   :  { %2856 = vmatpush1.bf16.xpose.msra.mxu1 %v546_v53  ;;  %787 = vmatpush1.bf16.xpose.msra.mxu0 %v546_v53 }
 0x23a   :  { %1111 = vmatprep.subr.bf16.mxu1 %v3873_v57 }
 0x24b   :  { %v550_v23 = vpop.xlane.xlu1 %549 }
 0x24c   :  { %v596_v39 = vsub.f32 %v3763_v35, %v550_v23  ;;  %v597_v47 = vsub.f32 %v3765_v54, %v550_v23 }
 0x24d   :  { %v553_v22 = vpop.xlane.xlu0 %552 }
 0x24e   :  { %v628_v26 = vmul.f32 1.442695, %v596_v39  ;;  %v630_v20 = vmul.f32 1.442695, %v597_v47  ;;  %v598_v21 = vsub.f32 %v3767_v32, %v553_v22  ;;  %v599_v50 = vsub.f32 %v3771_v31, %v553_v22 }
 0x250   :  { %2944 = vpow2.f32 %v628_v26  ;;  %v632_v58 = vmul.f32 1.442695, %v598_v21  ;;  %v634_v18 = vmul.f32 1.442695, %v599_v50 }
 0x251   :  { %2946 = vpow2.f32 %v630_v20 }
 0x252   :  { %2948 = vpow2.f32 %v632_v58 }
 0x253   :  { %2950 = vpow2.f32 %v634_v18  ;;  %v556_v5 = vpop.xlane.xlu1 %555 }
 0x254   :  { %v600_v19 = vsub.f32 %v3775_v15, %v556_v5  ;;  %v601_v35 = vsub.f32 %v3779_v46, %v556_v5 }
 0x256   :  { %v636_v53 = vmul.f32 1.442695, %v600_v19  ;;  %v638_v54 = vmul.f32 1.442695, %v601_v35 }
 0x257   :  { %v559_v24 = vpop.xlane.xlu1 %558 }
 0x258   :  { %2952 = vpow2.f32 %v636_v53  ;;  %v602_v6 = vsub.f32 %v3783_v30, %v559_v24  ;;  %v603_v32 = vsub.f32 %v3788_v34, %v559_v24 }
 0x259   :  { %2954 = vpow2.f32 %v638_v54 }
 0x25a   :  { %v2945_v31 = vpop.eup %2944  ;;  %v640_v23 = vmul.f32 1.442695, %v602_v6  ;;  %v642_v39 = vmul.f32 1.442695, %v603_v32 }
 0x25b   :  { %v2947_v47 = vpop.eup %2946  ;;  %v562_v22 = vpop.xlane.xlu1 %561 }
 0x25c   :  { %v2949_v26 = vpop.eup %2948  ;;  %2956 = vpow2.f32 %v640_v23  ;;  %v604_v15 = vsub.f32 %v3809_v42, %v562_v22  ;;  %v605_v46 = vsub.f32 %v3815_v40, %v562_v22  ;;  %v708_v20 = vadd.f32 %v2947_v47, %v2945_v31 }
 0x25d   :  { %v2951_v21 = vpop.eup %2950  ;;  %2958 = vpow2.f32 %v642_v39  ;;  %v692_v50 = vpack.c.bf16 %v2949_v26, %v2945_v31 }
 0x25e   :  { %v644_v58 = vmul.f32 1.442695, %v604_v15  ;;  %v646_v30 = vmul.f32 1.442695, %v605_v46  ;;  %709 = vadd.xlane.f32.xlu0 %v708_v20  ;;  %v711_v34 = vadd.f32 %v2951_v21, %v2949_v26  ;;  %v693_v18 = vpack.c.bf16 %v2951_v21, %v2947_v47 }
 0x25f   :  { %v565_v5 = vpop.xlane.xlu1 %564 }
 0x260   :  { %2960 = vpow2.f32 %v644_v58  ;;  %712 = vadd.xlane.f32.xlu1 %v711_v34  ;;  %804 = vmatprep.mubr.bf16.mxu0 %v693_v18  ;;  %v606_v19 = vsub.f32 %v3821_v3, %v565_v5  ;;  %v607_v35 = vsub.f32 %v3825_v7, %v565_v5 }
 0x261   :  { %2962 = vpow2.f32 %v646_v30  ;;  %805 = vmatmul.mubr.bf16.vlgmr.msra.gmra.mrb[96].mxu0 %v692_v50 }
 0x262   :  { %v2953_v42 = vpop.eup %2952  ;;  %v648_v40 = vmul.f32 1.442695, %v606_v19  ;;  %v650_v53 = vmul.f32 1.442695, %v607_v35 }
 0x263   :  { %v2955_v54 = vpop.eup %2954  ;;  %v568_v24 = vpop.xlane.xlu0 %567 }
 0x264   :  { %2964 = vpow2.f32 %v648_v40  ;;  %v608_v6 = vsub.f32 %v3843_v45, %v568_v24  ;;  %v609_v32 = vsub.f32 %v3851_v44, %v568_v24  ;;  %v714_v31 = vadd.f32 %v2955_v54, %v2953_v42 }
 0x265   :  { %2966 = vpow2.f32 %v650_v53 }
 0x266   :  { %v2957_v23 = vpop.eup %2956  ;;  %v652_v39 = vmul.f32 1.442695, %v608_v6  ;;  %v654_v47 = vmul.f32 1.442695, %v609_v32  ;;  %715 = vadd.xlane.f32.xlu0 %v714_v31 }
 0x267   :  { %v2959_v3 = vpop.eup %2958  ;;  %v694_v7 = vpack.c.bf16 %v2957_v23, %v2953_v42 }
 0x268   :  { %2968 = vpow2.f32 %v652_v39  ;;  %v695_v22 = vpack.c.bf16 %v2959_v3, %v2955_v54  ;;  %v717_v26 = vadd.f32 %v2959_v3, %v2957_v23 }
 0x269   :  { %2970 = vpow2.f32 %v654_v47 }
 0x26a   :  { %v2961_v15 = vpop.eup %2960  ;;  %812 = vmatprep.mubr.bf16.mxu0 %v695_v22  ;;  %718 = vadd.xlane.f32.xlu1 %v717_v26 }
 0x26b   :  { %v2963_v46 = vpop.eup %2962  ;;  %813 = vmatmul.mubr.bf16.gmra.mrb[100].mxu0 %v694_v7  ;;  %v574_v45 = vpop.xlane.xlu1 %573 }
 0x26c   :  { %v612_v44 = vsub.f32 %v3883_v12, %v574_v45  ;;  %v613_v20 = vsub.f32 %v3887_v16, %v574_v45  ;;  %v720_v21 = vadd.f32 %v2963_v46, %v2961_v15 }
 0x26e   :  { %v2965_v50 = vpop.eup %2964  ;;  %v660_v58 = vmul.f32 1.442695, %v612_v44  ;;  %v662_v30 = vmul.f32 1.442695, %v613_v20  ;;  %721 = vadd.xlane.f32.xlu0 %v720_v21 }
 0x26f   :  { %v2967_v34 = vpop.eup %2966  ;;  %v577_v18 = vpop.xlane.xlu1 %576  ;;  %v696_v5 = vpack.c.bf16 %v2965_v50, %v2961_v15 }
 0x270   :  { %2972 = vpow2.f32 %v660_v58  ;;  %v614_v19 = vsub.f32 %v3891_v4, %v577_v18  ;;  %v615_v35 = vsub.f32 %v3895_v1, %v577_v18  ;;  %v697_v42 = vpack.c.bf16 %v2967_v34, %v2963_v46 }
 0x271   :  { %2974 = vpow2.f32 %v662_v30  ;;  %v723_v40 = vadd.f32 %v2967_v34, %v2965_v50 }
 0x272   :  { %v3985_v53 = vpop.eup %2968  ;;  %v664_v12 = vmul.f32 1.442695, %v614_v19  ;;  %v666_v16 = vmul.f32 1.442695, %v615_v35  ;;  %820 = vmatprep.mubr.bf16.mxu0 %v697_v42 }
 0x273   :  { %v3987_v54 = vpop.eup %2970  ;;  %724 = vadd.xlane.f32.xlu1 %v723_v40  ;;  %821 = vmatmul.mubr.bf16.gmra.mrb[104].mxu0 %v696_v5  ;;  %v580_v24 = vpop.xlane.xlu1 %579 }
 0x274   :  { %2976 = vpow2.f32 %v664_v12  ;;  %v616_v6 = vsub.f32 %v3905_v62, %v580_v24  ;;  %v617_v4 = vsub.f32 %v3907_v13, %v580_v24  ;;  %v726_v1 = vadd.f32 %v3987_v54, %v3985_v53 }
 0x275   :  { %2978 = vpow2.f32 %v666_v16 }
 0x276   :  { %v668_v32 = vmul.f32 1.442695, %v616_v6  ;;  %v670_v31 = vmul.f32 1.442695, %v617_v4  ;;  %727 = vadd.xlane.f32.xlu0 %v726_v1 }
 0x277   :  { %v583_v23 = vpop.xlane.xlu1 %582 }
 0x278   :  { %2980 = vpow2.f32 %v668_v32  ;;  %v618_v39 = vsub.f32 %v3911_v36, %v583_v23  ;;  %v619_v47 = vsub.f32 %v3915_v37, %v583_v23 }
 0x279   :  { %2982 = vpow2.f32 %v670_v31 }
 0x27a   :  { %v2973_v3 = vpop.eup %2972  ;;  %v672_v7 = vmul.f32 1.442695, %v618_v39  ;;  %v674_v22 = vmul.f32 1.442695, %v619_v47 }
 0x27b   :  { %v2975_v62 = vpop.eup %2974  ;;  %v586_v26 = vpop.xlane.xlu0 %585 }
 0x27c   :  { %v571_v13 = vpop.xlane.xlu1 %570  ;;  %2984 = vpow2.f32 %v672_v7  ;;  %v620_v15 = vsub.f32 %v3925_v10, %v586_v26  ;;  %v621_v46 = vsub.f32 %v3927_v60, %v586_v26  ;;  %v732_v36 = vadd.f32 %v2975_v62, %v2973_v3 }
 0x27d   :  { %v610_v45 = vsub.f32 %v3859_v51, %v571_v13  ;;  %2986 = vpow2.f32 %v674_v22  ;;  %v611_v44 = vsub.f32 %v3863_v49, %v571_v13 }
 0x27e   :  { %v2977_v20 = vpop.eup %2976  ;;  %v676_v37 = vmul.f32 1.442695, %v620_v15  ;;  %v678_v21 = vmul.f32 1.442695, %v621_v46  ;;  %733 = vadd.xlane.f32.xlu0 %v732_v36 }
 0x27f   :  { %v656_v50 = vmul.f32 1.442695, %v610_v45  ;;  %v2979_v58 = vpop.eup %2978  ;;  %v658_v30 = vmul.f32 1.442695, %v611_v44  ;;  %v700_v18 = vpack.c.bf16 %v2977_v20, %v2973_v3 }
 0x280   :  { %v589_v34 = vpop.xlane.xlu1 %588  ;;  %2988 = vpow2.f32 %v676_v37  ;;  %v701_v5 = vpack.c.bf16 %v2979_v58, %v2975_v62  ;;  %v4001_v51 = vadd.f32 %v2979_v58, %v2977_v20 }
 0x281   :  { %v622_v10 = vsub.f32 %v3931_v43, %v589_v34  ;;  %v623_v60 = vsub.f32 %v3935_v48, %v589_v34  ;;  %2990 = vpow2.f32 %v678_v21 }
 0x282   :  { %v2981_v49 = vpop.eup %2980  ;;  %2992 = vpow2.f32 %v656_v50  ;;  %836 = vmatprep.mubr.bf16.mxu1 %v701_v5 }
 0x283   :  { %v680_v19 = vmul.f32 1.442695, %v622_v10  ;;  %v682_v35 = vmul.f32 1.442695, %v623_v60  ;;  %v2983_v42 = vpop.eup %2982  ;;  %2994 = vpow2.f32 %v658_v30  ;;  %837 = vmatmul.mubr.bf16.vlgmr.msra.gmra.mrb[0].mxu1 %v700_v18  ;;  %v592_v40 = vpop.xlane.xlu0 %591  ;;  %v2871_v18 = vld [vmem:[#allocation5] sm:$0xff]   ;;  %v90_v60 = vld [vmem:[#allocation7 + $0x8] sm:$0xff] }
 0x284   :  { %1112 = vmatpush1.bf16.msra.mxu1 %v3879_v61  ;;  %v624_v43 = vsub.f32 %v3948_v25, %v592_v40  ;;  %v625_v48 = vsub.f32 %v3953_v33, %v592_v40  ;;  %v738_v12 = vadd.f32 %v2983_v42, %v2981_v49  ;;  %v89_v10 = vld [vmem:[#allocation7] sm:$0xff] }
 0x285   :  { %2996 = vpow2.f32 %v680_v19  ;;  %1113 = vmatprep.subr.bf16.mxu1 %v3889_v0  ;;  %v595_v16 = vpop.xlane.xlu1 %594 }
 0x286   :  { %2998 = vpow2.f32 %v682_v35  ;;  %v2985_v24 = vpop.eup %2984  ;;  %v684_v6 = vmul.f32 1.442695, %v624_v43  ;;  %v686_v4 = vmul.f32 1.442695, %v625_v48  ;;  %739 = vadd.xlane.f32.xlu0 %v738_v12  ;;  %v626_v1 = vsub.f32 %v3958_v11, %v595_v16 }
 0x287   :  { %v627_v32 = vsub.f32 %v3962_v63, %v595_v16  ;;  %v2987_v31 = vpop.eup %2986  ;;  %v702_v23 = vpack.c.bf16 %v2985_v24, %v2981_v49 }
 0x288   :  { %3000 = vpow2.f32 %v684_v6  ;;  %v688_v39 = vmul.f32 1.442695, %v626_v1  ;;  %1114 = vmatpush1.bf16.msra.mxu1 %v3897_v59  ;;  %v703_v33 = vpack.c.bf16 %v2987_v31, %v2983_v42  ;;  %v741_v47 = vadd.f32 %v2987_v31, %v2985_v24  ;;  %v92_v1 = vld [vmem:[#allocation7 + $0x18] sm:$0xff] }
 0x289   :  { %v690_v25 = vmul.f32 1.442695, %v627_v32  ;;  %3002 = vpow2.f32 %v686_v4  ;;  %1115 = vmatprep.subr.bf16.mxu1 %v3901_v41  ;;  %v91_v4 = vld [vmem:[#allocation7 + $0x10] sm:$0xff] }
 0x28a   :  { %v2989_v3 = vpop.eup %2988  ;;  %3004 = vpow2.f32 %v688_v39  ;;  %844 = vmatprep.mubr.bf16.mxu1 %v703_v33 }
 0x28b   :  { %v2991_v7 = vpop.eup %2990  ;;  %3006 = vpow2.f32 %v690_v25  ;;  %845 = vmatmul.mubr.bf16.gmra.mrb[4].mxu1 %v702_v23 }
 0x28c   :  { %v2993_v11 = vpop.eup %2992  ;;  %1116 = vmatpush1.bf16.msra.mxu1 %v3903_v38  ;;  %v744_v63 = vadd.f32 %v2991_v7, %v2989_v3 }
 0x28d   :  { %v2995_v22 = vpop.eup %2994  ;;  %1117 = vmatprep.subr.bf16.mxu1 %v3909_v55  ;;  %v698_v62 = vpack.c.bf16 %v2993_v11, %v3985_v53  ;;  %v4773_v53 = vmov 0  }
 0x28e   :  { %745 = vadd.xlane.f32.xlu0 %v744_v63  ;;  %v699_v13 = vpack.c.bf16 %v2995_v22, %v3987_v54  ;;  %v729_v15 = vadd.f32 %v2995_v22, %v2993_v11 }
 0x28f   :  { %v2997_v26 = vpop.eup %2996 }
 0x290   :  { %v2999_v46 = vpop.eup %2998  ;;  %v704_v45 = vpack.c.bf16 %v2997_v26, %v2989_v3  ;;  %828 = vmatprep.mubr.bf16.mxu0 %v699_v13  ;;  %730 = vadd.xlane.f32.xlu1 %v729_v15  ;;  %v94_v13 = vld [vmem:[#allocation7 + $0x28] sm:$0xff] }
 0x291   :  { %v705_v44 = vpack.c.bf16 %v2999_v46, %v2991_v7  ;;  %v747_v36 = vadd.f32 %v2999_v46, %v2997_v26  ;;  %829 = vmatmul.mubr.bf16.gmra.mrb[108].mxu0 %v698_v62  ;;  %1118 = vmatpush1.bf16.msra.mxu1 %v3917_v8  ;;  %v93_v26 = vld [vmem:[#allocation7 + $0x20] sm:$0xff] }
 0x292   :  { %v3001_v20 = vpop.eup %3000  ;;  %1119 = vmatprep.subr.bf16.mxu1 %v3921_v28  ;;  %1470 = vmatprep.mubr.bf16.mxu0 %v4773_v53 }
 0x293   :  { %852 = vmatprep.mubr.bf16.mxu1 %v705_v44  ;;  %v3003_v37 = vpop.eup %3002 }
 0x294   :  { %853 = vmatmul.mubr.bf16.gmra.mrb[8].mxu1 %v704_v45  ;;  %v3005_v21 = vpop.eup %3004  ;;  %736 = vadd.xlane.f32.xlu1 %v4001_v51  ;;  %v750_v54 = vadd.f32 %v3003_v37, %v3001_v20 }
 0x295   :  { %v3007_v50 = vpop.eup %3006  ;;  %1120 = vmatpush1.bf16.msra.mxu1 %v3923_v56  ;;  %v706_v58 = vpack.c.bf16 %v3005_v21, %v3001_v20 }
 0x296   :  { %1121 = vmatprep.subr.bf16.mxu1 %v3929_v52  ;;  %751 = vadd.xlane.f32.xlu0 %v750_v54  ;;  %v707_v30 = vpack.c.bf16 %v3007_v50, %v3003_v37  ;;  %v753_v34 = vadd.f32 %v3007_v50, %v3005_v21 }
 0x298   :  { %742 = vadd.xlane.f32.xlu1 %v741_v47  ;;  %860 = vmatprep.mubr.bf16.mxu1 %v707_v30 }
 0x299   :  { %1122 = vmatpush1.bf16.msra.mxu1 %v3937_v9 }
 0x29a   :  { %1123 = vmatprep.subr.bf16.mxu1 %v3944_v2 }
 0x29c   :  { %861 = vmatmul.mubr.bf16.gmra.mrb[12].mxu1 %v706_v58  ;;  %748 = vadd.xlane.f32.xlu1 %v747_v36 }
 0x29d   :  { %1143 = vmatprep.mubr.bf16.mxu1 %v4773_v53  ;;  %1124 = vmatpush1.bf16.msra.mxu1 %v3946_v27 }
 0x29e   :  { %1125 = vmatprep.subr.bf16.mxu1 %v3951_v29 }
 0x2a0   :  { %754 = vadd.xlane.f32.xlu1 %v753_v34 }
 0x2a1   :  { %1126 = vmatpush1.bf16.msra.mxu1 %v3956_v14 }
 0x2a2   :  { %1240 = vmatprep.subr.bf16.mxu1 %v3873_v57  ;;  %v2872_v57 = vld [vmem:[#allocation5 + $0x8] sm:$0xff]  }
 0x2a4   :  { %1144 = vmatmul.mubr.bf16.vlgmr.msra.gmra.mrb[16].mxu1 %v2871_v18 }
 0x2a5   :  { %1241 = vmatpush1.bf16.msra.mxu1 %v3879_v61  ;;  %1153 = vmatprep.mubr.bf16.mxu1 %v4773_v53  ;;  %v2873_v61 = vld [vmem:[#allocation5 + $0x10] sm:$0xff]  }
 0x2a6   :  { %1242 = vmatprep.subr.bf16.mxu1 %v3889_v0  ;;  %v2874_v0 = vld [vmem:[#allocation5 + $0x18] sm:$0xff]  }
 0x2a9   :  { %1243 = vmatpush1.bf16.msra.mxu1 %v3897_v59  ;;  %v2875_v59 = vld [vmem:[#allocation5 + $0x20] sm:$0xff]  }
 0x2aa   :  { %1244 = vmatprep.subr.bf16.mxu1 %v3901_v41  ;;  %v2877_v41 = vld [vmem:[#allocation5 + $0x30] sm:$0xff]  }
 0x2ac   :  { %1154 = vmatmul.mubr.bf16.gmra.mrb[20].mxu1 %v2872_v57 }
 0x2ad   :  { %1245 = vmatpush1.bf16.msra.mxu1 %v3903_v38  ;;  %1163 = vmatprep.mubr.bf16.mxu1 %v4773_v53 }
 0x2ae   :  { %1246 = vmatprep.subr.bf16.mxu1 %v3909_v55 }
 0x2b1   :  { %1247 = vmatpush1.bf16.msra.mxu1 %v3917_v8  ;;  %v2878_v8 = vld [vmem:[#allocation5 + $0x38] sm:$0xff]  }
 0x2b2   :  { %1248 = vmatprep.subr.bf16.mxu1 %v3921_v28 }
 0x2b4   :  { %1164 = vmatmul.mubr.bf16.gmra.mrb[24].mxu1 %v2873_v61 }
 0x2b5   :  { %1249 = vmatpush1.bf16.msra.mxu1 %v3923_v56  ;;  %1173 = vmatprep.mubr.bf16.mxu1 %v4773_v53 }
 0x2b6   :  { %1250 = vmatprep.subr.bf16.mxu1 %v3929_v52 }
 0x2b9   :  { %1251 = vmatpush1.bf16.msra.mxu1 %v3937_v9 }
 0x2ba   :  { %1252 = vmatprep.subr.bf16.mxu1 %v3944_v2 }
 0x2bc   :  { %1174 = vmatmul.mubr.bf16.gmra.mrb[28].mxu1 %v2874_v0  ;;  %v97_v0 = vld [vmem:[#allocation7 + $0x40] sm:$0xff] }
 0x2bd   :  { %1253 = vmatpush1.bf16.msra.mxu1 %v3946_v27  ;;  %1183 = vmatprep.mubr.bf16.mxu1 %v4773_v53  ;;  %v2876_v27 = vld [vmem:[#allocation5 + $0x28] sm:$0xff]  }
 0x2be   :  { %1254 = vmatprep.subr.bf16.mxu1 %v3951_v29 }
 0x2c1   :  { %1255 = vmatpush1.bf16.msra.mxu1 %v3956_v14 }
 0x2c4   :  { %1184 = vmatmul.mubr.bf16.gmra.mrb[32].mxu1 %v2875_v59  ;;  %v98_v59 = vld [vmem:[#allocation7 + $0x48] sm:$0xff] }
 0x2c5   :  { %1193 = vmatprep.mubr.bf16.mxu1 %v4773_v53 }
 0x2cc   :  { %1194 = vmatmul.mubr.bf16.gmra.mrb[36].mxu1 %v2876_v27 }
 0x2cd   :  { %1203 = vmatprep.mubr.bf16.mxu1 %v4773_v53 }
 0x2d4   :  { %1204 = vmatmul.mubr.bf16.gmra.mrb[40].mxu1 %v2877_v41 }
 0x2d5   :  { %1213 = vmatprep.mubr.bf16.mxu1 %v4773_v53 }
 0x2dc   :  { %1214 = vmatmul.mubr.bf16.gmra.mrb[44].mxu1 %v2878_v8 }
 0x2dd   :  { %1272 = vmatprep.mubr.bf16.mxu1 %v4773_v53 }
 0x2eb   :  { %v710_v38 = vpop.xlane.xlu0 %709 }
 0x2ec   :  { %3008 = vrcp.f32 %v710_v38 }
 0x2ed   :  { %v713_v55 = vpop.xlane.xlu1 %712 }
 0x2ee   :  { %3010 = vrcp.f32 %v713_v55 }
 0x2f3   :  { %v716_v28 = vpop.xlane.xlu0 %715 }
 0x2f4   :  { %3012 = vrcp.f32 %v716_v28 }
 0x2f6   :  { %v3009_v52 = vpop.eup %3008 }
 0x2f7   :  { %v719_v56 = vpop.xlane.xlu1 %718 }
 0x2f8   :  { %v3011_v14 = vpop.eup %3010  ;;  %3014 = vrcp.f32 %v719_v56 }
 0x2fb   :  { %v722_v19 = vpop.xlane.xlu0 %721 }
 0x2fc   :  { %3016 = vrcp.f32 %v722_v19 }
 0x2fe   :  { %v3013_v48 = vpop.eup %3012 }
 0x300   :  { %v725_v40 = vpop.xlane.xlu1 %724 }
 0x301   :  { %3018 = vrcp.f32 %v725_v40 }
 0x302   :  { %v3015_v6 = vpop.eup %3014 }
 0x303   :  { %v728_v33 = vpop.xlane.xlu0 %727 }
 0x306   :  { %v3017_v7 = vpop.eup %3016 }
 0x30b   :  { %v3019_v62 = vpop.eup %3018  ;;  %v734_v46 = vpop.xlane.xlu0 %733 }
 0x30c   :  { %3020 = vrcp.f32 %v734_v46 }
 0x313   :  { %v740_v54 = vpop.xlane.xlu0 %739 }
 0x316   :  { %v3021_v58 = vpop.eup %3020 }
 0x31b   :  { %v746_v61 = vpop.xlane.xlu0 %745 }
 0x31d   :  { %v731_v47 = vpop.xlane.xlu1 %730 }
 0x321   :  { %v737_v36 = vpop.xlane.xlu1 %736 }
 0x322   :  { %3022 = vrcp.f32 %v737_v36 }
 0x323   :  { %3024 = vrcp.f32 %v740_v54 }
 0x325   :  { %v743_v50 = vpop.xlane.xlu1 %742 }
 0x326   :  { %3026 = vrcp.f32 %v743_v50  ;;  %v103_v50 = vld [vmem:[#allocation7 + $0x70] sm:$0xff] }
 0x327   :  { %3028 = vrcp.f32 %v728_v33 }
 0x328   :  { %3030 = vrcp.f32 %v746_v61 }
 0x329   :  { %v749_v55 = vpop.xlane.xlu1 %748  ;;  %3032 = vrcp.f32 %v731_v47 }
 0x32a   :  { %3034 = vrcp.f32 %v749_v55 }
 0x32c   :  { %v3023_v57 = vpop.eup %3022 }
 0x334   :  { %v806_v9 = vpop.f32.mrb[96].mxu0 }
 0x335   :  { %v869_v2 = vmul.f32 %v3009_v52, %v806_v9  ;;  %v808_v29 = vpop.f32.mrb[97].mxu0  ;;  %v3025_v52 = vpop.eup %3024 }
 0x336   :  { %v809_v5 = vpop.f32.mrb[98].mxu0 }
 0x337   :  { %v870_v51 = vmul.f32 %v3011_v14, %v809_v5  ;;  %v811_v49 = vpop.f32.mrb[99].mxu0  ;;  %v885_v35 = vmul.f32 %v869_v2, %v89_v10  ;;  %v3027_v14 = vpop.eup %3026  ;;  %v99_v10 = vld [vmem:[#allocation7 + $0x50] sm:$0xff] }
 0x339   :  { %v886_v42 = vmul.f32 %v870_v51, %v90_v60  ;;  %v100_v60 = vld [vmem:[#allocation7 + $0x58] sm:$0xff]  ;;  %v752_v51 = vpop.xlane.xlu0 %751 }
 0x33a   :  { %3036 = vrcp.f32 %v752_v51 }
 0x33b   :  { %v901_v43 = vpack.c.bf16 %v886_v42, %v885_v35  ;;  %v755_v35 = vpop.xlane.xlu1 %754 }
 0x33c   :  { %3038 = vrcp.f32 %v755_v35 }
 0x33d   :  { %1224 = vxpose.xlu0.c.b16.start [1/8] %v901_v43, 128  ;;  %v3029_v43 = vpop.eup %3028 }
 0x33e   :  { %v814_v12 = vpop.f32.mrb[100].mxu0 }
 0x33f   :  { %v871_v16 = vmul.f32 %v3013_v48, %v814_v12  ;;  %v816_v24 = vpop.f32.mrb[101].mxu0  ;;  %v3031_v12 = vpop.eup %3030 }
 0x340   :  { %v817_v32 = vpop.f32.mrb[102].mxu0 }
 0x341   :  { %v872_v31 = vmul.f32 %v3015_v6, %v817_v32  ;;  %v819_v23 = vpop.f32.mrb[103].mxu0  ;;  %v887_v39 = vmul.f32 %v871_v16, %v91_v4  ;;  %v3033_v4 = vpop.eup %3032  ;;  %v96_v32 = vld [vmem:[#allocation7 + $0x38] sm:$0xff] }
 0x343   :  { %v888_v25 = vmul.f32 %v872_v31, %v92_v1  ;;  %v95_v1 = vld [vmem:[#allocation7 + $0x30] sm:$0xff] }
 0x345   :  { %v902_v3 = vpack.c.bf16 %v888_v25, %v887_v39 }
 0x346   :  { %v822_v11 = vpop.f32.mrb[104].mxu0 }
 0x347   :  { %v873_v63 = vmul.f32 %v3017_v7, %v822_v11  ;;  %v824_v22 = vpop.f32.mrb[105].mxu0  ;;  %1225 = vxpose.xlu0.c.b16.cont [2/8] %v902_v3, 128  ;;  %v3035_v3 = vpop.eup %3034  ;;  %v101_v7 = vld [vmem:[#allocation7 + $0x60] sm:$0xff]  ;;  %v102_v11 = vld [vmem:[#allocation7 + $0x68] sm:$0xff] }
 0x348   :  { %v825_v15 = vpop.f32.mrb[106].mxu0  ;;  %v3037_v36 = vpop.eup %3036 }
 0x349   :  { %v874_v45 = vmul.f32 %v3019_v62, %v825_v15  ;;  %v827_v44 = vpop.f32.mrb[107].mxu0  ;;  %v889_v20 = vmul.f32 %v873_v63, %v93_v26  ;;  %v3039_v54 = vpop.eup %3038 }
 0x34b   :  { %v890_v37 = vmul.f32 %v874_v45, %v94_v13 }
 0x34d   :  { %v903_v21 = vpack.c.bf16 %v890_v37, %v889_v20 }
 0x34f   :  { %1226 = vxpose.xlu0.c.b16.cont [3/8] %v903_v21, 128 }
 0x356   :  { %v838_v30 = vpop.f32.mrb[0].mxu1 }
 0x357   :  { %v877_v34 = vmul.f32 %v3021_v58, %v838_v30  ;;  %v840_v18 = vpop.f32.mrb[1].mxu1  ;;  %v104_v58 = vld [vmem:[#allocation7 + $0x78] sm:$0xff] }
 0x358   :  { %v841_v27 = vpop.f32.mrb[2].mxu1 }
 0x359   :  { %v878_v41 = vmul.f32 %v3023_v57, %v841_v27  ;;  %v843_v38 = vpop.f32.mrb[3].mxu1  ;;  %v893_v8 = vmul.f32 %v877_v34, %v97_v0 }
 0x35b   :  { %v894_v28 = vmul.f32 %v878_v41, %v98_v59 }
 0x35d   :  { %v905_v56 = vpack.c.bf16 %v894_v28, %v893_v8 }
 0x35e   :  { %v846_v9 = vpop.f32.mrb[4].mxu1 }
 0x35f   :  { %v879_v2 = vmul.f32 %v3025_v52, %v846_v9  ;;  %v848_v29 = vpop.f32.mrb[5].mxu1 }
 0x360   :  { %v849_v5 = vpop.f32.mrb[6].mxu1 }
 0x361   :  { %v880_v49 = vmul.f32 %v3027_v14, %v849_v5  ;;  %v851_v19 = vpop.f32.mrb[7].mxu1  ;;  %v895_v42 = vmul.f32 %v879_v2, %v99_v10 }
 0x363   :  { %v896_v40 = vmul.f32 %v880_v49, %v100_v60 }
 0x364   :  { %v830_v48 = vpop.f32.mrb[108].mxu0 }
 0x365   :  { %v906_v16 = vpack.c.bf16 %v896_v40, %v895_v42  ;;  %v875_v24 = vmul.f32 %v3029_v43, %v830_v48  ;;  %v832_v6 = vpop.f32.mrb[109].mxu0 }
 0x366   :  { %v833_v31 = vpop.f32.mrb[110].mxu0 }
 0x367   :  { %v854_v23 = vpop.f32.mrb[8].mxu1  ;;  %v876_v39 = vmul.f32 %v3033_v4, %v833_v31  ;;  %v835_v25 = vpop.f32.mrb[111].mxu0  ;;  %v891_v22 = vmul.f32 %v875_v24, %v95_v1 }
 0x368   :  { %v881_v33 = vmul.f32 %v3031_v12, %v854_v23  ;;  %v856_v47 = vpop.f32.mrb[9].mxu1 }
 0x369   :  { %v857_v63 = vpop.f32.mrb[10].mxu1  ;;  %v892_v62 = vmul.f32 %v876_v39, %v96_v32 }
 0x36a   :  { %v882_v26 = vmul.f32 %v3035_v3, %v857_v63  ;;  %v859_v13 = vpop.f32.mrb[11].mxu1  ;;  %v897_v46 = vmul.f32 %v881_v33, %v101_v7 }
 0x36b   :  { %v904_v15 = vpack.c.bf16 %v892_v62, %v891_v22 }
 0x36c   :  { %v898_v45 = vmul.f32 %v882_v26, %v102_v11 }
 0x36d   :  { %1227 = vxpose.xlu0.c.b16.cont [4/8] %v904_v15, 128 }
 0x36e   :  { %v907_v44 = vpack.c.bf16 %v898_v45, %v897_v46 }
 0x36f   :  { %v862_v20 = vpop.f32.mrb[12].mxu1 }
 0x370   :  { %v883_v37 = vmul.f32 %v3037_v36, %v862_v20  ;;  %v864_v21 = vpop.f32.mrb[13].mxu1 }
 0x371   :  { %v865_v30 = vpop.f32.mrb[14].mxu1  ;;  %1228 = vxpose.xlu0.c.b16.cont [5/8] %v905_v56, 128 }
 0x372   :  { %v884_v34 = vmul.f32 %v3039_v54, %v865_v30  ;;  %v867_v18 = vpop.f32.mrb[15].mxu1  ;;  %v899_v57 = vmul.f32 %v883_v37, %v103_v50 }
 0x374   :  { %v900_v61 = vmul.f32 %v884_v34, %v104_v58 }
 0x375   :  { %1229 = vxpose.xlu0.c.b16.cont [6/8] %v906_v16, 128 }
 0x376   :  { %v908_v0 = vpack.c.bf16 %v900_v61, %v899_v57 }
 0x377   :  { %v1145_v59 = vpop.f32.mrb[16].mxu1 }
 0x378   :  { %v1147_v27 = vpop.f32.mrb[17].mxu1  ;;  %3040 = vrcp.f32 %v1145_v59 }
 0x379   :  { %1230 = vxpose.xlu0.c.b16.cont [7/8] %v907_v44, 128  ;;  %v1149_v41 = vpop.f32.mrb[18].mxu1  ;;  %3042 = vrcp.f32 %v1147_v27 }
 0x37a   :  { %v1151_v38 = vpop.f32.mrb[19].mxu1  ;;  %3044 = vrcp.f32 %v1149_v41 }
 0x37b   :  { %3046 = vrcp.f32 %v1151_v38 }
 0x37d   :  { %1231 = vxpose.xlu0.c.b16.end [8/8] %v908_v0, 128 }
 0x37f   :  { %v1155_v28 = vpop.f32.mrb[20].mxu1 }
 0x380   :  { %v1157_v56 = vpop.f32.mrb[21].mxu1  ;;  %3048 = vrcp.f32 %v1155_v28 }
 0x381   :  { %v1159_v52 = vpop.f32.mrb[22].mxu1  ;;  %3050 = vrcp.f32 %v1157_v56 }
 0x382   :  { %v1161_v2 = vpop.f32.mrb[23].mxu1  ;;  %v3041_v63 = vpop.eup %3040  ;;  %3052 = vrcp.f32 %v1159_v52 }
 0x383   :  { %v3043_v62 = vpop.eup %3042  ;;  %3054 = vrcp.f32 %v1161_v2 }
 0x384   :  { %v3045_v15 = vpop.eup %3044 }
 0x385   :  { %v3047_v44 = vpop.eup %3046 }
 0x387   :  { %v1165_v29 = vpop.f32.mrb[24].mxu1 }
 0x388   :  { %v1167_v14 = vpop.f32.mrb[25].mxu1  ;;  %3056 = vrcp.f32 %v1165_v29 }
 0x389   :  { %v1169_v10 = vpop.f32.mrb[26].mxu1  ;;  %3058 = vrcp.f32 %v1167_v14 }
 0x38a   :  { %v1171_v5 = vpop.f32.mrb[27].mxu1  ;;  %v3049_v50 = vpop.eup %3048  ;;  %3060 = vrcp.f32 %v1169_v10 }
 0x38b   :  { %v3051_v30 = vpop.eup %3050  ;;  %3062 = vrcp.f32 %v1171_v5 }
 0x38c   :  { %v3053_v57 = vpop.eup %3052 }
 0x38d   :  { %v3055_v59 = vpop.eup %3054 }
 0x38f   :  { %v4055_v51 = vpop.f32.mrb[28].mxu1 }
 0x390   :  { %v4057_v49 = vpop.f32.mrb[29].mxu1  ;;  %3064 = vrcp.f32 %v4055_v51 }
 0x391   :  { %v4059_v19 = vpop.f32.mrb[30].mxu1  ;;  %3066 = vrcp.f32 %v4057_v49 }
 0x392   :  { %v4061_v42 = vpop.f32.mrb[31].mxu1  ;;  %v3057_v28 = vpop.eup %3056  ;;  %3068 = vrcp.f32 %v4059_v19 }
 0x393   :  { %v3059_v52 = vpop.eup %3058  ;;  %3070 = vrcp.f32 %v4061_v42 }
 0x394   :  { %v3061_v29 = vpop.eup %3060 }
 0x397   :  { %v4064_v40 = vpop.f32.mrb[32].mxu1 }
 0x398   :  { %v4066_v43 = vpop.f32.mrb[33].mxu1  ;;  %3072 = vrcp.f32 %v4064_v40 }
 0x399   :  { %v4068_v48 = vpop.f32.mrb[34].mxu1  ;;  %3074 = vrcp.f32 %v4066_v43 }
 0x39a   :  { %v4070_v16 = vpop.f32.mrb[35].mxu1  ;;  %3076 = vrcp.f32 %v4068_v48 }
 0x39b   :  { %3078 = vrcp.f32 %v4070_v16 }
 0x39f   :  { %v4073_v24 = vpop.f32.mrb[36].mxu1 }
 0x3a0   :  { %v4075_v6 = vpop.f32.mrb[37].mxu1  ;;  %3080 = vrcp.f32 %v4073_v24 }
 0x3a1   :  { %v4077_v4 = vpop.f32.mrb[38].mxu1  ;;  %3082 = vrcp.f32 %v4075_v6 }
 0x3a2   :  { %v4079_v32 = vpop.f32.mrb[39].mxu1  ;;  %3084 = vrcp.f32 %v4077_v4 }
 0x3a3   :  { %3086 = vrcp.f32 %v4079_v32 }
 0x3a7   :  { %v4082_v31 = vpop.f32.mrb[40].mxu1 }
 0x3a8   :  { %v4084_v23 = vpop.f32.mrb[41].mxu1  ;;  %3088 = vrcp.f32 %v4082_v31 }
 0x3a9   :  { %v4086_v39 = vpop.f32.mrb[42].mxu1  ;;  %3090 = vrcp.f32 %v4084_v23 }
 0x3aa   :  { %v4088_v33 = vpop.f32.mrb[43].mxu1  ;;  %3092 = vrcp.f32 %v4086_v39 }
 0x3af   :  { %v4090_v47 = vpop.f32.mrb[44].mxu1 }
 0x3b0   :  { %v4092_v3 = vpop.f32.mrb[45].mxu1 }
 0x3b1   :  { %v4094_v7 = vpop.f32.mrb[46].mxu1 }
 0x3b2   :  { %v4096_v11 = vpop.f32.mrb[47].mxu1 }
 0x3c7   :  { %v1232_v55 = vpop.trf.xlu0 }
 0x3c8   :  { %1273 = vmatmul.mubr.bf16.vlgmr.msra.gmra.mrb[48].mxu1 %v1232_v55 }
 0x3c9   :  { %1282 = vmatprep.mubr.bf16.mxu1 %v4773_v53 }
 0x3cb   :  { %v1233_v8 = vpop.trf.xlu0 }
 0x3cf   :  { %v1234_v9 = vpop.trf.xlu0 }
 0x3d0   :  { %1283 = vmatmul.mubr.bf16.gmra.mrb[52].mxu1 %v1233_v8 }
 0x3d1   :  { %1292 = vmatprep.mubr.bf16.mxu1 %v4773_v53 }
 0x3d3   :  { %v1235_v60 = vpop.trf.xlu0 }
 0x3d7   :  { %v1236_v35 = vpop.trf.xlu0 }
 0x3d8   :  { %1293 = vmatmul.mubr.bf16.gmra.mrb[56].mxu1 %v1234_v9 }
 0x3d9   :  { %1302 = vmatprep.mubr.bf16.mxu1 %v4773_v53 }
 0x3db   :  { %v1237_v12 = vpop.trf.xlu0 }
 0x3df   :  { %v1238_v1 = vpop.trf.xlu0 }
 0x3e0   :  { %1303 = vmatmul.mubr.bf16.gmra.mrb[60].mxu1 %v1235_v60  ;;  %v3063_v60 = vpop.eup %3062  ;;  %3094 = vrcp.f32 %v4088_v33 }
 0x3e1   :  { %1312 = vmatprep.mubr.bf16.mxu1 %v4773_v53  ;;  %v3065_v19 = vpop.eup %3064  ;;  %3096 = vrcp.f32 %v4090_v47 }
 0x3e3   :  { %v1239_v25 = vpop.trf.xlu0 }
 0x3e8   :  { %1313 = vmatmul.mubr.bf16.gmra.mrb[64].mxu1 %v1236_v35 }
 0x3e9   :  { %1322 = vmatprep.mubr.bf16.mxu1 %v4773_v53 }
 0x3f0   :  { %1323 = vmatmul.mubr.bf16.gmra.mrb[68].mxu1 %v1237_v12 }
 0x3f1   :  { %1332 = vmatprep.mubr.bf16.mxu1 %v4773_v53 }
 0x3f8   :  { %1333 = vmatmul.mubr.bf16.gmra.mrb[72].mxu1 %v1238_v1  ;;  %v3067_v1 = vpop.eup %3066  ;;  %3098 = vrcp.f32 %v4092_v3 }
 0x3f9   :  { %1342 = vmatprep.mubr.bf16.mxu1 %v4773_v53 }
 0x400   :  { %1343 = vmatmul.mubr.bf16.gmra.mrb[76].mxu1 %v1239_v25 }
 0x49b   :  { %v1274_v22 = vpop.f32.mrb[48].mxu1 }
 0x49c   :  { %v1385_v26 = vmul.f32 %v3041_v63, %v1274_v22  ;;  %v1276_v13 = vpop.f32.mrb[49].mxu1  ;;  %v3069_v22 = vpop.eup %3068  ;;  %3100 = vrcp.f32 %v4094_v7 }
 0x49d   :  { %v1386_v46 = vmul.f32 %v3043_v62, %v1276_v13  ;;  %v1278_v45 = vpop.f32.mrb[50].mxu1  ;;  %v3071_v13 = vpop.eup %3070  ;;  %3102 = vrcp.f32 %v4096_v11 }
 0x49e   :  { %v1387_v36 = vmul.f32 %v3045_v15, %v1278_v45  ;;  %v1280_v20 = vpop.f32.mrb[51].mxu1  ;;  %v3073_v48 = vpop.eup %3072 }
 0x49f   :  { %v1388_v37 = vmul.f32 %v3047_v44, %v1280_v20  ;;  %v3075_v44 = vpop.eup %3074 }
 0x4a0   :  { %v1417_v21 = vpack.c.bf16 %v1387_v36, %v1385_v26 }
 0x4a1   :  { %v1418_v54 = vpack.c.bf16 %v1388_v37, %v1386_v46  ;;  %v3077_v37 = vpop.eup %3076 }
 0x4a3   :  { %v1284_v58 = vpop.f32.mrb[52].mxu1  ;;  %1438 = vmatprep.subr.bf16.mxu0 %v1418_v54 }
 0x4a4   :  { %v1389_v34 = vmul.f32 %v3049_v50, %v1284_v58  ;;  %v1286_v18 = vpop.f32.mrb[53].mxu1  ;;  %1439 = vmatpush1.bf16.msra.mxu0 %v1417_v21  ;;  %v3079_v50 = vpop.eup %3078 }
 0x4a5   :  { %v1390_v61 = vmul.f32 %v3051_v30, %v1286_v18  ;;  %v1288_v0 = vpop.f32.mrb[54].mxu1  ;;  %v3081_v4 = vpop.eup %3080 }
 0x4a6   :  { %v1391_v27 = vmul.f32 %v3053_v57, %v1288_v0  ;;  %v1290_v41 = vpop.f32.mrb[55].mxu1  ;;  %v3083_v18 = vpop.eup %3082 }
 0x4a7   :  { %v1392_v38 = vmul.f32 %v3055_v59, %v1290_v41  ;;  %v3085_v0 = vpop.eup %3084 }
 0x4a8   :  { %v1419_v55 = vpack.c.bf16 %v1391_v27, %v1389_v34  ;;  %v3087_v41 = vpop.eup %3086 }
 0x4a9   :  { %v1420_v8 = vpack.c.bf16 %v1392_v38, %v1390_v61  ;;  %v3089_v39 = vpop.eup %3088 }
 0x4ab   :  { %v1294_v56 = vpop.f32.mrb[56].mxu1  ;;  %1440 = vmatprep.subr.bf16.mxu0 %v1420_v8 }
 0x4ac   :  { %v1393_v9 = vmul.f32 %v3057_v28, %v1294_v56  ;;  %v1296_v2 = vpop.f32.mrb[57].mxu1  ;;  %1441 = vmatpush1.bf16.msra.mxu0 %v1419_v55  ;;  %v3091_v28 = vpop.eup %3090 }
 0x4ad   :  { %v1394_v14 = vmul.f32 %v3059_v52, %v1296_v2  ;;  %v1298_v10 = vpop.f32.mrb[58].mxu1 }
 0x4ae   :  { %v1395_v5 = vmul.f32 %v3061_v29, %v1298_v10  ;;  %v1300_v51 = vpop.f32.mrb[59].mxu1 }
 0x4af   :  { %v1396_v35 = vmul.f32 %v3063_v60, %v1300_v51  ;;  %v1536_v51 = vld [vmem:[#allocation2 + $0x8] sm:$0xff] }
 0x4b0   :  { %v1421_v12 = vpack.c.bf16 %v1395_v5, %v1393_v9  ;;  %v3093_v9 = vpop.eup %3092 }
 0x4b1   :  { %v1422_v49 = vpack.c.bf16 %v1396_v35, %v1394_v14  ;;  %v3095_v14 = vpop.eup %3094 }
 0x4b2   :  { %v3097_v35 = vpop.eup %3096 }
 0x4b3   :  { %v1304_v42 = vpop.f32.mrb[60].mxu1  ;;  %1442 = vmatprep.subr.bf16.mxu0 %v1422_v49 }
 0x4b4   :  { %v1397_v25 = vmul.f32 %v3065_v19, %v1304_v42  ;;  %v1306_v63 = vpop.f32.mrb[61].mxu1  ;;  %1443 = vmatpush1.bf16.msra.mxu0 %v1421_v12  ;;  %v3099_v12 = vpop.eup %3098 }
 0x4b5   :  { %v1398_v62 = vmul.f32 %v3067_v1, %v1306_v63  ;;  %v1308_v26 = vpop.f32.mrb[62].mxu1  ;;  %v3101_v11 = vpop.eup %3100 }
 0x4b6   :  { %v1399_v15 = vmul.f32 %v3069_v22, %v1308_v26  ;;  %v1310_v40 = vpop.f32.mrb[63].mxu1  ;;  %v3103_v63 = vpop.eup %3102 }
 0x4b7   :  { %v1400_v46 = vmul.f32 %v3071_v13, %v1310_v40 }
 0x4b8   :  { %v1423_v45 = vpack.c.bf16 %v1399_v15, %v1397_v25  ;;  %v1538_v25 = vcombine.high %v1536_v51, %v1536_v51 }
 0x4b9   :  { %v1424_v43 = vpack.c.bf16 %v1400_v46, %v1398_v62  ;;  %v1540_v46 = vpack.c.bf16 %v1536_v51, %v1536_v51 }
 0x4ba   :  { %v1541_v40 = vpack.c.bf16 %v1538_v25, %v1538_v25 }
 0x4bb   :  { %v1314_v16 = vpop.f32.mrb[64].mxu1  ;;  %1444 = vmatprep.subr.bf16.mxu0 %v1424_v43  ;;  %v1543_v43 = vsel %vm252_vm0, %v1540_v46, 0 }
 0x4bc   :  { %v1401_v36 = vmul.f32 %v3073_v48, %v1314_v16  ;;  %v1316_v20 = vpop.f32.mrb[65].mxu1  ;;  %1445 = vmatpush1.bf16.msra.mxu0 %v1423_v45  ;;  %v70_v45 = vld [vmem:[%s4716_s2] sm:$0x3]  ;;  %v4775_v16 = vld [vmem:[#allocation13_spill] sm:$0xff] }
 0x4bd   :  { %v1402_v21 = vmul.f32 %v3075_v44, %v1316_v20  ;;  %v1318_v54 = vpop.f32.mrb[66].mxu1  ;;  %v4774_v48 = vld [vmem:[#allocation12_spill] sm:$0xff]  ;;  %v4776_v44 = vld [vmem:[#allocation14_spill] sm:$0xff]  ;;  %v4779_v20 = vld [vmem:[#allocation17_spill] sm:$0xff] }
 0x4be   :  { %v1403_v58 = vmul.f32 %v3077_v37, %v1318_v54  ;;  %v1320_v24 = vpop.f32.mrb[67].mxu1  ;;  %v4780_v37 = vld [vmem:[#allocation18_spill] sm:$0xff]  ;;  %v4782_v54 = vld [vmem:[#allocation20_spill] sm:$0xff] }
 0x4bf   :  { %v1404_v30 = vmul.f32 %v3079_v50, %v1320_v24  ;;  %v4783_v50 = vld [vmem:[#allocation21_spill] sm:$0xff]  ;;  %v4785_v24 = vld [vmem:[#allocation23_spill] sm:$0xff] }
 0x4c0   :  { %v1425_v34 = vpack.c.bf16 %v1403_v58, %v1401_v36  ;;  %v4777_v36 = vld [vmem:[#allocation15_spill] sm:$0xff]  ;;  %v4784_v58 = vld [vmem:[#allocation22_spill] sm:$0xff] }
 0x4c1   :  { %v1426_v6 = vpack.c.bf16 %v1404_v30, %v1402_v21  ;;  %v4781_v21 = vld [vmem:[#allocation19_spill] sm:$0xff]  ;;  %v4786_v30 = vld [vmem:[#allocation24_spill] sm:$0xff] }
 0x4c3   :  { %v1324_v32 = vpop.f32.mrb[68].mxu1  ;;  %1446 = vmatprep.subr.bf16.mxu0 %v1426_v6  ;;  %v4788_v6 = vld [vmem:[#allocation26_spill] sm:$0xff] }
 0x4c4   :  { %v1405_v57 = vmul.f32 %v3081_v4, %v1324_v32  ;;  %v1326_v61 = vpop.f32.mrb[69].mxu1  ;;  %1447 = vmatpush1.bf16.msra.mxu0 %v1425_v34  ;;  %v4787_v34 = vld [vmem:[#allocation25_spill] sm:$0xff]  ;;  %v4789_v4 = vld [vmem:[#allocation27_spill] sm:$0xff]  ;;  %v4790_v32 = vld [vmem:[#allocation28_spill] sm:$0xff] }
 0x4c5   :  { %v1406_v59 = vmul.f32 %v3083_v18, %v1326_v61  ;;  %v1328_v27 = vpop.f32.mrb[70].mxu1  ;;  %v4791_v18 = vld [vmem:[#allocation29_spill] sm:$0xff]  ;;  %v4793_v61 = vld [vmem:[#allocation31_spill] sm:$0xff] }
 0x4c6   :  { %v1407_v38 = vmul.f32 %v3085_v0, %v1328_v27  ;;  %v1330_v31 = vpop.f32.mrb[71].mxu1  ;;  %v4794_v0 = vld [vmem:[#allocation32_spill] sm:$0xff]  ;;  %v4796_v27 = vld [vmem:[#allocation34_spill] sm:$0xff] }
 0x4c7   :  { %v1408_v55 = vmul.f32 %v3087_v41, %v1330_v31 }
 0x4c8   :  { %v1427_v8 = vpack.c.bf16 %v1407_v38, %v1405_v57  ;;  %v4792_v57 = vld [vmem:[#allocation30_spill] sm:$0xff] }
 0x4c9   :  { %v1428_v23 = vpack.c.bf16 %v1408_v55, %v1406_v59  ;;  %v4795_v59 = vld [vmem:[#allocation33_spill] sm:$0xff] }
 0x4cb   :  { %v1334_v33 = vpop.f32.mrb[72].mxu1  ;;  %1448 = vmatprep.subr.bf16.mxu0 %v1428_v23 }
 0x4cc   :  { %v1409_v56 = vmul.f32 %v3089_v39, %v1334_v33  ;;  %v1336_v52 = vpop.f32.mrb[73].mxu1  ;;  %1449 = vmatpush1.bf16.msra.mxu0 %v1427_v8 }
 0x4cd   :  { %v1410_v2 = vmul.f32 %v3091_v28, %v1336_v52  ;;  %v1338_v29 = vpop.f32.mrb[74].mxu1 }
 0x4ce   :  { %v1411_v10 = vmul.f32 %v3093_v9, %v1338_v29  ;;  %v1340_v47 = vpop.f32.mrb[75].mxu1 }
 0x4cf   :  { %v1412_v60 = vmul.f32 %v3095_v14, %v1340_v47 }
 0x4d0   :  { %v1429_v5 = vpack.c.bf16 %v1411_v10, %v1409_v56 }
 0x4d1   :  { %v1430_v3 = vpack.c.bf16 %v1412_v60, %v1410_v2 }
 0x4d3   :  { %v1344_v7 = vpop.f32.mrb[76].mxu1  ;;  %1450 = vmatprep.subr.bf16.mxu0 %v1430_v3 }
 0x4d4   :  { %v1413_v49 = vmul.f32 %v3097_v35, %v1344_v7  ;;  %v1346_v19 = vpop.f32.mrb[77].mxu1  ;;  %1451 = vmatpush1.bf16.msra.mxu0 %v1429_v5 }
 0x4d5   :  { %v1414_v42 = vmul.f32 %v3099_v12, %v1346_v19  ;;  %v1348_v1 = vpop.f32.mrb[78].mxu1 }
 0x4d6   :  { %v1415_v22 = vmul.f32 %v3101_v11, %v1348_v1  ;;  %v1350_v62 = vpop.f32.mrb[79].mxu1 }
 0x4d7   :  { %v1416_v26 = vmul.f32 %v3103_v63, %v1350_v62 }
 0x4d8   :  { %v1431_v13 = vpack.c.bf16 %v1415_v22, %v1413_v49 }
 0x4d9   :  { %v1432_v15 = vpack.c.bf16 %v1416_v26, %v1414_v42 }
 0x4db   :  { %1452 = vmatprep.subr.bf16.mxu0 %v1432_v15 }
 0x4dc   :  { %1453 = vmatpush1.bf16.msra.mxu0 %v1431_v13 }
 0x4dd   :  { %2816 = vmatprep.subr.msk.bf16.mxu0 %vm252_vm0, %v1541_v40 }
 0x4df   :  { %1471 = vmatmul.mubr.bf16.vlgmr.msra.gmra.mrb[112].mxu0 %v70_v45 }
 0x4e0   :  { %1549 = vmatpush1.bf16.msra.mxu0 %v1543_v43  ;;  %1580 = vmatprep.mubr.bf16.mxu0 %v4773_v53 }
 0x4e7   :  { %2817 = vmatmul.mubr.msk.bf16.vlgmr.msra.gmra.mrb[116].mxu0 %vm179_vm1, %v3554_v17  ;;  %v4778_v17 = vld [vmem:[#allocation16_spill] sm:$0xff] }
 0x4e8   :  { %1590 = vmatprep.mubr.bf16.mxu0 %v4773_v53 }
 0x4ef   :  { %2818 = vmatmul.mubr.msk.bf16.gmra.mrb[120].mxu0 %vm179_vm1, %v4774_v48 }
 0x4f0   :  { %1600 = vmatprep.mubr.bf16.mxu0 %v4773_v53 }
 0x4f7   :  { %2819 = vmatmul.mubr.msk.bf16.gmra.mrb[124].mxu0 %vm179_vm1, %v4775_v16 }
 0x4f8   :  { %1610 = vmatprep.mubr.bf16.mxu0 %v4773_v53 }
 0x4ff   :  { %2820 = vmatmul.mubr.msk.bf16.gmra.mrb[128].mxu0 %vm179_vm1, %v4776_v44 }
 0x500   :  { %1620 = vmatprep.mubr.bf16.mxu0 %v4773_v53 }
 0x507   :  { %2821 = vmatmul.mubr.msk.bf16.gmra.mrb[132].mxu0 %vm179_vm1, %v4777_v36 }
 0x508   :  { %1630 = vmatprep.mubr.bf16.mxu0 %v4773_v53 }
 0x50f   :  { %2822 = vmatmul.mubr.msk.bf16.gmra.mrb[136].mxu0 %vm179_vm1, %v4778_v17 }
 0x510   :  { %1640 = vmatprep.mubr.bf16.mxu0 %v4773_v53 }
 0x517   :  { %2823 = vmatmul.mubr.msk.bf16.gmra.mrb[140].mxu0 %vm179_vm1, %v4779_v20 }
 0x518   :  { %1650 = vmatprep.mubr.bf16.mxu0 %v4773_v53 }
 0x51f   :  { %2824 = vmatmul.mubr.msk.bf16.gmra.mrb[144].mxu0 %vm179_vm1, %v4780_v37 }
 0x520   :  { %1660 = vmatprep.mubr.bf16.mxu0 %v4773_v53 }
 0x527   :  { %2825 = vmatmul.mubr.msk.bf16.gmra.mrb[148].mxu0 %vm179_vm1, %v4781_v21 }
 0x528   :  { %1670 = vmatprep.mubr.bf16.mxu0 %v4773_v53 }
 0x52f   :  { %2826 = vmatmul.mubr.msk.bf16.gmra.mrb[152].mxu0 %vm179_vm1, %v4782_v54 }
 0x530   :  { %1680 = vmatprep.mubr.bf16.mxu0 %v4773_v53 }
 0x537   :  { %2827 = vmatmul.mubr.msk.bf16.gmra.mrb[156].mxu0 %vm179_vm1, %v4783_v50 }
 0x538   :  { %1690 = vmatprep.mubr.bf16.mxu0 %v4773_v53 }
 0x53f   :  { %2828 = vmatmul.mubr.msk.bf16.gmra.mrb[160].mxu0 %vm179_vm1, %v4784_v58 }
 0x540   :  { %1700 = vmatprep.mubr.bf16.mxu0 %v4773_v53 }
 0x547   :  { %2829 = vmatmul.mubr.msk.bf16.gmra.mrb[164].mxu0 %vm179_vm1, %v4785_v24 }
 0x548   :  { %1710 = vmatprep.mubr.bf16.mxu0 %v4773_v53 }
 0x54f   :  { %2830 = vmatmul.mubr.msk.bf16.gmra.mrb[168].mxu0 %vm179_vm1, %v4786_v30 }
 0x550   :  { %1720 = vmatprep.mubr.bf16.mxu0 %v4773_v53 }
 0x557   :  { %2831 = vmatmul.mubr.msk.bf16.gmra.mrb[172].mxu0 %vm179_vm1, %v4787_v34 }
 0x558   :  { %1730 = vmatprep.mubr.bf16.mxu0 %v4773_v53 }
 0x55f   :  { %2832 = vmatmul.mubr.msk.bf16.gmra.mrb[176].mxu0 %vm179_vm1, %v4788_v6 }
 0x560   :  { %1740 = vmatprep.mubr.bf16.mxu0 %v4773_v53 }
 0x567   :  { %2833 = vmatmul.mubr.msk.bf16.gmra.mrb[180].mxu0 %vm179_vm1, %v4789_v4 }
 0x568   :  { %1750 = vmatprep.mubr.bf16.mxu0 %v4773_v53 }
 0x56f   :  { %2834 = vmatmul.mubr.msk.bf16.gmra.mrb[184].mxu0 %vm179_vm1, %v4790_v32 }
 0x570   :  { %1760 = vmatprep.mubr.bf16.mxu0 %v4773_v53 }
 0x577   :  { %2835 = vmatmul.mubr.msk.bf16.gmra.mrb[188].mxu0 %vm179_vm1, %v4791_v18 }
 0x578   :  { %1770 = vmatprep.mubr.bf16.mxu0 %v4773_v53 }
 0x57f   :  { %2836 = vmatmul.mubr.msk.bf16.gmra.mrb[192].mxu0 %vm179_vm1, %v4792_v57 }
 0x580   :  { %1780 = vmatprep.mubr.bf16.mxu0 %v4773_v53 }
 0x587   :  { %2837 = vmatmul.mubr.msk.bf16.gmra.mrb[196].mxu0 %vm179_vm1, %v4793_v61 }
 0x588   :  { %1790 = vmatprep.mubr.bf16.mxu0 %v4773_v53 }
 0x58f   :  { %2838 = vmatmul.mubr.msk.bf16.gmra.mrb[200].mxu0 %vm179_vm1, %v4794_v0 }
 0x590   :  { %1800 = vmatprep.mubr.bf16.mxu0 %v4773_v53 }
 0x597   :  { %2839 = vmatmul.mubr.msk.bf16.gmra.mrb[204].mxu0 %vm179_vm1, %v4795_v59 }
 0x598   :  { %1810 = vmatprep.mubr.bf16.mxu0 %v4773_v53 }
 0x59f   :  { %2840 = vmatmul.mubr.msk.bf16.gmra.mrb[208].mxu0 %vm179_vm1, %v4796_v27 }
 0x5b2   :  { %v4195_v41 = vpop.f32.mrb[112].mxu0 }
 0x5b3   :  { %4797 = vst [vmem:[#allocation12_spill] sm:$0xff] %v4195_v41  ;;  %v4197_v38 = vpop.f32.mrb[113].mxu0 }
 0x5b4   :  { %4798 = vst [vmem:[#allocation13_spill] sm:$0xff] %v4197_v38  ;;  %v1476_v31 = vpop.f32.mrb[114].mxu0 }
 0x5b5   :  { %v1477_v55 = vpop.f32.mrb[115].mxu0 }
 0x5ba   :  { %v4199_v8 = vpop.f32.mrb[116].mxu0 }
 0x5bb   :  { %v4201_v23 = vpop.f32.mrb[117].mxu0 }
 0x5bc   :  { %v4203_v39 = vpop.f32.mrb[118].mxu0 }
 0x5bd   :  { %v4205_v33 = vpop.f32.mrb[119].mxu0 }
 0x5c2   :  { %v4207_v28 = vpop.f32.mrb[120].mxu0 }
 0x5c3   :  { %v2198_v56 = vmax.f32 %v4199_v8, %v4207_v28  ;;  %v4211_v52 = vpop.f32.mrb[121].mxu0 }
 0x5c4   :  { %v2219_v9 = vmax.f32 %v4201_v23, %v4211_v52  ;;  %v4215_v2 = vpop.f32.mrb[122].mxu0 }
 0x5c5   :  { %v2199_v29 = vmax.f32 %v4203_v39, %v4215_v2  ;;  %v4219_v14 = vpop.f32.mrb[123].mxu0 }
 0x5c6   :  { %v2220_v10 = vmax.f32 %v4205_v33, %v4219_v14 }
 0x5ca   :  { %v4223_v47 = vpop.f32.mrb[124].mxu0 }
 0x5cb   :  { %v2200_v60 = vmax.f32 %v2198_v56, %v4223_v47  ;;  %v4226_v5 = vpop.f32.mrb[125].mxu0 }
 0x5cc   :  { %v2221_v3 = vmax.f32 %v2219_v9, %v4226_v5  ;;  %v4229_v51 = vpop.f32.mrb[126].mxu0 }
 0x5cd   :  { %v2201_v35 = vmax.f32 %v2199_v29, %v4229_v51  ;;  %v4232_v7 = vpop.f32.mrb[127].mxu0 }
 0x5ce   :  { %v2222_v12 = vmax.f32 %v2220_v10, %v4232_v7 }
 0x5d2   :  { %v4235_v49 = vpop.f32.mrb[128].mxu0 }
 0x5d3   :  { %v2202_v19 = vmax.f32 %v2200_v60, %v4235_v49  ;;  %v4238_v11 = vpop.f32.mrb[129].mxu0 }
 0x5d4   :  { %v2223_v42 = vmax.f32 %v2221_v3, %v4238_v11  ;;  %v4241_v1 = vpop.f32.mrb[130].mxu0 }
 0x5d5   :  { %v2203_v25 = vmax.f32 %v2201_v35, %v4241_v1  ;;  %v4244_v63 = vpop.f32.mrb[131].mxu0 }
 0x5d6   :  { %v2224_v22 = vmax.f32 %v2222_v12, %v4244_v63 }
 0x5da   :  { %v4247_v62 = vpop.f32.mrb[132].mxu0 }
 0x5db   :  { %v2204_v26 = vmax.f32 %v2202_v19, %v4247_v62  ;;  %v4250_v13 = vpop.f32.mrb[133].mxu0 }
 0x5dc   :  { %v2225_v15 = vmax.f32 %v2223_v42, %v4250_v13  ;;  %v4253_v40 = vpop.f32.mrb[134].mxu0 }
 0x5dd   :  { %v2205_v46 = vmax.f32 %v2203_v25, %v4253_v40  ;;  %v4256_v45 = vpop.f32.mrb[135].mxu0 }
 0x5de   :  { %v2226_v43 = vmax.f32 %v2224_v22, %v4256_v45 }
 0x5e2   :  { %v4259_v48 = vpop.f32.mrb[136].mxu0 }
 0x5e3   :  { %v2206_v16 = vmax.f32 %v2204_v26, %v4259_v48  ;;  %v4262_v44 = vpop.f32.mrb[137].mxu0 }
 0x5e4   :  { %v2227_v36 = vmax.f32 %v2225_v15, %v4262_v44  ;;  %v4265_v17 = vpop.f32.mrb[138].mxu0 }
 0x5e5   :  { %v2207_v20 = vmax.f32 %v2205_v46, %v4265_v17  ;;  %v4268_v37 = vpop.f32.mrb[139].mxu0 }
 0x5e6   :  { %v2228_v21 = vmax.f32 %v2226_v43, %v4268_v37 }
 0x5ea   :  { %v4271_v54 = vpop.f32.mrb[140].mxu0 }
 0x5eb   :  { %v2208_v50 = vmax.f32 %v2206_v16, %v4271_v54  ;;  %v4274_v58 = vpop.f32.mrb[141].mxu0 }
 0x5ec   :  { %v2229_v24 = vmax.f32 %v2227_v36, %v4274_v58  ;;  %v4277_v30 = vpop.f32.mrb[142].mxu0 }
 0x5ed   :  { %v2209_v34 = vmax.f32 %v2207_v20, %v4277_v30  ;;  %v4280_v6 = vpop.f32.mrb[143].mxu0 }
 0x5ee   :  { %v2230_v4 = vmax.f32 %v2228_v21, %v4280_v6 }
 0x5f2   :  { %v4283_v32 = vpop.f32.mrb[144].mxu0 }
 0x5f3   :  { %v2210_v18 = vmax.f32 %v2208_v50, %v4283_v32  ;;  %v4286_v57 = vpop.f32.mrb[145].mxu0 }
 0x5f4   :  { %v2231_v61 = vmax.f32 %v2229_v24, %v4286_v57  ;;  %v1656_v0 = vpop.f32.mrb[146].mxu0 }
 0x5f5   :  { %v2211_v59 = vmax.f32 %v2209_v34, %v1656_v0  ;;  %v1658_v27 = vpop.f32.mrb[147].mxu0 }
 0x5f6   :  { %v2232_v31 = vmax.f32 %v2230_v4, %v1658_v27 }
 0x5f7   :  { %v2212_v55 = vmax.f32 %v2210_v18, %v2211_v59 }
 0x5f8   :  { %v2233_v56 = vmax.f32 %v2231_v61, %v2232_v31 }
 0x5f9   :  { %v2213_v9 = vrot.slane %v2212_v55, 4 }
 0x5fa   :  { %v2234_v29 = vrot.slane %v2233_v56, 4  ;;  %v4289_v10 = vpop.f32.mrb[148].mxu0 }
 0x5fb   :  { %v2214_v60 = vmax.f32 %v2212_v55, %v2213_v9  ;;  %v4291_v3 = vpop.f32.mrb[149].mxu0 }
 0x5fc   :  { %v2235_v35 = vmax.f32 %v2233_v56, %v2234_v29  ;;  %v4293_v12 = vpop.f32.mrb[150].mxu0  ;;  %v1837_v19 = vmax.f32 %v4289_v10, %v4291_v3 }
 0x5fd   :  { %v2215_v42 = vrot.slane %v2214_v60, 2  ;;  %v4297_v25 = vpop.f32.mrb[151].mxu0 }
 0x5fe   :  { %v2236_v22 = vrot.slane %v2235_v35, 2  ;;  %1838 = vmax.xlane.f32.xlu1 %v1837_v19  ;;  %v1840_v26 = vmax.f32 %v4293_v12, %v4297_v25 }
 0x5ff   :  { %v2216_v15 = vmax.f32 %v2214_v60, %v2215_v42 }
 0x600   :  { %v2237_v46 = vmax.f32 %v2235_v35, %v2236_v22 }
 0x601   :  { %v2217_v43 = vrot.slane %v2216_v15, 1 }
 0x602   :  { %v2238_v16 = vrot.slane %v2237_v46, 1  ;;  %1841 = vmax.xlane.f32.xlu1 %v1840_v26  ;;  %v4301_v36 = vpop.f32.mrb[152].mxu0 }
 0x603   :  { %v4303_v20 = vmax.f32 %v2216_v15, %v2217_v43  ;;  %v4305_v21 = vpop.f32.mrb[153].mxu0 }
 0x604   :  { %v4307_v50 = vmax.f32 %v2237_v46, %v2238_v16  ;;  %v4309_v24 = vpop.f32.mrb[154].mxu0  ;;  %v1843_v34 = vmax.f32 %v4301_v36, %v4305_v21 }
 0x605   :  { %v2270_v4 = vsub.f32 %v1656_v0, %v4303_v20  ;;  %v4314_v18 = vpop.f32.mrb[155].mxu0  ;;  %v2240_v61 = vsub.f32 %v4199_v8, %v4303_v20  ;;  %v2242_v59 = vsub.f32 %v4203_v39, %v4303_v20  ;;  %v2244_v31 = vsub.f32 %v4207_v28, %v4303_v20 }
 0x606   :  { %v2271_v55 = vsub.f32 %v1658_v27, %v4307_v50  ;;  %1844 = vmax.xlane.f32.xlu1 %v1843_v34  ;;  %v1846_v56 = vmax.f32 %v4309_v24, %v4314_v18  ;;  %v2241_v0 = vsub.f32 %v4201_v23, %v4307_v50  ;;  %v2243_v9 = vsub.f32 %v4205_v33, %v4307_v50 }
 0x607   :  { %v2332_v29 = vmul.f32 1.442695, %v2270_v4  ;;  %v2245_v8 = vsub.f32 %v4211_v52, %v4307_v50  ;;  %v2247_v28 = vsub.f32 %v4219_v14, %v4307_v50  ;;  %v2272_v27 = vmul.f32 1.442695, %v2240_v61 }
 0x608   :  { %v2334_v39 = vmul.f32 1.442695, %v2271_v55  ;;  %v2274_v60 = vmul.f32 1.442695, %v2241_v0  ;;  %v2278_v35 = vmul.f32 1.442695, %v2243_v9  ;;  %v2246_v19 = vsub.f32 %v4215_v2, %v4303_v20 }
 0x609   :  { %3104 = vpow2.f32 %v2332_v29  ;;  %v2276_v33 = vmul.f32 1.442695, %v2242_v59  ;;  %v2249_v42 = vsub.f32 %v4226_v5, %v4307_v50  ;;  %v2251_v52 = vsub.f32 %v4232_v7, %v4307_v50 }
 0x60a   :  { %3106 = vpow2.f32 %v2334_v39  ;;  %1847 = vmax.xlane.f32.xlu1 %v1846_v56  ;;  %v4335_v23 = vpop.f32.mrb[156].mxu0  ;;  %v2282_v14 = vmul.f32 1.442695, %v2245_v8  ;;  %v2248_v26 = vsub.f32 %v4223_v47, %v4303_v20  ;;  %v2250_v2 = vsub.f32 %v4229_v51, %v4303_v20 }
 0x60b   :  { %v4341_v22 = vpop.f32.mrb[157].mxu0  ;;  %3108 = vpow2.f32 %v2274_v60  ;;  %v2286_v5 = vmul.f32 1.442695, %v2247_v28  ;;  %v2280_v7 = vmul.f32 1.442695, %v2244_v31  ;;  %v2253_v34 = vsub.f32 %v4238_v11, %v4307_v50 }
 0x60c   :  { %v4347_v15 = vpop.f32.mrb[158].mxu0  ;;  %v1849_v46 = vmax.f32 %v4335_v23, %v4341_v22  ;;  %3110 = vpow2.f32 %v2278_v35  ;;  %v2284_v16 = vmul.f32 1.442695, %v2246_v19  ;;  %v2255_v51 = vsub.f32 %v4244_v63, %v4307_v50 }
 0x60d   :  { %v4351_v43 = vpop.f32.mrb[159].mxu0  ;;  %3112 = vpow2.f32 %v2272_v27  ;;  %v2252_v4 = vsub.f32 %v4235_v49, %v4303_v20  ;;  %v2290_v61 = vmul.f32 1.442695, %v2249_v42  ;;  %v2254_v59 = vsub.f32 %v4241_v1, %v4303_v20 }
 0x60e   :  { %1850 = vmax.xlane.f32.xlu1 %v1849_v46  ;;  %v1852_v47 = vmax.f32 %v4347_v15, %v4351_v43  ;;  %3114 = vpow2.f32 %v2276_v33  ;;  %v2257_v31 = vsub.f32 %v4250_v13, %v4307_v50  ;;  %v2294_v11 = vmul.f32 1.442695, %v2251_v52 }
 0x60f   :  { %3116 = vpow2.f32 %v2282_v14  ;;  %v2259_v55 = vsub.f32 %v4256_v45, %v4307_v50  ;;  %v2288_v56 = vmul.f32 1.442695, %v2248_v26  ;;  %v2256_v63 = vsub.f32 %v4247_v62, %v4303_v20 }
 0x610   :  { %3118 = vpow2.f32 %v2286_v5  ;;  %v2292_v0 = vmul.f32 1.442695, %v2250_v2  ;;  %v2258_v1 = vsub.f32 %v4253_v40, %v4303_v20  ;;  %v2261_v13 = vsub.f32 %v4262_v44, %v4307_v50 }
 0x611   :  { %3120 = vpow2.f32 %v2280_v7  ;;  %v2298_v45 = vmul.f32 1.442695, %v2253_v34  ;;  %v2263_v62 = vsub.f32 %v4268_v37, %v4307_v50  ;;  %v2260_v8 = vsub.f32 %v4259_v48, %v4303_v20 }
 0x612   :  { %1853 = vmax.xlane.f32.xlu1 %v1852_v47  ;;  %v4369_v49 = vpop.f32.mrb[160].mxu0  ;;  %3122 = vpow2.f32 %v2284_v16  ;;  %v2302_v44 = vmul.f32 1.442695, %v2255_v51  ;;  %v2296_v27 = vmul.f32 1.442695, %v2252_v4  ;;  %v2262_v37 = vsub.f32 %v4265_v17, %v4303_v20 }
 0x613   :  { %v4375_v9 = vpop.eup %3104  ;;  %v4377_v29 = vpop.f32.mrb[161].mxu0  ;;  %3124 = vpow2.f32 %v2290_v61  ;;  %v2300_v19 = vmul.f32 1.442695, %v2254_v59  ;;  %v2265_v42 = vsub.f32 %v4274_v58, %v4307_v50  ;;  %v2267_v52 = vsub.f32 %v4280_v6, %v4307_v50 }
 0x614   :  { %v4383_v39 = vpop.eup %3106  ;;  %v4385_v60 = vpop.f32.mrb[162].mxu0  ;;  %v1855_v40 = vmax.f32 %v4369_v49, %v4377_v29  ;;  %3126 = vpow2.f32 %v2294_v11  ;;  %v2306_v2 = vmul.f32 1.442695, %v2257_v31  ;;  %v2264_v17 = vsub.f32 %v4271_v54, %v4303_v20 }
 0x615   :  { %v3109_v35 = vpop.eup %3108  ;;  %v4389_v28 = vpop.f32.mrb[163].mxu0  ;;  %3128 = vpow2.f32 %v2288_v56  ;;  %v2310_v5 = vmul.f32 1.442695, %v2259_v55  ;;  %v2266_v7 = vsub.f32 %v4277_v30, %v4303_v20  ;;  %v2304_v58 = vmul.f32 1.442695, %v2256_v63 }
 0x616   :  { %v3111_v33 = vpop.eup %3110  ;;  %1856 = vmax.xlane.f32.xlu1 %v1855_v40  ;;  %v1858_v48 = vmax.f32 %v4385_v60, %v4389_v28  ;;  %3130 = vpow2.f32 %v2292_v0  ;;  %v2269_v6 = vsub.f32 %v4286_v57, %v4307_v50  ;;  %v2308_v54 = vmul.f32 1.442695, %v2258_v1 }
 0x617   :  { %v3113_v14 = vpop.eup %3112  ;;  %v4399_v26 = vpack.c.bf16 %v3111_v33, %v3109_v35  ;;  %3132 = vpow2.f32 %v2298_v45  ;;  %v2268_v4 = vsub.f32 %v4283_v32, %v4303_v20  ;;  %v2314_v31 = vmul.f32 1.442695, %v2261_v13 }
 0x618   :  { %v3115_v46 = vpop.eup %3114  ;;  %3134 = vpow2.f32 %v2302_v44  ;;  %v2318_v50 = vmul.f32 1.442695, %v2263_v62  ;;  %v2312_v32 = vmul.f32 1.442695, %v2260_v8  ;;  %v2316_v13 = vmul.f32 1.442695, %v2262_v37 }
 0x619   :  { %v3117_v16 = vpop.eup %3116  ;;  %v4405_v34 = vpack.c.bf16 %v3115_v46, %v3113_v14  ;;  %3136 = vpow2.f32 %v2296_v27  ;;  %v2322_v44 = vmul.f32 1.442695, %v2265_v42  ;;  %v2326_v35 = vmul.f32 1.442695, %v2267_v52 }
 0x61a   :  { %v3119_v47 = vpop.eup %3118  ;;  %1859 = vmax.xlane.f32.xlu1 %v1858_v48  ;;  %v4409_v51 = vpop.f32.mrb[164].mxu0  ;;  %3138 = vpow2.f32 %v2300_v19  ;;  %v2320_v8 = vmul.f32 1.442695, %v2264_v17  ;;  %v2324_v14 = vmul.f32 1.442695, %v2266_v7 }
 0x61b   :  { %v3121_v61 = vpop.eup %3120  ;;  %v4413_v59 = vpop.f32.mrb[165].mxu0  ;;  %v4415_v30 = vpack.c.bf16 %v3119_v47, %v3117_v16  ;;  %3140 = vpow2.f32 %v2306_v2  ;;  %v2330_v42 = vmul.f32 1.442695, %v2269_v6  ;;  %v2328_v17 = vmul.f32 1.442695, %v2268_v4 }
 0x61c   :  { %v3123_v11 = vpop.eup %3122  ;;  %v4417_v55 = vpop.f32.mrb[166].mxu0  ;;  %v1861_v57 = vmax.f32 %v4409_v51, %v4413_v59  ;;  %3142 = vpow2.f32 %v2310_v5 }
 0x61d   :  { %v3125_v56 = vpop.eup %3124  ;;  %v4421_v63 = vpop.f32.mrb[167].mxu0  ;;  %v4423_v0 = vpack.c.bf16 %v3123_v11, %v3121_v61  ;;  %3144 = vpow2.f32 %v2304_v58 }
 0x61e   :  { %v3127_v20 = vpop.eup %3126  ;;  %1862 = vmax.xlane.f32.xlu1 %v1861_v57  ;;  %v1864_v1 = vmax.f32 %v4417_v55, %v4421_v63  ;;  %3146 = vpow2.f32 %v2308_v54 }
 0x61f   :  { %v3129_v45 = vpop.eup %3128  ;;  %v4427_v40 = vpack.c.bf16 %v3127_v20, %v3125_v56  ;;  %3148 = vpow2.f32 %v2314_v31 }
 0x620   :  { %v3131_v62 = vpop.eup %3130  ;;  %3150 = vpow2.f32 %v2318_v50 }
 0x621   :  { %v3133_v27 = vpop.eup %3132  ;;  %v4429_v19 = vpack.c.bf16 %v3131_v62, %v3129_v45  ;;  %3152 = vpow2.f32 %v2312_v32 }
 0x622   :  { %v3135_v33 = vpop.eup %3134  ;;  %1865 = vmax.xlane.f32.xlu1 %v1864_v1  ;;  %v4431_v48 = vpop.f32.mrb[168].mxu0  ;;  %3154 = vpow2.f32 %v2316_v13 }
 0x623   :  { %v3137_v37 = vpop.eup %3136  ;;  %v4433_v2 = vpop.f32.mrb[169].mxu0  ;;  %v4435_v46 = vpack.c.bf16 %v3135_v33, %v3133_v27  ;;  %3156 = vpow2.f32 %v2322_v44 }
 0x624   :  { %v3139_v5 = vpop.eup %3138  ;;  %v4437_v52 = vpop.f32.mrb[170].mxu0  ;;  %v1867_v16 = vmax.f32 %v4431_v48, %v4433_v2  ;;  %3158 = vpow2.f32 %v2326_v35 }
 0x625   :  { %v3141_v58 = vpop.eup %3140  ;;  %v4441_v47 = vpop.f32.mrb[171].mxu0  ;;  %v4443_v54 = vpack.c.bf16 %v3139_v5, %v3137_v37  ;;  %3160 = vpow2.f32 %v2320_v8 }
 0x626   :  { %v3143_v7 = vpop.eup %3142  ;;  %1868 = vmax.xlane.f32.xlu1 %v1867_v16  ;;  %v1870_v61 = vmax.f32 %v4437_v52, %v4441_v47  ;;  %3162 = vpow2.f32 %v2324_v14 }
 0x627   :  { %v3145_v6 = vpop.eup %3144  ;;  %v4447_v31 = vpack.c.bf16 %v3143_v7, %v3141_v58  ;;  %3164 = vpow2.f32 %v2330_v42 }
 0x628   :  { %v3147_v11 = vpop.eup %3146  ;;  %3166 = vpow2.f32 %v2328_v17 }
 0x629   :  { %v3149_v57 = vpop.eup %3148  ;;  %v4449_v4 = vpack.c.bf16 %v3147_v11, %v3145_v6 }
 0x62a   :  { %v3151_v50 = vpop.eup %3150  ;;  %1871 = vmax.xlane.f32.xlu1 %v1870_v61  ;;  %v4451_v56 = vpop.f32.mrb[172].mxu0 }
 0x62b   :  { %v3153_v32 = vpop.eup %3152  ;;  %v4453_v20 = vpop.f32.mrb[173].mxu0  ;;  %v4455_v1 = vpack.c.bf16 %v3151_v50, %v3149_v57 }
 0x62c   :  { %v3155_v13 = vpop.eup %3154  ;;  %v4457_v45 = vpop.f32.mrb[174].mxu0  ;;  %v1873_v44 = vmax.f32 %v4451_v56, %v4453_v20 }
 0x62d   :  { %v3157_v62 = vpop.eup %3156  ;;  %v4461_v35 = vpop.f32.mrb[175].mxu0  ;;  %v4463_v27 = vpack.c.bf16 %v3155_v13, %v3153_v32 }
 0x62e   :  { %v3159_v8 = vpop.eup %3158  ;;  %1874 = vmax.xlane.f32.xlu1 %v1873_v44  ;;  %v1876_v33 = vmax.f32 %v4457_v45, %v4461_v35 }
 0x62f   :  { %v3161_v14 = vpop.eup %3160  ;;  %v4467_v37 = vpack.c.bf16 %v3159_v8, %v3157_v62 }
 0x630   :  { %v3163_v42 = vpop.eup %3162 }
 0x631   :  { %v3165_v5 = vpop.eup %3164  ;;  %v4469_v16 = vpack.c.bf16 %v3163_v42, %v3161_v14 }
 0x632   :  { %v3167_v17 = vpop.eup %3166  ;;  %1877 = vmax.xlane.f32.xlu1 %v1876_v33  ;;  %v4471_v58 = vpop.f32.mrb[176].mxu0  ;;  %v4474_v7 = vpack.c.bf16 %v4383_v39, %v3165_v5 }
 0x633   :  { %v4476_v61 = vpop.f32.mrb[177].mxu0  ;;  %v4479_v6 = vpack.c.bf16 %v4375_v9, %v3167_v17 }
 0x634   :  { %v4481_v11 = vpop.f32.mrb[178].mxu0  ;;  %v1879_v57 = vmax.f32 %v4471_v58, %v4476_v61 }
 0x635   :  { %4799 = vst [vmem:[#allocation14_spill] sm:$0xff] %v4481_v11  ;;  %v4485_v50 = vpop.f32.mrb[179].mxu0 }
 0x636   :  { %4800 = vst [vmem:[#allocation15_spill] sm:$0xff] %v4485_v50  ;;  %1880 = vmax.xlane.f32.xlu1 %v1879_v57  ;;  %v1882_v32 = vmax.f32 %v4481_v11, %v4485_v50 }
 0x63a   :  { %1883 = vmax.xlane.f32.xlu1 %v1882_v32  ;;  %v1742_v13 = vpop.f32.mrb[180].mxu0 }
 0x63b   :  { %v1744_v39 = vpop.f32.mrb[181].mxu0 }
 0x63c   :  { %v1746_v44 = vpop.f32.mrb[182].mxu0 }
 0x63d   :  { %v1821_v62 = vpack.c.bf16 %v1746_v44, %v1742_v13  ;;  %v1748_v8 = vpop.f32.mrb[183].mxu0 }
 0x63e   :  { %v1822_v33 = vpack.c.bf16 %v1748_v8, %v1744_v39 }
 0x640   :  { %2061 = vmatprep.subr.bf16.mxu1 %v1822_v33 }
 0x641   :  { %2062 = vmatpush1.bf16.xpose.msra.mxu1 %v1821_v62 }
 0x642   :  { %v1752_v9 = vpop.f32.mrb[184].mxu0 }
 0x643   :  { %v1754_v14 = vpop.f32.mrb[185].mxu0 }
 0x644   :  { %v1756_v42 = vpop.f32.mrb[186].mxu0 }
 0x645   :  { %v1823_v5 = vpack.c.bf16 %v1756_v42, %v1752_v9  ;;  %v1758_v17 = vpop.f32.mrb[187].mxu0 }
 0x646   :  { %v1824_v38 = vpack.c.bf16 %v1758_v17, %v1754_v14 }
 0x648   :  { %2063 = vmatprep.subr.bf16.mxu1 %v1824_v38 }
 0x649   :  { %2064 = vmatpush1.bf16.xpose.msra.mxu1 %v1823_v5 }
 0x64a   :  { %v1762_v57 = vpop.f32.mrb[188].mxu0 }
 0x64b   :  { %v1764_v41 = vpop.f32.mrb[189].mxu0 }
 0x64c   :  { %v1766_v53 = vpop.f32.mrb[190].mxu0 }
 0x64d   :  { %v1825_v32 = vpack.c.bf16 %v1766_v53, %v1762_v57  ;;  %v1768_v50 = vpop.f32.mrb[191].mxu0 }
 0x64e   :  { %v1826_v11 = vpack.c.bf16 %v1768_v50, %v1764_v41 }
 0x650   :  { %2065 = vmatprep.subr.bf16.mxu1 %v1826_v11 }
 0x651   :  { %2066 = vmatpush1.bf16.xpose.msra.mxu1 %v1825_v32 }
 0x652   :  { %v1772_v13 = vpop.f32.mrb[192].mxu0 }
 0x653   :  { %v1774_v39 = vpop.f32.mrb[193].mxu0 }
 0x654   :  { %v1776_v44 = vpop.f32.mrb[194].mxu0 }
 0x655   :  { %v1827_v62 = vpack.c.bf16 %v1776_v44, %v1772_v13  ;;  %v1778_v8 = vpop.f32.mrb[195].mxu0 }
 0x656   :  { %v1828_v33 = vpack.c.bf16 %v1778_v8, %v1774_v39 }
 0x658   :  { %2067 = vmatprep.subr.bf16.mxu1 %v1828_v33 }
 0x659   :  { %2068 = vmatpush1.bf16.xpose.msra.mxu1 %v1827_v62 }
 0x65a   :  { %v1782_v9 = vpop.f32.mrb[196].mxu0 }
 0x65b   :  { %v1784_v14 = vpop.f32.mrb[197].mxu0 }
 0x65c   :  { %v1786_v38 = vpop.f32.mrb[198].mxu0 }
 0x65d   :  { %v1829_v42 = vpack.c.bf16 %v1786_v38, %v1782_v9  ;;  %v1788_v5 = vpop.f32.mrb[199].mxu0 }
 0x65e   :  { %v1830_v17 = vpack.c.bf16 %v1788_v5, %v1784_v14 }
 0x660   :  { %2069 = vmatprep.subr.bf16.mxu1 %v1830_v17 }
 0x661   :  { %2070 = vmatpush1.bf16.xpose.msra.mxu1 %v1829_v42 }
 0x662   :  { %v1792_v53 = vpop.f32.mrb[200].mxu0 }
 0x663   :  { %v1794_v41 = vpop.f32.mrb[201].mxu0 }
 0x664   :  { %v1796_v11 = vpop.f32.mrb[202].mxu0 }
 0x665   :  { %v1831_v50 = vpack.c.bf16 %v1796_v11, %v1792_v53  ;;  %v1798_v57 = vpop.f32.mrb[203].mxu0 }
 0x666   :  { %v1832_v32 = vpack.c.bf16 %v1798_v57, %v1794_v41 }
 0x668   :  { %2071 = vmatprep.subr.bf16.mxu1 %v1832_v32 }
 0x669   :  { %2072 = vmatpush1.bf16.xpose.msra.mxu1 %v1831_v50 }
 0x66a   :  { %v1802_v13 = vpop.f32.mrb[204].mxu0 }
 0x66b   :  { %v1804_v39 = vpop.f32.mrb[205].mxu0 }
 0x66c   :  { %v1806_v44 = vpop.f32.mrb[206].mxu0 }
 0x66d   :  { %v1833_v62 = vpack.c.bf16 %v1806_v44, %v1802_v13  ;;  %v1808_v8 = vpop.f32.mrb[207].mxu0 }
 0x66e   :  { %v1834_v33 = vpack.c.bf16 %v1808_v8, %v1804_v39 }
 0x670   :  { %2073 = vmatprep.subr.bf16.mxu1 %v1834_v33 }
 0x671   :  { %2074 = vmatpush1.bf16.xpose.msra.mxu1 %v1833_v62 }
 0x672   :  { %v1812_v9 = vpop.f32.mrb[208].mxu0 }
 0x673   :  { %v1814_v14 = vpop.f32.mrb[209].mxu0 }
 0x674   :  { %v1816_v38 = vpop.f32.mrb[210].mxu0 }
 0x675   :  { %v1835_v42 = vpack.c.bf16 %v1816_v38, %v1812_v9  ;;  %v1818_v5 = vpop.f32.mrb[211].mxu0 }
 0x676   :  { %v1836_v17 = vpack.c.bf16 %v1818_v5, %v1814_v14 }
 0x678   :  { %2075 = vmatprep.subr.bf16.mxu1 %v1836_v17 }
 0x679   :  { %2076 = vmatpush1.bf16.xpose.msra.mxu1 %v1835_v42 }
 0x67a   :  { %2352 = vmatprep.subr.bf16.mxu1 %v4399_v26 }
 0x68b   :  { %v1839_v53 = vpop.xlane.xlu1 %1838 }
 0x68c   :  { %v1885_v41 = vsub.f32 %v4289_v10, %v1839_v53  ;;  %v1886_v11 = vsub.f32 %v4291_v3, %v1839_v53 }
 0x68e   :  { %v1917_v50 = vmul.f32 1.442695, %v1885_v41  ;;  %v1919_v57 = vmul.f32 1.442695, %v1886_v11 }
 0x68f   :  { %v1842_v32 = vpop.xlane.xlu1 %1841 }
 0x690   :  { %3168 = vpow2.f32 %v1917_v50  ;;  %v1887_v13 = vsub.f32 %v4293_v12, %v1842_v32  ;;  %v1888_v39 = vsub.f32 %v4297_v25, %v1842_v32 }
 0x691   :  { %3170 = vpow2.f32 %v1919_v57 }
 0x692   :  { %v1921_v44 = vmul.f32 1.442695, %v1887_v13  ;;  %v1923_v62 = vmul.f32 1.442695, %v1888_v39 }
 0x693   :  { %v1845_v8 = vpop.xlane.xlu1 %1844 }
 0x694   :  { %3172 = vpow2.f32 %v1921_v44  ;;  %v1889_v33 = vsub.f32 %v4301_v36, %v1845_v8  ;;  %v1890_v9 = vsub.f32 %v4305_v21, %v1845_v8 }
 0x695   :  { %3174 = vpow2.f32 %v1923_v62 }
 0x696   :  { %v1925_v10 = vmul.f32 1.442695, %v1889_v33  ;;  %v1927_v3 = vmul.f32 1.442695, %v1890_v9 }
 0x697   :  { %v1848_v14 = vpop.xlane.xlu1 %1847 }
 0x698   :  { %3176 = vpow2.f32 %v1925_v10  ;;  %v1891_v38 = vsub.f32 %v4309_v24, %v1848_v14  ;;  %v1892_v12 = vsub.f32 %v4314_v18, %v1848_v14 }
 0x699   :  { %3178 = vpow2.f32 %v1927_v3 }
 0x69a   :  { %v3169_v25 = vpop.eup %3168  ;;  %v1929_v42 = vmul.f32 1.442695, %v1891_v38  ;;  %v1931_v5 = vmul.f32 1.442695, %v1892_v12 }
 0x69b   :  { %v3171_v17 = vpop.eup %3170  ;;  %v1851_v53 = vpop.xlane.xlu1 %1850 }
 0x69c   :  { %3180 = vpow2.f32 %v1929_v42  ;;  %v1893_v36 = vsub.f32 %v4335_v23, %v1851_v53  ;;  %v1894_v21 = vsub.f32 %v4341_v22, %v1851_v53  ;;  %v1997_v41 = vadd.f32 %v3171_v17, %v3169_v25 }
 0x69d   :  { %3182 = vpow2.f32 %v1931_v5 }
 0x69e   :  { %v3173_v11 = vpop.eup %3172  ;;  %v1933_v50 = vmul.f32 1.442695, %v1893_v36  ;;  %v1935_v57 = vmul.f32 1.442695, %v1894_v21  ;;  %1998 = vadd.xlane.f32.xlu1 %v1997_v41 }
 0x69f   :  { %v3175_v24 = vpop.eup %3174  ;;  %v1854_v32 = vpop.xlane.xlu1 %1853  ;;  %v1981_v18 = vpack.c.bf16 %v3173_v11, %v3169_v25 }
 0x6a0   :  { %3184 = vpow2.f32 %v1933_v50  ;;  %v1895_v13 = vsub.f32 %v4347_v15, %v1854_v32  ;;  %v1896_v39 = vsub.f32 %v4351_v43, %v1854_v32  ;;  %v1982_v44 = vpack.c.bf16 %v3175_v24, %v3171_v17 }
 0x6a1   :  { %3186 = vpow2.f32 %v1935_v57  ;;  %v2000_v62 = vadd.f32 %v3175_v24, %v3173_v11 }
 0x6a2   :  { %v3177_v23 = vpop.eup %3176  ;;  %v1937_v8 = vmul.f32 1.442695, %v1895_v13  ;;  %v1939_v22 = vmul.f32 1.442695, %v1896_v39  ;;  %2093 = vmatprep.mubr.bf16.mxu1 %v1982_v44 }
 0x6a3   :  { %v3179_v33 = vpop.eup %3178  ;;  %2001 = vadd.xlane.f32.xlu1 %v2000_v62  ;;  %2094 = vmatmul.mubr.bf16.vlgmr.msra.gmra.mrb[80].mxu1 %v1981_v18  ;;  %v1857_v9 = vpop.xlane.xlu1 %1856 }
 0x6a4   :  { %3188 = vpow2.f32 %v1937_v8  ;;  %2353 = vmatpush1.bf16.msra.mxu1 %v4405_v34  ;;  %v1897_v10 = vsub.f32 %v4369_v49, %v1857_v9  ;;  %v1898_v15 = vsub.f32 %v4377_v29, %v1857_v9  ;;  %v2003_v3 = vadd.f32 %v3179_v33, %v3177_v23 }
 0x6a5   :  { %3190 = vpow2.f32 %v1939_v22  ;;  %2354 = vmatprep.subr.bf16.mxu1 %v4415_v30 }
 0x6a6   :  { %v3181_v43 = vpop.eup %3180  ;;  %v1941_v14 = vmul.f32 1.442695, %v1897_v10  ;;  %v1943_v38 = vmul.f32 1.442695, %v1898_v15  ;;  %2004 = vadd.xlane.f32.xlu0 %v2003_v3 }
 0x6a7   :  { %v3183_v12 = vpop.eup %3182  ;;  %v1860_v25 = vpop.xlane.xlu1 %1859  ;;  %v1983_v42 = vpack.c.bf16 %v3181_v43, %v3177_v23 }
 0x6a8   :  { %3192 = vpow2.f32 %v1941_v14  ;;  %2355 = vmatpush1.bf16.msra.mxu1 %v4423_v0  ;;  %v1899_v5 = vsub.f32 %v4385_v60, %v1860_v25  ;;  %v1900_v49 = vsub.f32 %v4389_v28, %v1860_v25  ;;  %v2006_v17 = vadd.f32 %v3183_v12, %v3181_v43 }
 0x6a9   :  { %3194 = vpow2.f32 %v1943_v38  ;;  %2356 = vmatprep.subr.bf16.mxu1 %v4427_v40  ;;  %v1984_v29 = vpack.c.bf16 %v3183_v12, %v3179_v33 }
 0x6aa   :  { %v3185_v53 = vpop.eup %3184  ;;  %v1945_v36 = vmul.f32 1.442695, %v1899_v5  ;;  %v1947_v21 = vmul.f32 1.442695, %v1900_v49  ;;  %2007 = vadd.xlane.f32.xlu1 %v2006_v17 }
 0x6ab   :  { %v3187_v41 = vpop.eup %3186  ;;  %2101 = vmatprep.mubr.bf16.mxu1 %v1984_v29  ;;  %v1863_v11 = vpop.xlane.xlu1 %1862 }
 0x6ac   :  { %3196 = vpow2.f32 %v1945_v36  ;;  %2102 = vmatmul.mubr.bf16.gmra.mrb[84].mxu1 %v1983_v42  ;;  %v1901_v50 = vsub.f32 %v4409_v51, %v1863_v11  ;;  %v1902_v60 = vsub.f32 %v4413_v59, %v1863_v11  ;;  %v2009_v57 = vadd.f32 %v3187_v41, %v3185_v53 }
 0x6ad   :  { %3198 = vpow2.f32 %v1947_v21  ;;  %2357 = vmatpush1.bf16.msra.mxu1 %v4429_v19 }
 0x6ae   :  { %v3189_v28 = vpop.eup %3188  ;;  %v1949_v24 = vmul.f32 1.442695, %v1901_v50  ;;  %v1951_v32 = vmul.f32 1.442695, %v1902_v60  ;;  %2358 = vmatprep.subr.bf16.mxu1 %v4435_v46  ;;  %2010 = vadd.xlane.f32.xlu1 %v2009_v57 }
 0x6af   :  { %v3191_v18 = vpop.eup %3190  ;;  %v1866_v13 = vpop.xlane.xlu1 %1865  ;;  %v1985_v39 = vpack.c.bf16 %v3189_v28, %v3185_v53 }
 0x6b0   :  { %3200 = vpow2.f32 %v1949_v24  ;;  %v1903_v44 = vsub.f32 %v4417_v55, %v1866_v13  ;;  %v1904_v51 = vsub.f32 %v4421_v63, %v1866_v13  ;;  %v2012_v62 = vadd.f32 %v3191_v18, %v3189_v28 }
 0x6b1   :  { %3202 = vpow2.f32 %v1951_v32  ;;  %2359 = vmatpush1.bf16.msra.mxu1 %v4443_v54  ;;  %v1986_v59 = vpack.c.bf16 %v3191_v18, %v3187_v41 }
 0x6b2   :  { %v3193_v23 = vpop.eup %3192  ;;  %v1953_v8 = vmul.f32 1.442695, %v1903_v44  ;;  %v1955_v22 = vmul.f32 1.442695, %v1904_v51  ;;  %2360 = vmatprep.subr.bf16.mxu1 %v4447_v31  ;;  %2013 = vadd.xlane.f32.xlu1 %v2012_v62 }
 0x6b3   :  { %v3195_v33 = vpop.eup %3194  ;;  %2109 = vmatprep.mubr.bf16.mxu1 %v1986_v59  ;;  %v1869_v9 = vpop.xlane.xlu1 %1868 }
 0x6b4   :  { %3204 = vpow2.f32 %v1953_v8  ;;  %2110 = vmatmul.mubr.bf16.gmra.mrb[88].mxu1 %v1985_v39  ;;  %v1905_v55 = vsub.f32 %v4431_v48, %v1869_v9  ;;  %v1906_v63 = vsub.f32 %v4433_v2, %v1869_v9  ;;  %v2015_v10 = vadd.f32 %v3195_v33, %v3193_v23 }
 0x6b5   :  { %3206 = vpow2.f32 %v1955_v22  ;;  %2361 = vmatpush1.bf16.msra.mxu1 %v4449_v4 }
 0x6b6   :  { %v3197_v15 = vpop.eup %3196  ;;  %v1957_v3 = vmul.f32 1.442695, %v1905_v55  ;;  %v1959_v43 = vmul.f32 1.442695, %v1906_v63  ;;  %2362 = vmatprep.subr.bf16.mxu1 %v4455_v1  ;;  %2016 = vadd.xlane.f32.xlu0 %v2015_v10  ;;  %v4802_v55 = vld [vmem:[#allocation15_spill] sm:$0xff] }
 0x6b7   :  { %v3199_v14 = vpop.eup %3198  ;;  %v1872_v38 = vpop.xlane.xlu1 %1871  ;;  %v1987_v12 = vpack.c.bf16 %v3197_v15, %v3193_v23 }
 0x6b8   :  { %3208 = vpow2.f32 %v1957_v3  ;;  %v1907_v25 = vsub.f32 %v4437_v52, %v1872_v38  ;;  %v1908_v48 = vsub.f32 %v4441_v47, %v1872_v38  ;;  %v2018_v42 = vadd.f32 %v3199_v14, %v3197_v15 }
 0x6b9   :  { %3210 = vpow2.f32 %v1959_v43  ;;  %2363 = vmatpush1.bf16.msra.mxu1 %v4463_v27  ;;  %v1988_v2 = vpack.c.bf16 %v3199_v14, %v3195_v33 }
 0x6ba   :  { %v3201_v5 = vpop.eup %3200  ;;  %v1961_v49 = vmul.f32 1.442695, %v1907_v25  ;;  %v1963_v17 = vmul.f32 1.442695, %v1908_v48  ;;  %2364 = vmatprep.subr.bf16.mxu1 %v4467_v37  ;;  %2019 = vadd.xlane.f32.xlu1 %v2018_v42 }
 0x6bb   :  { %v3203_v29 = vpop.eup %3202  ;;  %2117 = vmatprep.mubr.bf16.mxu1 %v1988_v2  ;;  %v1875_v53 = vpop.xlane.xlu1 %1874 }
 0x6bc   :  { %3212 = vpow2.f32 %v1961_v49  ;;  %2118 = vmatmul.mubr.bf16.gmra.mrb[92].mxu1 %v1987_v12  ;;  %v1909_v52 = vsub.f32 %v4451_v56, %v1875_v53  ;;  %v1910_v47 = vsub.f32 %v4453_v20, %v1875_v53  ;;  %v2021_v36 = vadd.f32 %v3203_v29, %v3201_v5 }
 0x6bd   :  { %3214 = vpow2.f32 %v1963_v17  ;;  %2365 = vmatpush1.bf16.msra.mxu1 %v4469_v16 }
 0x6be   :  { %v3205_v21 = vpop.eup %3204  ;;  %v1965_v41 = vmul.f32 1.442695, %v1909_v52  ;;  %v1967_v11 = vmul.f32 1.442695, %v1910_v47  ;;  %2366 = vmatprep.subr.bf16.mxu1 %v4474_v7  ;;  %2022 = vadd.xlane.f32.xlu0 %v2021_v36  ;;  %v4803_v36 = vmov 0  }
 0x6bf   :  { %v3207_v50 = vpop.eup %3206  ;;  %v1878_v60 = vpop.xlane.xlu1 %1877  ;;  %v1989_v57 = vpack.c.bf16 %v3205_v21, %v3201_v5 }
 0x6c0   :  { %3216 = vpow2.f32 %v1965_v41  ;;  %v1911_v28 = vsub.f32 %v4457_v45, %v1878_v60  ;;  %v1912_v56 = vsub.f32 %v4461_v35, %v1878_v60  ;;  %v2024_v24 = vadd.f32 %v3207_v50, %v3205_v21  ;;  %v3336_v21 = vld [vmem:[#allocation5] sm:$0xff]   ;;  %v71_v41 = vld [vmem:[%s4717_s3] sm:$0xf] }
 0x6c1   :  { %3218 = vpow2.f32 %v1967_v11  ;;  %2367 = vmatpush1.bf16.msra.mxu1 %v4479_v6  ;;  %v1990_v20 = vpack.c.bf16 %v3207_v50, %v3203_v29  ;;  %v72_v11 = vld [vmem:[%s4718_s4] sm:$0xf]  ;;  %v3337_v50 = vld [vmem:[#allocation5 + $0x8] sm:$0xff]  }
 0x6c2   :  { %v3209_v32 = vpop.eup %3208  ;;  %v1969_v18 = vmul.f32 1.442695, %v1911_v28  ;;  %v1971_v13 = vmul.f32 1.442695, %v1912_v56  ;;  %2481 = vmatprep.subr.bf16.mxu1 %v4399_v26  ;;  %2025 = vadd.xlane.f32.xlu1 %v2024_v24  ;;  %v4801_v26 = vld [vmem:[#allocation14_spill] sm:$0xff]  ;;  %v4804_v28 = vld [vmem:[#allocation12_spill] sm:$0xff] }
 0x6c3   :  { %v3211_v39 = vpop.eup %3210  ;;  %2125 = vmatprep.mubr.bf16.mxu1 %v1990_v20  ;;  %v1881_v44 = vpop.xlane.xlu1 %1880  ;;  %v4805_v24 = vld [vmem:[#allocation13_spill] sm:$0xff] }
 0x6c4   :  { %3220 = vpow2.f32 %v1969_v18  ;;  %2126 = vmatmul.mubr.bf16.gmra.mrb[96].mxu1 %v1989_v57  ;;  %v1913_v45 = vsub.f32 %v4471_v58, %v1881_v44  ;;  %v1914_v35 = vsub.f32 %v4476_v61, %v1881_v44  ;;  %v2027_v51 = vadd.f32 %v3211_v39, %v3209_v32 }
 0x6c5   :  { %3222 = vpow2.f32 %v1971_v13 }
 0x6c6   :  { %v3213_v62 = vpop.eup %3212  ;;  %v1973_v59 = vmul.f32 1.442695, %v1913_v45  ;;  %v1975_v23 = vmul.f32 1.442695, %v1914_v35  ;;  %2028 = vadd.xlane.f32.xlu0 %v2027_v51 }
 0x6c7   :  { %v3215_v8 = vpop.eup %3214  ;;  %v1884_v22 = vpop.xlane.xlu1 %1883  ;;  %v1991_v33 = vpack.c.bf16 %v3213_v62, %v3209_v32 }
 0x6c8   :  { %3224 = vpow2.f32 %v1973_v59  ;;  %v1915_v9 = vsub.f32 %v4801_v26, %v1884_v22  ;;  %v1916_v63 = vsub.f32 %v4802_v55, %v1884_v22  ;;  %v2030_v10 = vadd.f32 %v3215_v8, %v3213_v62 }
 0x6c9   :  { %3226 = vpow2.f32 %v1975_v23  ;;  %v1992_v15 = vpack.c.bf16 %v3215_v8, %v3211_v39 }
 0x6ca   :  { %v3217_v58 = vpop.eup %3216  ;;  %v1977_v3 = vmul.f32 1.442695, %v1915_v9  ;;  %v1979_v61 = vmul.f32 1.442695, %v1916_v63  ;;  %2031 = vadd.xlane.f32.xlu1 %v2030_v10 }
 0x6cb   :  { %v3219_v43 = vpop.eup %3218  ;;  %2133 = vmatprep.mubr.bf16.mxu1 %v1992_v15 }
 0x6cc   :  { %3228 = vpow2.f32 %v1977_v3  ;;  %2134 = vmatmul.mubr.bf16.gmra.mrb[100].mxu1 %v1991_v33  ;;  %v2033_v14 = vadd.f32 %v3219_v43, %v3217_v58 }
 0x6cd   :  { %3230 = vpow2.f32 %v1979_v61 }
 0x6ce   :  { %v3221_v38 = vpop.eup %3220  ;;  %2034 = vadd.xlane.f32.xlu0 %v2033_v14 }
 0x6cf   :  { %v3223_v12 = vpop.eup %3222  ;;  %v1993_v25 = vpack.c.bf16 %v3221_v38, %v3217_v58 }
 0x6d0   :  { %v2036_v48 = vadd.f32 %v3223_v12, %v3221_v38  ;;  %v1994_v42 = vpack.c.bf16 %v3223_v12, %v3219_v43  ;;  %v3344_v43 = vld [vmem:[#allocation7] sm:$0xff]  ;;  %v3345_v38 = vld [vmem:[#allocation7 + $0x8] sm:$0xff] }
 0x6d2   :  { %v3225_v2 = vpop.eup %3224  ;;  %2037 = vadd.xlane.f32.xlu1 %v2036_v48  ;;  %2141 = vmatprep.mubr.bf16.mxu1 %v1994_v42 }
 0x6d3   :  { %v3227_v5 = vpop.eup %3226 }
 0x6d4   :  { %2142 = vmatmul.mubr.bf16.gmra.mrb[104].mxu1 %v1993_v25  ;;  %v2039_v49 = vadd.f32 %v3227_v5, %v3225_v2 }
 0x6d6   :  { %v3229_v17 = vpop.eup %3228  ;;  %2040 = vadd.xlane.f32.xlu0 %v2039_v49 }
 0x6d7   :  { %v3231_v29 = vpop.eup %3230  ;;  %v1995_v53 = vpack.c.bf16 %v3229_v17, %v3225_v2 }
 0x6d8   :  { %v2042_v52 = vadd.f32 %v3231_v29, %v3229_v17  ;;  %v1996_v47 = vpack.c.bf16 %v3231_v29, %v3227_v5 }
 0x6da   :  { %2043 = vadd.xlane.f32.xlu1 %v2042_v52  ;;  %2149 = vmatprep.mubr.bf16.mxu1 %v1996_v47 }
 0x6dc   :  { %2150 = vmatmul.mubr.bf16.gmra.mrb[108].mxu1 %v1995_v53 }
 0x6dd   :  { %2384 = vmatprep.mubr.bf16.mxu1 %v4803_v36 }
 0x6e4   :  { %2385 = vmatmul.mubr.bf16.vlgmr.msra.gmra.mrb[112].mxu1 %v3336_v21 }
 0x6e5   :  { %2482 = vmatpush1.bf16.msra.mxu1 %v4405_v34  ;;  %2394 = vmatprep.mubr.bf16.mxu1 %v4803_v36  ;;  %v3338_v34 = vld [vmem:[#allocation5 + $0x10] sm:$0xff]  }
 0x6e6   :  { %2483 = vmatprep.subr.bf16.mxu1 %v4415_v30  ;;  %v3339_v30 = vld [vmem:[#allocation5 + $0x18] sm:$0xff]  }
 0x6e9   :  { %2484 = vmatpush1.bf16.msra.mxu1 %v4423_v0  ;;  %v3340_v0 = vld [vmem:[#allocation5 + $0x20] sm:$0xff]  }
 0x6ea   :  { %2485 = vmatprep.subr.bf16.mxu1 %v4427_v40  ;;  %v3341_v40 = vld [vmem:[#allocation5 + $0x28] sm:$0xff]  }
 0x6eb   :  { %1435 = vperm.xlu1 %2867, %v71_v41  }
 0x6ec   :  { %2395 = vmatmul.mubr.bf16.gmra.mrb[116].mxu1 %v3337_v50 }
 0x6ed   :  { %2486 = vmatpush1.bf16.msra.mxu1 %v4429_v19  ;;  %2404 = vmatprep.mubr.bf16.mxu1 %v4803_v36  ;;  %v3342_v19 = vld [vmem:[#allocation5 + $0x30] sm:$0xff]  }
 0x6ee   :  { %2487 = vmatprep.subr.bf16.mxu1 %v4435_v46  ;;  %v3343_v46 = vld [vmem:[#allocation5 + $0x38] sm:$0xff]  }
 0x6ef   :  { %1525 = vperm.xlu1 %2867, %v72_v11  }
 0x6f1   :  { %2488 = vmatpush1.bf16.msra.mxu1 %v4443_v54 }
 0x6f2   :  { %2489 = vmatprep.subr.bf16.mxu1 %v4447_v31 }
 0x6f4   :  { %2405 = vmatmul.mubr.bf16.gmra.mrb[120].mxu1 %v3338_v34 }
 0x6f5   :  { %2490 = vmatpush1.bf16.msra.mxu1 %v4449_v4  ;;  %2414 = vmatprep.mubr.bf16.mxu1 %v4803_v36 }
 0x6f6   :  { %2491 = vmatprep.subr.bf16.mxu1 %v4455_v1 }
 0x6f9   :  { %2492 = vmatpush1.bf16.msra.mxu1 %v4463_v27 }
 0x6fa   :  { %2493 = vmatprep.subr.bf16.mxu1 %v4467_v37 }
 0x6fc   :  { %2415 = vmatmul.mubr.bf16.gmra.mrb[124].mxu1 %v3339_v30 }
 0x6fd   :  { %2494 = vmatpush1.bf16.msra.mxu1 %v4469_v16  ;;  %2424 = vmatprep.mubr.bf16.mxu1 %v4803_v36 }
 0x6fe   :  { %2495 = vmatprep.subr.bf16.mxu1 %v4474_v7 }
 0x701   :  { %2496 = vmatpush1.bf16.msra.mxu1 %v4479_v6 }
 0x704   :  { %2425 = vmatmul.mubr.bf16.gmra.mrb[128].mxu1 %v3340_v0 }
 0x705   :  { %2434 = vmatprep.mubr.bf16.mxu1 %v4803_v36 }
 0x70c   :  { %2435 = vmatmul.mubr.bf16.gmra.mrb[132].mxu1 %v3341_v40 }
 0x70d   :  { %2444 = vmatprep.mubr.bf16.mxu1 %v4803_v36 }
 0x714   :  { %2445 = vmatmul.mubr.bf16.gmra.mrb[136].mxu1 %v3342_v19 }
 0x715   :  { %2454 = vmatprep.mubr.bf16.mxu1 %v4803_v36 }
 0x71c   :  { %2455 = vmatmul.mubr.bf16.gmra.mrb[140].mxu1 %v3343_v46  ;;  %v3346_v46 = vld [vmem:[#allocation7 + $0x10] sm:$0xff] }
 0x71d   :  { %2513 = vmatprep.mubr.bf16.mxu1 %v4803_v36 }
 0x72b   :  { %v1999_v54 = vpop.xlane.xlu1 %1998 }
 0x72c   :  { %3232 = vrcp.f32 %v1999_v54 }
 0x730   :  { %v2002_v31 = vpop.xlane.xlu1 %2001 }
 0x731   :  { %3234 = vrcp.f32 %v2002_v31  ;;  %v3347_v31 = vld [vmem:[#allocation7 + $0x18] sm:$0xff] }
 0x733   :  { %v2005_v35 = vpop.xlane.xlu0 %2004 }
 0x734   :  { %3236 = vrcp.f32 %v2005_v35 }
 0x736   :  { %v3233_v8 = vpop.eup %3232 }
 0x737   :  { %v2008_v4 = vpop.xlane.xlu1 %2007 }
 0x738   :  { %3238 = vrcp.f32 %v2008_v4 }
 0x73b   :  { %v2011_v1 = vpop.xlane.xlu1 %2010  ;;  %v3235_v63 = vpop.eup %3234 }
 0x73c   :  { %3240 = vrcp.f32 %v2011_v1 }
 0x73e   :  { %v3237_v49 = vpop.eup %3236 }
 0x73f   :  { %v2014_v27 = vpop.xlane.xlu1 %2013 }
 0x740   :  { %3242 = vrcp.f32 %v2014_v27 }
 0x742   :  { %v3239_v21 = vpop.eup %3238 }
 0x743   :  { %v2017_v34 = vpop.xlane.xlu0 %2016 }
 0x744   :  { %3244 = vrcp.f32 %v2017_v34 }
 0x747   :  { %v4568_v37 = vpop.xlane.xlu1 %2019 }
 0x748   :  { %3246 = vrcp.f32 %v4568_v37 }
 0x74f   :  { %v4570_v16 = vpop.xlane.xlu1 %2025 }
 0x757   :  { %v4572_v7 = vpop.xlane.xlu1 %2031 }
 0x75f   :  { %v4574_v6 = vpop.xlane.xlu1 %2037 }
 0x767   :  { %v4576_v60 = vpop.xlane.xlu1 %2043 }
 0x76b   :  { %v4578_v57 = vpop.permute.xlu1 %1435 }
 0x76c   :  { %v1473_v56 = vadd.f32 %v4804_v28, %v4578_v57  ;;  %v1475_v20 = vadd.f32 %v4805_v24, %v4578_v57 }
 0x76e   :  { %v1480_v32 = vsel %vm1479_vm2, %v1473_v56, 0.0  ;;  %v1487_v18 = vsel %vm1479_vm2, %v1475_v20, 0.0 }
 0x76f   :  { %v1481_v13 = vrot.slane %v1480_v32, 4  ;;  %v1488_v39 = vrot.slane %v1487_v18, 4 }
 0x771   :  { %v1482_v44 = vadd.f32 %v1481_v13, %v1480_v32  ;;  %v1489_v45 = vadd.f32 %v1488_v39, %v1487_v18 }
 0x773   :  { %v1483_v51 = vrot.slane %v1482_v44, 2  ;;  %v1490_v62 = vrot.slane %v1489_v45, 2 }
 0x775   :  { %v1484_v59 = vadd.f32 %v1483_v51, %v1482_v44  ;;  %v1491_v23 = vadd.f32 %v1490_v62, %v1489_v45  ;;  %v2023_v51 = vpop.xlane.xlu0 %2022 }
 0x776   :  { %v2095_v22 = vpop.f32.mrb[80].mxu1  ;;  %3248 = vrcp.f32 %v2023_v51 }
 0x777   :  { %v2158_v33 = vmul.f32 %v3233_v8, %v2095_v22  ;;  %v2097_v26 = vpop.f32.mrb[81].mxu1  ;;  %v1485_v9 = vrot.slane %v1484_v59, 1  ;;  %v1492_v55 = vrot.slane %v1491_v23, 1  ;;  %v3348_v22 = vld [vmem:[#allocation7 + $0x20] sm:$0xff]  ;;  %3250 = vrcp.f32 %v4570_v16 }
 0x778   :  { %v2098_v10 = vpop.f32.mrb[82].mxu1  ;;  %v3349_v26 = vld [vmem:[#allocation7 + $0x28] sm:$0xff] }
 0x779   :  { %v2159_v15 = vmul.f32 %v3235_v63, %v2098_v10  ;;  %v2100_v58 = vpop.f32.mrb[83].mxu1  ;;  %v1486_v3 = vadd.f32 %v1485_v9, %v1484_v59  ;;  %v1493_v61 = vadd.f32 %v1492_v55, %v1491_v23  ;;  %v2174_v14 = vmul.f32 %v3344_v43, %v2158_v33 }
 0x77b   :  { %v2175_v12 = vmul.f32 %v3345_v38, %v2159_v15  ;;  %v1495_v25 = vmul.f32 0.25, %v1486_v3  ;;  %v1496_v48 = vmul.f32 0.25, %v1493_v61 }
 0x77d   :  { %v2190_v42 = vpack.c.bf16 %v2175_v12, %v2174_v14  ;;  %v4586_v2 = vsub.f32 %v1473_v56, %v1495_v25  ;;  %v4588_v5 = vsub.f32 %v1475_v20, %v1496_v48  ;;  %v3241_v20 = vpop.eup %3240  ;;  %v2029_v48 = vpop.xlane.xlu0 %2028 }
 0x77e   :  { %v3243_v45 = vpop.eup %3242 }
 0x77f   :  { %v2103_v17 = vpop.f32.mrb[84].mxu1  ;;  %2465 = vxpose.xlu0.c.b16.start [1/8] %v2190_v42, 128  ;;  %v1499_v29 = vmul.f32 %v4586_v2, %v4586_v2  ;;  %v1500_v53 = vmul.f32 %v4588_v5, %v4588_v5  ;;  %v3245_v58 = vpop.eup %3244 }
 0x780   :  { %v2160_v52 = vmul.f32 %v3237_v49, %v2103_v17  ;;  %v2105_v47 = vpop.f32.mrb[85].mxu1  ;;  %v3247_v12 = vpop.eup %3246  ;;  %v3350_v17 = vld [vmem:[#allocation7 + $0x30] sm:$0xff] }
 0x781   :  { %v2106_v41 = vpop.f32.mrb[86].mxu1  ;;  %v1501_v11 = vsel %vm1479_vm2, %v1499_v29, 0.0  ;;  %v1508_v50 = vsel %vm1479_vm2, %v1500_v53, 0.0  ;;  %v3351_v53 = vld [vmem:[#allocation7 + $0x38] sm:$0xff]  ;;  %v3249_v16 = vpop.eup %3248 }
 0x782   :  { %v2161_v30 = vmul.f32 %v3239_v21, %v2106_v41  ;;  %v2108_v0 = vpop.f32.mrb[87].mxu1  ;;  %v1502_v40 = vrot.slane %v1501_v11, 4  ;;  %v1509_v19 = vrot.slane %v1508_v50, 4  ;;  %v2176_v54 = vmul.f32 %v3346_v46, %v2160_v52  ;;  %v3352_v46 = vld [vmem:[#allocation7 + $0x40] sm:$0xff] }
 0x784   :  { %v2177_v4 = vmul.f32 %v3347_v31, %v2161_v30  ;;  %v1503_v1 = vadd.f32 %v1502_v40, %v1501_v11  ;;  %v1510_v27 = vadd.f32 %v1509_v19, %v1508_v50  ;;  %v3251_v50 = vpop.eup %3250  ;;  %v2035_v30 = vpop.xlane.xlu0 %2034  ;;  %v3353_v31 = vld [vmem:[#allocation7 + $0x48] sm:$0xff] }
 0x786   :  { %v2191_v28 = vpack.c.bf16 %v2177_v4, %v2176_v54  ;;  %v1504_v56 = vrot.slane %v1503_v1, 2  ;;  %v1511_v24 = vrot.slane %v1510_v27, 2 }
 0x787   :  { %v2111_v32 = vpop.f32.mrb[88].mxu1 }
 0x788   :  { %v2162_v18 = vmul.f32 %v3241_v20, %v2111_v32  ;;  %2466 = vxpose.xlu0.c.b16.cont [2/8] %v2191_v28, 128  ;;  %v2113_v13 = vpop.f32.mrb[89].mxu1  ;;  %v1505_v39 = vadd.f32 %v1504_v56, %v1503_v1  ;;  %v1512_v44 = vadd.f32 %v1511_v24, %v1510_v27  ;;  %v4599_v1 = vpop.permute.xlu1 %1525 }
 0x789   :  { %v2114_v35 = vpop.f32.mrb[90].mxu1 }
 0x78a   :  { %v2163_v62 = vmul.f32 %v3243_v45, %v2114_v35  ;;  %v2116_v59 = vpop.f32.mrb[91].mxu1  ;;  %v1506_v23 = vrot.slane %v1505_v39, 1  ;;  %v1513_v8 = vrot.slane %v1512_v44, 1  ;;  %v2178_v33 = vmul.f32 %v3348_v22, %v2162_v18  ;;  %v2041_v35 = vpop.xlane.xlu0 %2040 }
 0x78b   :  { %v3354_v59 = vld [vmem:[#allocation7 + $0x50] sm:$0xff] }
 0x78c   :  { %v2179_v9 = vmul.f32 %v3349_v26, %v2163_v62  ;;  %v1507_v55 = vadd.f32 %v1506_v23, %v1505_v39  ;;  %v1514_v63 = vadd.f32 %v1513_v8, %v1512_v44 }
 0x78e   :  { %v2192_v37 = vpack.c.bf16 %v2179_v9, %v2178_v33  ;;  %v1515_v10 = vmul.f32 0.25, %v1507_v55  ;;  %v1516_v15 = vmul.f32 0.25, %v1514_v63 }
 0x78f   :  { %v2119_v3 = vpop.f32.mrb[92].mxu1 }
 0x790   :  { %v2164_v61 = vmul.f32 %v3245_v58, %v2119_v3  ;;  %2467 = vxpose.xlu0.c.b16.cont [3/8] %v2192_v37, 128  ;;  %v2121_v43 = vpop.f32.mrb[93].mxu1  ;;  %v1517_v14 = vadd.f32 1e-05, %v1515_v10  ;;  %v1518_v38 = vadd.f32 1e-05, %v1516_v15  ;;  %v3356_v15 = vld [vmem:[#allocation7 + $0x60] sm:$0xff] }
 0x791   :  { %v2122_v25 = vpop.f32.mrb[94].mxu1  ;;  %v3357_v3 = vld [vmem:[#allocation7 + $0x68] sm:$0xff] }
 0x792   :  { %v2165_v42 = vmul.f32 %v3247_v12, %v2122_v25  ;;  %v2124_v49 = vpop.f32.mrb[95].mxu1  ;;  %3252 = vrsqrt.f32 %v1517_v14  ;;  %v2180_v29 = vmul.f32 %v3350_v17, %v2164_v61  ;;  %v3358_v17 = vld [vmem:[#allocation7 + $0x70] sm:$0xff] }
 0x793   :  { %3254 = vrsqrt.f32 %v1518_v38 }
 0x794   :  { %v2181_v52 = vmul.f32 %v3351_v53, %v2165_v42  ;;  %3256 = vrcp.f32 %v2029_v48  ;;  %v3359_v53 = vld [vmem:[#allocation7 + $0x78] sm:$0xff] }
 0x795   :  { %3258 = vrcp.f32 %v4572_v7 }
 0x796   :  { %v2193_v47 = vpack.c.bf16 %v2181_v52, %v2180_v29  ;;  %3260 = vrcp.f32 %v2035_v30 }
 0x797   :  { %v2127_v21 = vpop.f32.mrb[96].mxu1  ;;  %3262 = vrcp.f32 %v4574_v6 }
 0x798   :  { %v2166_v41 = vmul.f32 %v3249_v16, %v2127_v21  ;;  %2468 = vxpose.xlu0.c.b16.cont [4/8] %v2193_v47, 128  ;;  %v2129_v11 = vpop.f32.mrb[97].mxu1  ;;  %3264 = vrcp.f32 %v2041_v35 }
 0x799   :  { %v2130_v34 = vpop.f32.mrb[98].mxu1  ;;  %3266 = vrcp.f32 %v4576_v60 }
 0x79a   :  { %v2167_v0 = vmul.f32 %v3251_v50, %v2130_v34  ;;  %v2132_v40 = vpop.f32.mrb[99].mxu1  ;;  %v2182_v54 = vmul.f32 %v3352_v46, %v2166_v41 }
 0x79c   :  { %v3253_v19 = vpop.eup %3252  ;;  %v2183_v4 = vmul.f32 %v3353_v31, %v2167_v0 }
 0x79d   :  { %v3255_v27 = vpop.eup %3254  ;;  %v1521_v7 = vmul.f32 %v3253_v19, %v4586_v2 }
 0x79e   :  { %v2194_v28 = vpack.c.bf16 %v2183_v4, %v2182_v54  ;;  %v1522_v56 = vmul.f32 %v3255_v27, %v4588_v5  ;;  %v3257_v24 = vpop.eup %3256  ;;  %v3355_v5 = vld [vmem:[#allocation7 + $0x58] sm:$0xff] }
 0x79f   :  { %v1528_v20 = vmul.f32 %v4599_v1, %v1521_v7  ;;  %v2135_v32 = vpop.f32.mrb[100].mxu1  ;;  %v3259_v44 = vpop.eup %3258 }
 0x7a0   :  { %v1529_v18 = vmul.f32 %v4599_v1, %v1522_v56  ;;  %v2168_v13 = vmul.f32 %v3257_v24, %v2135_v32  ;;  %2469 = vxpose.xlu0.c.b16.cont [5/8] %v2194_v28, 128  ;;  %v2137_v39 = vpop.f32.mrb[101].mxu1  ;;  %v3261_v22 = vpop.eup %3260 }
 0x7a1   :  { %v2138_v45 = vpop.f32.mrb[102].mxu1  ;;  %v3263_v55 = vpop.eup %3262 }
 0x7a2   :  { %v2169_v51 = vmul.f32 %v3259_v44, %v2138_v45  ;;  %v2140_v62 = vpop.f32.mrb[103].mxu1  ;;  %v1532_v2 = vcombine.low %v1528_v20, %v1529_v18  ;;  %v2184_v23 = vmul.f32 %v3354_v59, %v2168_v13  ;;  %v3265_v14 = vpop.eup %3264 }
 0x7a3   :  { %v3267_v48 = vpop.eup %3266 }
 0x7a4   :  { %v2185_v8 = vmul.f32 %v3355_v5, %v2169_v51  ;;  %1534 = vst [vmem:[#allocation8] sm:$0xff] %v1532_v2 }
 0x7a6   :  { %v2195_v6 = vpack.c.bf16 %v2185_v8, %v2184_v23 }
 0x7a7   :  { %v2143_v33 = vpop.f32.mrb[104].mxu1 }
 0x7a8   :  { %v2170_v26 = vmul.f32 %v3261_v22, %v2143_v33  ;;  %2470 = vxpose.xlu0.c.b16.cont [6/8] %v2195_v6, 128  ;;  %v2145_v9 = vpop.f32.mrb[105].mxu1 }
 0x7a9   :  { %v2146_v63 = vpop.f32.mrb[106].mxu1 }
 0x7aa   :  { %v2171_v37 = vmul.f32 %v3263_v55, %v2146_v63  ;;  %v2148_v10 = vpop.f32.mrb[107].mxu1  ;;  %v2186_v58 = vmul.f32 %v3356_v15, %v2170_v26 }
 0x7ac   :  { %v2187_v61 = vmul.f32 %v3357_v3, %v2171_v37 }
 0x7ae   :  { %v2196_v43 = vpack.c.bf16 %v2187_v61, %v2186_v58 }
 0x7af   :  { %v2151_v38 = vpop.f32.mrb[108].mxu1 }
 0x7b0   :  { %v2172_v12 = vmul.f32 %v3265_v14, %v2151_v38  ;;  %2471 = vxpose.xlu0.c.b16.cont [7/8] %v2196_v43, 128  ;;  %v2153_v25 = vpop.f32.mrb[109].mxu1 }
 0x7b1   :  { %v2154_v60 = vpop.f32.mrb[110].mxu1 }
 0x7b2   :  { %v2173_v42 = vmul.f32 %v3267_v48, %v2154_v60  ;;  %v2156_v49 = vpop.f32.mrb[111].mxu1  ;;  %v2188_v29 = vmul.f32 %v3358_v17, %v2172_v12 }
 0x7b4   :  { %v2189_v52 = vmul.f32 %v3359_v53, %v2173_v42 }
 0x7b6   :  { %v2197_v47 = vpack.c.bf16 %v2189_v52, %v2188_v29 }
 0x7b7   :  { %v2386_v16 = vpop.f32.mrb[112].mxu1 }
 0x7b8   :  { %2472 = vxpose.xlu0.c.b16.end [8/8] %v2197_v47, 128  ;;  %v2388_v21 = vpop.f32.mrb[113].mxu1  ;;  %3268 = vrcp.f32 %v2386_v16 }
 0x7b9   :  { %v2390_v41 = vpop.f32.mrb[114].mxu1  ;;  %3270 = vrcp.f32 %v2388_v21 }
 0x7ba   :  { %v2392_v11 = vpop.f32.mrb[115].mxu1  ;;  %3272 = vrcp.f32 %v2390_v41 }
 0x7bb   :  { %3274 = vrcp.f32 %v2392_v11 }
 0x7bf   :  { %v2396_v50 = vpop.f32.mrb[116].mxu1 }
 0x7c0   :  { %v2398_v34 = vpop.f32.mrb[117].mxu1  ;;  %3276 = vrcp.f32 %v2396_v50 }
 0x7c1   :  { %v2400_v30 = vpop.f32.mrb[118].mxu1  ;;  %2868 = vset.pattern.permute.xlu0 %v4803_v36  ;;  %3278 = vrcp.f32 %v2398_v34 }
 0x7c2   :  { %v2402_v0 = vpop.f32.mrb[119].mxu1  ;;  %v3269_v63 = vpop.eup %3268  ;;  %3280 = vrcp.f32 %v2400_v30 }
 0x7c3   :  { %v3271_v10 = vpop.eup %3270  ;;  %3282 = vrcp.f32 %v2402_v0 }
 0x7c4   :  { %v3273_v3 = vpop.eup %3272 }
 0x7c5   :  { %v3275_v14 = vpop.eup %3274 }
 0x7c7   :  { %v4608_v40 = vpop.f32.mrb[120].mxu1 }
 0x7c8   :  { %v4610_v19 = vpop.f32.mrb[121].mxu1  ;;  %3284 = vrcp.f32 %v4608_v40 }
 0x7c9   :  { %v4612_v46 = vpop.f32.mrb[122].mxu1  ;;  %3286 = vrcp.f32 %v4610_v19 }
 0x7ca   :  { %v4614_v54 = vpop.f32.mrb[123].mxu1  ;;  %v3277_v60 = vpop.eup %3276  ;;  %3288 = vrcp.f32 %v4612_v46 }
 0x7cb   :  { %v3279_v49 = vpop.eup %3278  ;;  %3290 = vrcp.f32 %v4614_v54 }
 0x7cc   :  { %v3281_v53 = vpop.eup %3280 }
 0x7cd   :  { %v3283_v16 = vpop.eup %3282 }
 0x7cf   :  { %v4616_v31 = vpop.f32.mrb[124].mxu1 }
 0x7d0   :  { %v4618_v4 = vpop.f32.mrb[125].mxu1  ;;  %3292 = vrcp.f32 %v4616_v31 }
 0x7d1   :  { %v4620_v27 = vpop.f32.mrb[126].mxu1  ;;  %3294 = vrcp.f32 %v4618_v4 }
 0x7d2   :  { %v4622_v7 = vpop.f32.mrb[127].mxu1  ;;  %v3285_v30 = vpop.eup %3284  ;;  %3296 = vrcp.f32 %v4620_v27 }
 0x7d3   :  { %v3287_v40 = vpop.eup %3286  ;;  %3298 = vrcp.f32 %v4622_v7 }
 0x7d4   :  { %v3289_v54 = vpop.eup %3288 }
 0x7d7   :  { %v4624_v28 = vpop.f32.mrb[128].mxu1 }
 0x7d8   :  { %v4626_v56 = vpop.f32.mrb[129].mxu1  ;;  %3300 = vrcp.f32 %v4624_v28 }
 0x7d9   :  { %v4628_v24 = vpop.f32.mrb[130].mxu1  ;;  %3302 = vrcp.f32 %v4626_v56 }
 0x7da   :  { %v4630_v20 = vpop.f32.mrb[131].mxu1  ;;  %3304 = vrcp.f32 %v4628_v24 }
 0x7db   :  { %3306 = vrcp.f32 %v4630_v20 }
 0x7df   :  { %v4632_v32 = vpop.f32.mrb[132].mxu1 }
 0x7e0   :  { %v4634_v18 = vpop.f32.mrb[133].mxu1  ;;  %3308 = vrcp.f32 %v4632_v32 }
 0x7e1   :  { %v4636_v13 = vpop.f32.mrb[134].mxu1  ;;  %3310 = vrcp.f32 %v4634_v18 }
 0x7e2   :  { %v4638_v39 = vpop.f32.mrb[135].mxu1  ;;  %3312 = vrcp.f32 %v4636_v13 }
 0x7e3   :  { %3314 = vrcp.f32 %v4638_v39 }
 0x7e7   :  { %v4640_v44 = vpop.f32.mrb[136].mxu1 }
 0x7e8   :  { %v4642_v45 = vpop.f32.mrb[137].mxu1  ;;  %3316 = vrcp.f32 %v4640_v44 }
 0x7e9   :  { %v4644_v35 = vpop.f32.mrb[138].mxu1  ;;  %3318 = vrcp.f32 %v4642_v45 }
 0x7ea   :  { %v4646_v51 = vpop.f32.mrb[139].mxu1  ;;  %3320 = vrcp.f32 %v4644_v35 }
 0x7ef   :  { %v4648_v62 = vpop.f32.mrb[140].mxu1 }
 0x7f0   :  { %v4650_v2 = vpop.f32.mrb[141].mxu1 }
 0x7f1   :  { %v4652_v59 = vpop.f32.mrb[142].mxu1 }
 0x7f2   :  { %v4654_v23 = vpop.f32.mrb[143].mxu1 }
 0x802   :  { %v2473_v5 = vpop.trf.xlu0 }
 0x803   :  { %2514 = vmatmul.mubr.bf16.vlgmr.msra.gmra.mrb[144].mxu1 %v2473_v5 }
 0x804   :  { %2523 = vmatprep.mubr.bf16.mxu1 %v4803_v36 }
 0x806   :  { %v2474_v8 = vpop.trf.xlu0 }
 0x80a   :  { %v2475_v6 = vpop.trf.xlu0 }
 0x80b   :  { %2524 = vmatmul.mubr.bf16.gmra.mrb[148].mxu1 %v2474_v8 }
 0x80c   :  { %2533 = vmatprep.mubr.bf16.mxu1 %v4803_v36 }
 0x80e   :  { %v2476_v22 = vpop.trf.xlu0 }
 0x812   :  { %v2477_v33 = vpop.trf.xlu0 }
 0x813   :  { %2534 = vmatmul.mubr.bf16.gmra.mrb[152].mxu1 %v2475_v6  ;;  %v3291_v6 = vpop.eup %3290  ;;  %3322 = vrcp.f32 %v4646_v51 }
 0x814   :  { %2543 = vmatprep.mubr.bf16.mxu1 %v4803_v36  ;;  %v3293_v27 = vpop.eup %3292  ;;  %3324 = vrcp.f32 %v4648_v62 }
 0x816   :  { %v2478_v26 = vpop.trf.xlu0 }
 0x81a   :  { %v2479_v9 = vpop.trf.xlu0 }
 0x81b   :  { %2544 = vmatmul.mubr.bf16.gmra.mrb[156].mxu1 %v2476_v22 }
 0x81c   :  { %2553 = vmatprep.mubr.bf16.mxu1 %v4803_v36 }
 0x81e   :  { %v2480_v55 = vpop.trf.xlu0 }
 0x823   :  { %2554 = vmatmul.mubr.bf16.gmra.mrb[160].mxu1 %v2477_v33 }
 0x824   :  { %2563 = vmatprep.mubr.bf16.mxu1 %v4803_v36 }
 0x82b   :  { %2564 = vmatmul.mubr.bf16.gmra.mrb[164].mxu1 %v2478_v26 }
 0x82c   :  { %2573 = vmatprep.mubr.bf16.mxu1 %v4803_v36 }
 0x833   :  { %2574 = vmatmul.mubr.bf16.gmra.mrb[168].mxu1 %v2479_v9  ;;  %v3295_v9 = vpop.eup %3294  ;;  %3326 = vrcp.f32 %v4650_v2 }
 0x834   :  { %2583 = vmatprep.mubr.bf16.mxu1 %v4803_v36 }
 0x83b   :  { %2584 = vmatmul.mubr.bf16.gmra.mrb[172].mxu1 %v2480_v55 }
 0x83c   :  { %2706 = vmatprep.mubr.bf16.mxu1 %v4803_v36 }
 0x8d6   :  { %v2515_v37 = vpop.f32.mrb[144].mxu1 }
 0x8d7   :  { %v2626_v15 = vmul.f32 %v3269_v63, %v2515_v37  ;;  %v2517_v58 = vpop.f32.mrb[145].mxu1  ;;  %v3297_v37 = vpop.eup %3296  ;;  %3328 = vrcp.f32 %v4652_v59 }
 0x8d8   :  { %v2627_v61 = vmul.f32 %v3271_v10, %v2517_v58  ;;  %v2519_v43 = vpop.f32.mrb[146].mxu1  ;;  %v3299_v58 = vpop.eup %3298  ;;  %3330 = vrcp.f32 %v4654_v23 }
 0x8d9   :  { %v2628_v38 = vmul.f32 %v3273_v3, %v2519_v43  ;;  %v2521_v12 = vpop.f32.mrb[147].mxu1  ;;  %v3301_v24 = vpop.eup %3300 }
 0x8da   :  { %v2629_v36 = vmul.f32 %v3275_v14, %v2521_v12  ;;  %v3303_v14 = vpop.eup %3302 }
 0x8db   :  { %v2658_v25 = vpack.c.bf16 %v2628_v38, %v2626_v15 }
 0x8dc   :  { %v2659_v48 = vpack.c.bf16 %v2629_v36, %v2627_v61  ;;  %v3305_v36 = vpop.eup %3304 }
 0x8de   :  { %v2525_v42 = vpop.f32.mrb[148].mxu1  ;;  %2674 = vmatprep.subr.bf16.mxu1 %v2659_v48 }
 0x8df   :  { %v2630_v17 = vmul.f32 %v3277_v60, %v2525_v42  ;;  %v2527_v29 = vpop.f32.mrb[149].mxu1  ;;  %2675 = vmatpush1.bf16.msra.mxu1 %v2658_v25  ;;  %v3307_v60 = vpop.eup %3306 }
 0x8e0   :  { %v2631_v52 = vmul.f32 %v3279_v49, %v2527_v29  ;;  %v2529_v47 = vpop.f32.mrb[150].mxu1  ;;  %v3309_v13 = vpop.eup %3308 }
 0x8e1   :  { %v2632_v21 = vmul.f32 %v3281_v53, %v2529_v47  ;;  %v2531_v41 = vpop.f32.mrb[151].mxu1  ;;  %v3311_v29 = vpop.eup %3310 }
 0x8e2   :  { %v2633_v11 = vmul.f32 %v3283_v16, %v2531_v41  ;;  %v3313_v47 = vpop.eup %3312 }
 0x8e3   :  { %v2660_v50 = vpack.c.bf16 %v2632_v21, %v2630_v17  ;;  %v3315_v41 = vpop.eup %3314 }
 0x8e4   :  { %v2661_v34 = vpack.c.bf16 %v2633_v11, %v2631_v52  ;;  %v3317_v35 = vpop.eup %3316 }
 0x8e6   :  { %v2535_v0 = vpop.f32.mrb[152].mxu1  ;;  %2676 = vmatprep.subr.bf16.mxu1 %v2661_v34 }
 0x8e7   :  { %v2634_v19 = vmul.f32 %v3285_v30, %v2535_v0  ;;  %v2537_v46 = vpop.f32.mrb[153].mxu1  ;;  %2677 = vmatpush1.bf16.msra.mxu1 %v2660_v50  ;;  %v3319_v30 = vpop.eup %3318 }
 0x8e8   :  { %v2635_v5 = vmul.f32 %v3287_v40, %v2537_v46  ;;  %v2539_v8 = vpop.f32.mrb[154].mxu1 }
 0x8e9   :  { %v2636_v22 = vmul.f32 %v3289_v54, %v2539_v8  ;;  %v2541_v31 = vpop.f32.mrb[155].mxu1 }
 0x8ea   :  { %v2637_v33 = vmul.f32 %v3291_v6, %v2541_v31 }
 0x8eb   :  { %v2662_v26 = vpack.c.bf16 %v2636_v22, %v2634_v19  ;;  %v3321_v19 = vpop.eup %3320 }
 0x8ec   :  { %v2663_v4 = vpack.c.bf16 %v2637_v33, %v2635_v5  ;;  %v3323_v5 = vpop.eup %3322 }
 0x8ed   :  { %v3325_v31 = vpop.eup %3324 }
 0x8ee   :  { %v2545_v7 = vpop.f32.mrb[156].mxu1  ;;  %2678 = vmatprep.subr.bf16.mxu1 %v2663_v4  ;;  %v3327_v59 = vpop.eup %3326 }
 0x8ef   :  { %v2638_v55 = vmul.f32 %v3293_v27, %v2545_v7  ;;  %v2547_v63 = vpop.f32.mrb[157].mxu1  ;;  %2679 = vmatpush1.bf16.msra.mxu1 %v2662_v26  ;;  %v3329_v23 = vpop.eup %3328 }
 0x8f0   :  { %v2639_v10 = vmul.f32 %v3295_v9, %v2547_v63  ;;  %v2549_v15 = vpop.f32.mrb[158].mxu1  ;;  %v3331_v9 = vpop.eup %3330 }
 0x8f1   :  { %v2640_v3 = vmul.f32 %v3297_v37, %v2549_v15  ;;  %v2551_v28 = vpop.f32.mrb[159].mxu1 }
 0x8f2   :  { %v2641_v61 = vmul.f32 %v3299_v58, %v2551_v28  ;;  %v3360_v58 = vld [vmem:[%s4716_s2] sm:$0x3]  ;;  %s3464_s2 = smov [#allocation8]  }
 0x8f3   :  { %v2664_v43 = vpack.c.bf16 %v2640_v3, %v2638_v55  ;;  %s2770_s22 = sshll.u32 %s3464_s2, 4  ;;  %s2771_s22 = int_to_ptr.vmem [resolvable:$true] %s2770_s22 }
 0x8f4   :  { %v2665_v56 = vpack.c.bf16 %v2641_v61, %v2639_v10  ;;  %s3427_s23 = scalar_lea.vmem %s2771_s22, 256  ;;  %p3432_p11 = scmp.lt.s32.totalorder %s2771_s22, %s2771_s22 }
 0x8f5   :  { %p3428_p10 = scmp.ne.s32.totalorder %s2771_s22, %s3427_s23  ;;  %p3433_p12 = scmp.lt.s32.totalorder %s3427_s23, %s3427_s23 }
 0x8f6   :  { %v2555_v20 = vpop.f32.mrb[160].mxu1  ;;  %2680 = vmatprep.subr.bf16.mxu1 %v2665_v56 }
 0x8f7   :  { %v2642_v38 = vmul.f32 %v3301_v24, %v2555_v20  ;;  %v2557_v12 = vpop.f32.mrb[161].mxu1  ;;  %2681 = vmatpush1.bf16.msra.mxu1 %v2664_v43  ;;  %p3434_p13 = por %p3433_p12, %p3432_p11 }
 0x8f8   :  { %v2643_v25 = vmul.f32 %v3303_v14, %v2557_v12  ;;  %v2559_v48 = vpop.f32.mrb[162].mxu1 }
 0x8f9   :  { %v2644_v42 = vmul.f32 %v3305_v36, %v2559_v48  ;;  %v2561_v32 = vpop.f32.mrb[163].mxu1  ;;  %p3435_p0 = pnand %p3434_p13, %p3428_p10 }
 0x8fa   :  { %v2645_v49 = vmul.f32 %v3307_v60, %v2561_v32 }
 0x8fb   :  { %v2666_v17 = vpack.c.bf16 %v2644_v42, %v2642_v38 }
 0x8fc   :  { %v2667_v18 = vpack.c.bf16 %v2645_v49, %v2643_v25 }
 0x8fe   :  { %v2565_v39 = vpop.f32.mrb[164].mxu1  ;;  %2682 = vmatprep.subr.bf16.mxu1 %v2667_v18 }
 0x8ff   :  { %v2646_v53 = vmul.f32 %v3309_v13, %v2565_v39  ;;  %v2567_v52 = vpop.f32.mrb[165].mxu1  ;;  %2683 = vmatpush1.bf16.msra.mxu1 %v2666_v17 }
 0x900   :  { %v2647_v16 = vmul.f32 %v3311_v29, %v2567_v52  ;;  %v2569_v21 = vpop.f32.mrb[166].mxu1 }
 0x901   :  { %v2648_v11 = vmul.f32 %v3313_v47, %v2569_v21  ;;  %v2571_v44 = vpop.f32.mrb[167].mxu1 }
 0x902   :  { %v2649_v50 = vmul.f32 %v3315_v41, %v2571_v44 }
 0x903   :  { %v2668_v34 = vpack.c.bf16 %v2648_v11, %v2646_v53 }
 0x904   :  { %v2669_v45 = vpack.c.bf16 %v2649_v50, %v2647_v16 }
 0x906   :  { %v2575_v51 = vpop.f32.mrb[168].mxu1  ;;  %2684 = vmatprep.subr.bf16.mxu1 %v2669_v45 }
 0x907   :  { %v2650_v0 = vmul.f32 %v3317_v35, %v2575_v51  ;;  %v2577_v40 = vpop.f32.mrb[169].mxu1  ;;  %2685 = vmatpush1.bf16.msra.mxu1 %v2668_v34 }
 0x908   :  { %v2651_v46 = vmul.f32 %v3319_v30, %v2577_v40  ;;  %v2579_v54 = vpop.f32.mrb[170].mxu1 }
 0x909   :  { %v2652_v8 = vmul.f32 %v3321_v19, %v2579_v54  ;;  %v2581_v62 = vpop.f32.mrb[171].mxu1 }
 0x90a   :  { %v2653_v6 = vmul.f32 %v3323_v5, %v2581_v62 }
 0x90b   :  { %v2670_v22 = vpack.c.bf16 %v2652_v8, %v2650_v0 }
 0x90c   :  { %v2671_v2 = vpack.c.bf16 %v2653_v6, %v2651_v46 }
 0x90e   :  { %v2585_v33 = vpop.f32.mrb[172].mxu1  ;;  %2686 = vmatprep.subr.bf16.mxu1 %v2671_v2 }
 0x90f   :  { %v2654_v26 = vmul.f32 %v3325_v31, %v2585_v33  ;;  %v2587_v4 = vpop.f32.mrb[173].mxu1  ;;  %2687 = vmatpush1.bf16.msra.mxu1 %v2670_v22 }
 0x910   :  { %v2655_v27 = vmul.f32 %v3327_v59, %v2587_v4  ;;  %v2589_v7 = vpop.f32.mrb[174].mxu1 }
 0x911   :  { %v2656_v55 = vmul.f32 %v3329_v23, %v2589_v7  ;;  %v2591_v63 = vpop.f32.mrb[175].mxu1 }
 0x912   :  { %v2657_v37 = vmul.f32 %v3331_v9, %v2591_v63 }
 0x913   :  { %v2672_v10 = vpack.c.bf16 %v2656_v55, %v2654_v26 }
 0x914   :  { %v2673_v15 = vpack.c.bf16 %v2657_v37, %v2655_v27 }
 0x916   :  { %2688 = vmatprep.subr.bf16.mxu1 %v2673_v15 }
 0x917   :  { %2689 = vmatpush1.bf16.msra.mxu1 %v2672_v10 }
 0x91a   :  { %2707 = vmatmul.mubr.bf16.vlgmr.msra.gmra.mrb[176].mxu1 %v3360_v58 }
 0x9ed   :  { %v2708_v3 = vpop.f32.mrb[176].mxu1 }
 0x9ee   :  { %v2709_v28 = vadd.f32 %v2708_v3, %v4578_v57  ;;  %v2710_v61 = vpop.f32.mrb[177].mxu1 }
 0x9ef   :  { %v2711_v43 = vadd.f32 %v2710_v61, %v4578_v57  ;;  %v2712_v56 = vpop.f32.mrb[178].mxu1 }
 0x9f0   :  { %v2715_v24 = vsel %vm1479_vm2, %v2709_v28, 0.0  ;;  %v2713_v20 = vpop.f32.mrb[179].mxu1 }
 0x9f1   :  { %v2716_v14 = vrot.slane %v2715_v24, 4  ;;  %v2722_v38 = vsel %vm1479_vm2, %v2711_v43, 0.0 }
 0x9f2   :  { %v2723_v12 = vrot.slane %v2722_v38, 4 }
 0x9f3   :  { %v2717_v36 = vadd.f32 %v2716_v14, %v2715_v24 }
 0x9f4   :  { %v2724_v25 = vadd.f32 %v2723_v12, %v2722_v38 }
 0x9f5   :  { %v2718_v48 = vrot.slane %v2717_v36, 2 }
 0x9f6   :  { %v2725_v60 = vrot.slane %v2724_v25, 2 }
 0x9f7   :  { %v2719_v42 = vadd.f32 %v2718_v48, %v2717_v36 }
 0x9f8   :  { %v2726_v32 = vadd.f32 %v2725_v60, %v2724_v25 }
 0x9f9   :  { %v2720_v49 = vrot.slane %v2719_v42, 1 }
 0x9fa   :  { %v2727_v17 = vrot.slane %v2726_v32, 1 }
 0x9fb   :  { %v2721_v18 = vadd.f32 %v2720_v49, %v2719_v42 }
 0x9fc   :  { %v2728_v13 = vadd.f32 %v2727_v17, %v2726_v32 }
 0x9fd   :  { %v2729_v39 = vmul.f32 0.25, %v2721_v18 }
 0x9fe   :  { %v2730_v57 = vmul.f32 0.25, %v2728_v13 }
 0x9ff   :  { %v2731_v29 = vsub.f32 %v2709_v28, %v2729_v39 }
 0xa00   :  { %v2732_v53 = vsub.f32 %v2711_v43, %v2730_v57 }
 0xa01   :  { %v2733_v52 = vmul.f32 %v2731_v29, %v2731_v29 }
 0xa02   :  { %v2734_v47 = vmul.f32 %v2732_v53, %v2732_v53 }
 0xa03   :  { %v2735_v16 = vsel %vm1479_vm2, %v2733_v52, 0.0 }
 0xa04   :  { %v2736_v21 = vrot.slane %v2735_v16, 4  ;;  %v2742_v41 = vsel %vm1479_vm2, %v2734_v47, 0.0 }
 0xa05   :  { %v2743_v11 = vrot.slane %v2742_v41, 4 }
 0xa06   :  { %v2737_v44 = vadd.f32 %v2736_v21, %v2735_v16 }
 0xa07   :  { %v2744_v50 = vadd.f32 %v2743_v11, %v2742_v41 }
 0xa08   :  { %v2738_v34 = vrot.slane %v2737_v44, 2 }
 0xa09   :  { %v2745_v45 = vrot.slane %v2744_v50, 2 }
 0xa0a   :  { %v2739_v35 = vadd.f32 %v2738_v34, %v2737_v44 }
 0xa0b   :  { %v2746_v51 = vadd.f32 %v2745_v45, %v2744_v50 }
 0xa0c   :  { %v2740_v30 = vrot.slane %v2739_v35, 1 }
 0xa0d   :  { %v2747_v0 = vrot.slane %v2746_v51, 1 }
 0xa0e   :  { %v2741_v40 = vadd.f32 %v2740_v30, %v2739_v35 }
 0xa0f   :  { %v2748_v19 = vadd.f32 %v2747_v0, %v2746_v51 }
 0xa10   :  { %v2749_v46 = vmul.f32 0.25, %v2741_v40 }
 0xa11   :  { %v2750_v54 = vmul.f32 0.25, %v2748_v19 }
 0xa12   :  { %v2751_v5 = vadd.f32 1e-05, %v2749_v46 }
 0xa13   :  { %v2752_v8 = vadd.f32 1e-05, %v2750_v54 }
 0xa14   :  { %3332 = vrsqrt.f32 %v2751_v5 }
 0xa15   :  { %3334 = vrsqrt.f32 %v2752_v8 }
 0xa1e   :  { %v3333_v62 = vpop.eup %3332 }
 0xa1f   :  { %v3335_v6 = vpop.eup %3334  ;;  %v2755_v22 = vmul.f32 %v3333_v62, %v2731_v29 }
 0xa20   :  { %v2756_v2 = vmul.f32 %v3335_v6, %v2732_v53 }
 0xa21   :  { %v2757_v31 = vmul.f32 %v2755_v22, %v4599_v1 }
 0xa22   :  { %v2758_v33 = vmul.f32 %v2756_v2, %v4599_v1 }
 0xa24   :  { %v2761_v59 = vcombine.low %v2757_v31, %v2758_v33 }
 0xa26   :  { %2764 = vst [vmem:[#allocation8 + $0x8] sm:$0xff] %v2761_v59 }
 0xa27   :  { %3438 = shalt.err (!%p3435_p0)
}
 0xa28   :  { %s3439_s27 = scalar_lea.hbm %s4721_s7, 256 }
 0xa29   :  { %p3440_p1 = scmp.ne.s32.totalorder %s4721_s7, %s3439_s27  ;;  %p3443_p2 = scmp.lt.u32.totalorder %s3439_s27, %s4721_s7 }
 0xa2b   :  { %p3445_p3 = pnand %p3443_p2, %p3440_p1 }
 0xa2d   :  { %3448 = shalt.err (!%p3445_p3)
}
 0xa2e   :  { %2776 = dma.vmem_to_hbm [thread:$0]  %s2771_s22, 256, %s4721_s7, [#allocation4], %s3459_s5, %s3459_s5, %s3460_s25  }
 0xa2f   :  { %3453 = dma.done.wait [#allocation4], 256  }
 0xa30   :  { %3454 = vsyncadd [#allocation4], 4294967040 }
 0xa31   :  { %2780 = vsyncpa [#allocation3], 1 }
 0xa32   :  { %2781 = vsyncpa [#allocation6], 1 }
 0xa33   :  { %2782 = vsyncpa [#allocation4], 1 }

</bundles_post_ra>
